<compile_context>
chip_gen: v5e
topology: v5e:2x2
jax: 0.10.0
libtpu: 0.0.40
codegen_flags: <defaults>
</compile_context>

<pallas_src>
import math

import jax
import jax.numpy as jnp
from jax.experimental import pallas as pl
from jax.experimental.pallas import tpu as pltpu

# ----------------- small synthetic CLIP-ViT config -----------------
BATCH = 2
CHANNELS = 3
IMAGE = 16
PATCH = 8
HIDDEN = 32
HEADS = 4
HEAD_DIM = HIDDEN // HEADS
MLP = 64
LAYERS = 2
PROJ = 16
NUM_PATCHES = (IMAGE // PATCH) ** 2
SEQ = NUM_PATCHES + 1
ROWS = BATCH * SEQ
PATCH_DIM = CHANNELS * PATCH * PATCH
EPS = 1e-5
ATTN_SCALE = 1.0 / math.sqrt(HEAD_DIM)


# ----------------- in-kernel helpers (values, not refs) -----------------
def _ln(x, g, b):
    x = x.astype(jnp.float32)
    mu = jnp.mean(x, axis=-1, keepdims=True)
    var = jnp.mean((x - mu) ** 2, axis=-1, keepdims=True)
    return (x - mu) * jax.lax.rsqrt(var + EPS) * g + b


def _quick_gelu(x):
    # CLIP's activation: x * sigmoid(1.702 * x)
    return x * jax.nn.sigmoid(1.702 * x)


# ----------------- the single fused kernel -----------------
def _clip_fused_kernel(
    px_ref, wp_ref, base_ref,
    pre_g_ref, pre_b_ref,
    ln1_g_ref, ln1_b_ref, wqkv_ref, bqkv_ref, wo_ref, bo_ref,
    ln2_g_ref, ln2_b_ref, w1_ref, b1_ref, w2_ref, b2_ref,
    post_g_ref, post_b_ref, wproj_ref,
    out_ref,
    attn_scratch, pooled_scratch,
):
    f32 = jnp.float32

    # ---- patch embedding (conv-as-matmul; CLS rows of px are zero) + cls/pos add ----
    h = jnp.dot(px_ref[...], wp_ref[...], preferred_element_type=f32) + base_ref[...]

    # ---- pre-layernorm ----
    h = _ln(h, pre_g_ref[...], pre_b_ref[...])

    # ---- transformer encoder layers (fully unrolled) ----
    for l in range(LAYERS):
        # LN1 fused into the QKV projection (single (HIDDEN, 3*HIDDEN) matmul)
        x1 = _ln(h, ln1_g_ref[l], ln1_b_ref[l])
        qkv = jnp.dot(x1, wqkv_ref[l], preferred_element_type=f32) + bqkv_ref[l]

        # per-(batch, head) attention on VMEM-resident values; head outputs are
        # assembled directly into a VMEM scratch slab (no HBM round trips).
        for b in range(BATCH):
            r0 = b * SEQ
            for hd in range(HEADS):
                c0 = hd * HEAD_DIM
                q = qkv[r0:r0 + SEQ, c0:c0 + HEAD_DIM] * ATTN_SCALE
                k = qkv[r0:r0 + SEQ, HIDDEN + c0:HIDDEN + c0 + HEAD_DIM]
                v = qkv[r0:r0 + SEQ, 2 * HIDDEN + c0:2 * HIDDEN + c0 + HEAD_DIM]
                s = jax.lax.dot_general(
                    q, k, (((1,), (1,)), ((), ())), preferred_element_type=f32)
                s = s - jnp.max(s, axis=-1, keepdims=True)
                p = jnp.exp(s)
                p = p * pl.reciprocal(jnp.sum(p, axis=-1, keepdims=True), approx=True)
                o = jnp.dot(p, v, preferred_element_type=f32)
                attn_scratch[r0:r0 + SEQ, c0:c0 + HEAD_DIM] = o

        # output projection + residual
        h = (jnp.dot(attn_scratch[...], wo_ref[l], preferred_element_type=f32)
             + bo_ref[l] + h)

        # LN2 fused into the MLP (up-proj + quick-gelu, then down-proj + residual)
        x2 = _ln(h, ln2_g_ref[l], ln2_b_ref[l])
        m = _quick_gelu(jnp.dot(x2, w1_ref[l], preferred_element_type=f32) + b1_ref[l])
        h = jnp.dot(m, w2_ref[l], preferred_element_type=f32) + b2_ref[l] + h

    # ---- CLS pooling + post-layernorm + visual projection (no bias) ----
    for b in range(BATCH):
        pooled_scratch[b:b + 1, :] = h[b * SEQ:b * SEQ + 1, :]
    pooled = _ln(pooled_scratch[...], post_g_ref[...], post_b_ref[...])
    out_ref[...] = jnp.dot(
        pooled, wproj_ref[...], preferred_element_type=f32).astype(out_ref.dtype)


# ----------------- pallas_call plumbing -----------------
def _full_spec(shape):
    nd = len(shape)
    return pl.BlockSpec(shape, lambda *_: (0,) * nd)


# ----------------- parameters (deterministic synthetic init, fused layout) -----------------
def init_params(key):
    keys = iter(jax.random.split(key, 32))

    def w(shape):
        return jax.random.normal(next(keys), shape, jnp.float32) * 0.02

    def stack_w(shape):
        return jnp.stack([w(shape) for _ in range(LAYERS)])

    return {
        "patch_w": w((HIDDEN, CHANNELS, PATCH, PATCH)),  # Conv2d (out, in, kh, kw), no bias
        "cls": w((HIDDEN,)),
        "pos": w((SEQ, HIDDEN)),
        "pre_g": jnp.ones((1, HIDDEN), jnp.float32),
        "pre_b": jnp.zeros((1, HIDDEN), jnp.float32),
        "post_g": jnp.ones((1, HIDDEN), jnp.float32),
        "post_b": jnp.zeros((1, HIDDEN), jnp.float32),
        "proj_w": w((HIDDEN, PROJ)),                     # (in, out)
        # per-layer params, stacked on a leading LAYERS axis; Q|K|V fused on the out dim
        "ln1_g": jnp.ones((LAYERS, 1, HIDDEN), jnp.float32),
        "ln1_b": jnp.zeros((LAYERS, 1, HIDDEN), jnp.float32),
        "wqkv": stack_w((HIDDEN, 3 * HIDDEN)),
        "bqkv": jnp.zeros((LAYERS, 1, 3 * HIDDEN), jnp.float32),
        "wo": stack_w((HIDDEN, HIDDEN)),
        "bo": jnp.zeros((LAYERS, 1, HIDDEN), jnp.float32),
        "ln2_g": jnp.ones((LAYERS, 1, HIDDEN), jnp.float32),
        "ln2_b": jnp.zeros((LAYERS, 1, HIDDEN), jnp.float32),
        "w1": stack_w((HIDDEN, MLP)),
        "b1": jnp.zeros((LAYERS, 1, MLP), jnp.float32),
        "w2": stack_w((MLP, HIDDEN)),
        "b2": jnp.zeros((LAYERS, 1, HIDDEN), jnp.float32),
    }


# ----------------- forward (SketchModel.forward -> image_embeds) -----------------
@jax.jit
def sketch_model_forward(x, params):
    B = x.shape[0]
    nH, nW = x.shape[2] // PATCH, x.shape[3] // PATCH

    # unfold the stride==kernel conv into rows of (C*P*P); prepend a zero row per
    # image for the CLS slot so the patch-embed matmul produces all SEQ rows.
    patches = x.reshape(B, CHANNELS, nH, PATCH, nW, PATCH).transpose(0, 2, 4, 1, 3, 5)
    patches = patches.reshape(B, nH * nW, PATCH_DIM)
    patches = jnp.concatenate(
        [jnp.zeros((B, 1, PATCH_DIM), patches.dtype), patches], axis=1)
    patches = patches.reshape(B * SEQ, PATCH_DIM)

    # additive (cls + position) term, flattened to (B*SEQ, HIDDEN)
    base = jnp.concatenate(
        [params["cls"][None, :] + params["pos"][0:1, :], params["pos"][1:, :]], axis=0)
    base = jnp.tile(base, (B, 1))

    w_patch = params["patch_w"].reshape(HIDDEN, PATCH_DIM).T  # (C*P*P, HIDDEN)

    inputs = (
        patches, w_patch, base,
        params["pre_g"], params["pre_b"],
        params["ln1_g"], params["ln1_b"], params["wqkv"], params["bqkv"],
        params["wo"], params["bo"],
        params["ln2_g"], params["ln2_b"], params["w1"], params["b1"],
        params["w2"], params["b2"],
        params["post_g"], params["post_b"], params["proj_w"],
    )

    return pl.pallas_call(
        _clip_fused_kernel,
        out_shape=jax.ShapeDtypeStruct((B, PROJ), jnp.float32),
        grid=(1,),
        in_specs=[_full_spec(a.shape) for a in inputs],
        out_specs=_full_spec((B, PROJ)),
        scratch_shapes=[
            pltpu.VMEM((ROWS, HIDDEN), jnp.float32),  # attention head-output slab
            pltpu.VMEM((BATCH, HIDDEN), jnp.float32),  # pooled CLS rows
        ],
        compiler_params=pltpu.CompilerParams(
            dimension_semantics=("arbitrary",),
            vmem_limit_bytes=32 * 1024 * 1024,
        ),
    )(*inputs)


if __name__ == "__main__":
    key = jax.random.PRNGKey(0)
    pkey, xkey = jax.random.split(key)
    params = init_params(pkey)
    x = jax.random.normal(xkey, (BATCH, CHANNELS, IMAGE, IMAGE), jnp.float32)

    feature = sketch_model_forward(x, params)   # image_embeds: (B, PROJ)
    jax.block_until_ready(feature)

    assert feature.shape == (BATCH, PROJ), feature.shape
    assert feature.dtype == jnp.float32
    assert bool(jnp.all(jnp.isfinite(feature)))
    print("KERNEL_OK")
</pallas_src>

<mosaic_0001>
module attributes {stable_mosaic.version = 11 : i64} {
  func.func @_clip_fused_kernel(%arg0: i32, %arg1: memref<10x192xf32, #tpu.memory_space<vmem>>, %arg2: memref<192x32xf32, #tpu.memory_space<vmem>>, %arg3: memref<10x32xf32, #tpu.memory_space<vmem>>, %arg4: memref<1x32xf32, #tpu.memory_space<vmem>>, %arg5: memref<1x32xf32, #tpu.memory_space<vmem>>, %arg6: memref<2x1x32xf32, #tpu.memory_space<vmem>>, %arg7: memref<2x1x32xf32, #tpu.memory_space<vmem>>, %arg8: memref<2x32x96xf32, #tpu.memory_space<vmem>>, %arg9: memref<2x1x96xf32, #tpu.memory_space<vmem>>, %arg10: memref<2x32x32xf32, #tpu.memory_space<vmem>>, %arg11: memref<2x1x32xf32, #tpu.memory_space<vmem>>, %arg12: memref<2x1x32xf32, #tpu.memory_space<vmem>>, %arg13: memref<2x1x32xf32, #tpu.memory_space<vmem>>, %arg14: memref<2x32x64xf32, #tpu.memory_space<vmem>>, %arg15: memref<2x1x64xf32, #tpu.memory_space<vmem>>, %arg16: memref<2x64x32xf32, #tpu.memory_space<vmem>>, %arg17: memref<2x1x32xf32, #tpu.memory_space<vmem>>, %arg18: memref<1x32xf32, #tpu.memory_space<vmem>>, %arg19: memref<1x32xf32, #tpu.memory_space<vmem>>, %arg20: memref<32x16xf32, #tpu.memory_space<vmem>>, %arg21: memref<2x16xf32, #tpu.memory_space<vmem>>, %arg22: memref<10x32xf32, #tpu.memory_space<vmem>>, %arg23: memref<2x32xf32, #tpu.memory_space<vmem>>) attributes {dimension_semantics = [#tpu.dimension_semantics<arbitrary>], iteration_bounds = array<i64: 1>, scalar_prefetch = 0 : i64, scratch_operands = 2 : i64, tpu.core_type = #tpu.core_type<tc>, window_params = [{pipeline_mode = #tpu.pipeline_mode<synchronous>, transform_indices = @transform_0, window_bounds = array<i64: 10, 192>}, {pipeline_mode = #tpu.pipeline_mode<synchronous>, transform_indices = @transform_1, window_bounds = array<i64: 192, 32>}, {pipeline_mode = #tpu.pipeline_mode<synchronous>, transform_indices = @transform_2, window_bounds = array<i64: 10, 32>}, {pipeline_mode = #tpu.pipeline_mode<synchronous>, transform_indices = @transform_3, window_bounds = array<i64: 1, 32>}, {pipeline_mode = #tpu.pipeline_mode<synchronous>, transform_indices = @transform_4, window_bounds = array<i64: 1, 32>}, {pipeline_mode = #tpu.pipeline_mode<synchronous>, transform_indices = @transform_5, window_bounds = array<i64: 2, 1, 32>}, {pipeline_mode = #tpu.pipeline_mode<synchronous>, transform_indices = @transform_6, window_bounds = array<i64: 2, 1, 32>}, {pipeline_mode = #tpu.pipeline_mode<synchronous>, transform_indices = @transform_7, window_bounds = array<i64: 2, 32, 96>}, {pipeline_mode = #tpu.pipeline_mode<synchronous>, transform_indices = @transform_8, window_bounds = array<i64: 2, 1, 96>}, {pipeline_mode = #tpu.pipeline_mode<synchronous>, transform_indices = @transform_9, window_bounds = array<i64: 2, 32, 32>}, {pipeline_mode = #tpu.pipeline_mode<synchronous>, transform_indices = @transform_10, window_bounds = array<i64: 2, 1, 32>}, {pipeline_mode = #tpu.pipeline_mode<synchronous>, transform_indices = @transform_11, window_bounds = array<i64: 2, 1, 32>}, {pipeline_mode = #tpu.pipeline_mode<synchronous>, transform_indices = @transform_12, window_bounds = array<i64: 2, 1, 32>}, {pipeline_mode = #tpu.pipeline_mode<synchronous>, transform_indices = @transform_13, window_bounds = array<i64: 2, 32, 64>}, {pipeline_mode = #tpu.pipeline_mode<synchronous>, transform_indices = @transform_14, window_bounds = array<i64: 2, 1, 64>}, {pipeline_mode = #tpu.pipeline_mode<synchronous>, transform_indices = @transform_15, window_bounds = array<i64: 2, 64, 32>}, {pipeline_mode = #tpu.pipeline_mode<synchronous>, transform_indices = @transform_16, window_bounds = array<i64: 2, 1, 32>}, {pipeline_mode = #tpu.pipeline_mode<synchronous>, transform_indices = @transform_17, window_bounds = array<i64: 1, 32>}, {pipeline_mode = #tpu.pipeline_mode<synchronous>, transform_indices = @transform_18, window_bounds = array<i64: 1, 32>}, {pipeline_mode = #tpu.pipeline_mode<synchronous>, transform_indices = @transform_19, window_bounds = array<i64: 32, 16>}, {pipeline_mode = #tpu.pipeline_mode<synchronous>, transform_indices = @transform_20, window_bounds = array<i64: 2, 16>}]} {
    %c0 = arith.constant 0 : index
    %c0_0 = arith.constant 0 : index
    %0 = vector.load %arg1[%c0, %c0_0] : memref<10x192xf32, #tpu.memory_space<vmem>>, vector<10x192xf32>
    %c0_1 = arith.constant 0 : index
    %c0_2 = arith.constant 0 : index
    %1 = vector.load %arg2[%c0_1, %c0_2] : memref<192x32xf32, #tpu.memory_space<vmem>>, vector<192x32xf32>
    %cst = arith.constant dense<0.000000e+00> : vector<10x32xf32>
    %2 = tpu.matmul %0, %1, %cst {dimension_numbers = #tpu.dot_dimension_numbers<[1], [0], [0], [1], [0, 0, 1, 1], [], []>} : vector<10x192xf32>, vector<192x32xf32>, vector<10x32xf32> -> vector<10x32xf32>
    %c0_3 = arith.constant 0 : index
    %c0_4 = arith.constant 0 : index
    %3 = vector.load %arg3[%c0_3, %c0_4] : memref<10x32xf32, #tpu.memory_space<vmem>>, vector<10x32xf32>
    %4 = arith.addf %2, %3 : vector<10x32xf32>
    %c0_5 = arith.constant 0 : index
    %c0_6 = arith.constant 0 : index
    %5 = vector.load %arg4[%c0_5, %c0_6] : memref<1x32xf32, #tpu.memory_space<vmem>>, vector<1x32xf32>
    %c0_7 = arith.constant 0 : index
    %c0_8 = arith.constant 0 : index
    %6 = vector.load %arg5[%c0_7, %c0_8] : memref<1x32xf32, #tpu.memory_space<vmem>>, vector<1x32xf32>
    %cst_9 = arith.constant dense<0.000000e+00> : vector<10xf32>
    %7 = vector.multi_reduction <add>, %4, %cst_9 [1] : vector<10x32xf32> to vector<10xf32>
    %8 = vector.shape_cast %7 : vector<10xf32> to vector<10x1xf32>
    %cst_10 = arith.constant 3.200000e+01 : f32
    %9 = vector.broadcast %cst_10 : f32 to vector<10x1xf32>
    %10 = arith.divf %8, %9 : vector<10x1xf32>
    %11 = vector.broadcast %10 : vector<10x1xf32> to vector<10x32xf32>
    %12 = arith.subf %4, %11 : vector<10x32xf32>
    %13 = arith.mulf %12, %12 : vector<10x32xf32>
    %cst_11 = arith.constant dense<0.000000e+00> : vector<10xf32>
    %14 = vector.multi_reduction <add>, %13, %cst_11 [1] : vector<10x32xf32> to vector<10xf32>
    %15 = vector.shape_cast %14 : vector<10xf32> to vector<10x1xf32>
    %cst_12 = arith.constant 3.200000e+01 : f32
    %16 = vector.broadcast %cst_12 : f32 to vector<10x1xf32>
    %17 = arith.divf %15, %16 : vector<10x1xf32>
    %18 = vector.broadcast %10 : vector<10x1xf32> to vector<10x32xf32>
    %19 = arith.subf %4, %18 : vector<10x32xf32>
    %cst_13 = arith.constant 9.99999974E-6 : f32
    %20 = vector.broadcast %cst_13 : f32 to vector<10x1xf32>
    %21 = arith.addf %17, %20 : vector<10x1xf32>
    %22 = math.rsqrt %21 : vector<10x1xf32>
    %23 = vector.broadcast %22 : vector<10x1xf32> to vector<10x32xf32>
    %24 = arith.mulf %19, %23 : vector<10x32xf32>
    %25 = vector.broadcast %5 : vector<1x32xf32> to vector<10x32xf32>
    %26 = arith.mulf %24, %25 : vector<10x32xf32>
    %27 = vector.broadcast %6 : vector<1x32xf32> to vector<10x32xf32>
    %28 = arith.addf %26, %27 : vector<10x32xf32>
    %c0_14 = arith.constant 0 : index
    %c0_15 = arith.constant 0 : index
    %c0_16 = arith.constant 0 : index
    %29 = vector.load %arg6[%c0_14, %c0_15, %c0_16] : memref<2x1x32xf32, #tpu.memory_space<vmem>>, vector<1x1x32xf32>
    %30 = vector.shape_cast %29 : vector<1x1x32xf32> to vector<1x32xf32>
    %c0_17 = arith.constant 0 : index
    %c0_18 = arith.constant 0 : index
    %c0_19 = arith.constant 0 : index
    %31 = vector.load %arg7[%c0_17, %c0_18, %c0_19] : memref<2x1x32xf32, #tpu.memory_space<vmem>>, vector<1x1x32xf32>
    %32 = vector.shape_cast %31 : vector<1x1x32xf32> to vector<1x32xf32>
    %cst_20 = arith.constant dense<0.000000e+00> : vector<10xf32>
    %33 = vector.multi_reduction <add>, %28, %cst_20 [1] : vector<10x32xf32> to vector<10xf32>
    %34 = vector.shape_cast %33 : vector<10xf32> to vector<10x1xf32>
    %cst_21 = arith.constant 3.200000e+01 : f32
    %35 = vector.broadcast %cst_21 : f32 to vector<10x1xf32>
    %36 = arith.divf %34, %35 : vector<10x1xf32>
    %37 = vector.broadcast %36 : vector<10x1xf32> to vector<10x32xf32>
    %38 = arith.subf %28, %37 : vector<10x32xf32>
    %39 = arith.mulf %38, %38 : vector<10x32xf32>
    %cst_22 = arith.constant dense<0.000000e+00> : vector<10xf32>
    %40 = vector.multi_reduction <add>, %39, %cst_22 [1] : vector<10x32xf32> to vector<10xf32>
    %41 = vector.shape_cast %40 : vector<10xf32> to vector<10x1xf32>
    %cst_23 = arith.constant 3.200000e+01 : f32
    %42 = vector.broadcast %cst_23 : f32 to vector<10x1xf32>
    %43 = arith.divf %41, %42 : vector<10x1xf32>
    %44 = vector.broadcast %36 : vector<10x1xf32> to vector<10x32xf32>
    %45 = arith.subf %28, %44 : vector<10x32xf32>
    %cst_24 = arith.constant 9.99999974E-6 : f32
    %46 = vector.broadcast %cst_24 : f32 to vector<10x1xf32>
    %47 = arith.addf %43, %46 : vector<10x1xf32>
    %48 = math.rsqrt %47 : vector<10x1xf32>
    %49 = vector.broadcast %48 : vector<10x1xf32> to vector<10x32xf32>
    %50 = arith.mulf %45, %49 : vector<10x32xf32>
    %51 = vector.broadcast %30 : vector<1x32xf32> to vector<10x32xf32>
    %52 = arith.mulf %50, %51 : vector<10x32xf32>
    %53 = vector.broadcast %32 : vector<1x32xf32> to vector<10x32xf32>
    %54 = arith.addf %52, %53 : vector<10x32xf32>
    %c0_25 = arith.constant 0 : index
    %c0_26 = arith.constant 0 : index
    %c0_27 = arith.constant 0 : index
    %55 = vector.load %arg8[%c0_25, %c0_26, %c0_27] : memref<2x32x96xf32, #tpu.memory_space<vmem>>, vector<1x32x96xf32>
    %56 = vector.shape_cast %55 : vector<1x32x96xf32> to vector<32x96xf32>
    %cst_28 = arith.constant dense<0.000000e+00> : vector<10x96xf32>
    %57 = tpu.matmul %54, %56, %cst_28 {dimension_numbers = #tpu.dot_dimension_numbers<[1], [0], [0], [1], [0, 0, 1, 1], [], []>} : vector<10x32xf32>, vector<32x96xf32>, vector<10x96xf32> -> vector<10x96xf32>
    %c0_29 = arith.constant 0 : index
    %c0_30 = arith.constant 0 : index
    %c0_31 = arith.constant 0 : index
    %58 = vector.load %arg9[%c0_29, %c0_30, %c0_31] : memref<2x1x96xf32, #tpu.memory_space<vmem>>, vector<1x1x96xf32>
    %59 = vector.shape_cast %58 : vector<1x1x96xf32> to vector<1x96xf32>
    %60 = vector.broadcast %59 : vector<1x96xf32> to vector<10x96xf32>
    %61 = arith.addf %57, %60 : vector<10x96xf32>
    %62 = vector.extract_strided_slice %61 {offsets = [0, 0], sizes = [5, 8], strides = [1, 1]} : vector<10x96xf32> to vector<5x8xf32>
    %cst_32 = arith.constant 0.353553385 : f32
    %63 = vector.broadcast %cst_32 : f32 to vector<5x8xf32>
    %64 = arith.mulf %62, %63 : vector<5x8xf32>
    %65 = vector.extract_strided_slice %61 {offsets = [0, 32], sizes = [5, 8], strides = [1, 1]} : vector<10x96xf32> to vector<5x8xf32>
    %66 = vector.extract_strided_slice %61 {offsets = [0, 64], sizes = [5, 8], strides = [1, 1]} : vector<10x96xf32> to vector<5x8xf32>
    %cst_33 = arith.constant dense<0.000000e+00> : vector<5x5xf32>
    %67 = tpu.matmul %64, %65, %cst_33 {dimension_numbers = #tpu.dot_dimension_numbers<[1], [1], [0], [0], [0, 0, 1, 0], [], []>} : vector<5x8xf32>, vector<5x8xf32>, vector<5x5xf32> -> vector<5x5xf32>
    %cst_34 = arith.constant dense<0xFF800000> : vector<5xf32>
    %68 = vector.multi_reduction <maximumf>, %67, %cst_34 [1] : vector<5x5xf32> to vector<5xf32>
    %69 = vector.shape_cast %68 : vector<5xf32> to vector<5x1xf32>
    %70 = vector.broadcast %69 : vector<5x1xf32> to vector<5x5xf32>
    %71 = arith.subf %67, %70 : vector<5x5xf32>
    %72 = math.exp %71 : vector<5x5xf32>
    %cst_35 = arith.constant dense<0.000000e+00> : vector<5xf32>
    %73 = vector.multi_reduction <add>, %72, %cst_35 [1] : vector<5x5xf32> to vector<5xf32>
    %74 = vector.shape_cast %73 : vector<5xf32> to vector<5x1xf32>
    %75 = tpu.reciprocal %74 {approx = true} : vector<5x1xf32> -> vector<5x1xf32>
    %76 = vector.broadcast %75 : vector<5x1xf32> to vector<5x5xf32>
    %77 = arith.mulf %72, %76 : vector<5x5xf32>
    %cst_36 = arith.constant dense<0.000000e+00> : vector<5x8xf32>
    %78 = tpu.matmul %77, %66, %cst_36 {dimension_numbers = #tpu.dot_dimension_numbers<[1], [0], [0], [1], [0, 0, 1, 1], [], []>} : vector<5x5xf32>, vector<5x8xf32>, vector<5x8xf32> -> vector<5x8xf32>
    %c0_37 = arith.constant 0 : index
    %c0_38 = arith.constant 0 : index
    %79 = vector.load %arg22[%c0_37, %c0_38] : memref<10x32xf32, #tpu.memory_space<vmem>>, vector<5x8xf32>
    tpu.vector_store %arg22[%c0_37, %c0_38], %78 {strides = array<i32>} : memref<10x32xf32, #tpu.memory_space<vmem>>, vector<5x8xf32>,
    %80 = vector.extract_strided_slice %61 {offsets = [0, 8], sizes = [5, 8], strides = [1, 1]} : vector<10x96xf32> to vector<5x8xf32>
    %cst_39 = arith.constant 0.353553385 : f32
    %81 = vector.broadcast %cst_39 : f32 to vector<5x8xf32>
    %82 = arith.mulf %80, %81 : vector<5x8xf32>
    %83 = vector.extract_strided_slice %61 {offsets = [0, 40], sizes = [5, 8], strides = [1, 1]} : vector<10x96xf32> to vector<5x8xf32>
    %84 = vector.extract_strided_slice %61 {offsets = [0, 72], sizes = [5, 8], strides = [1, 1]} : vector<10x96xf32> to vector<5x8xf32>
    %cst_40 = arith.constant dense<0.000000e+00> : vector<5x5xf32>
    %85 = tpu.matmul %82, %83, %cst_40 {dimension_numbers = #tpu.dot_dimension_numbers<[1], [1], [0], [0], [0, 0, 1, 0], [], []>} : vector<5x8xf32>, vector<5x8xf32>, vector<5x5xf32> -> vector<5x5xf32>
    %cst_41 = arith.constant dense<0xFF800000> : vector<5xf32>
    %86 = vector.multi_reduction <maximumf>, %85, %cst_41 [1] : vector<5x5xf32> to vector<5xf32>
    %87 = vector.shape_cast %86 : vector<5xf32> to vector<5x1xf32>
    %88 = vector.broadcast %87 : vector<5x1xf32> to vector<5x5xf32>
    %89 = arith.subf %85, %88 : vector<5x5xf32>
    %90 = math.exp %89 : vector<5x5xf32>
    %cst_42 = arith.constant dense<0.000000e+00> : vector<5xf32>
    %91 = vector.multi_reduction <add>, %90, %cst_42 [1] : vector<5x5xf32> to vector<5xf32>
    %92 = vector.shape_cast %91 : vector<5xf32> to vector<5x1xf32>
    %93 = tpu.reciprocal %92 {approx = true} : vector<5x1xf32> -> vector<5x1xf32>
    %94 = vector.broadcast %93 : vector<5x1xf32> to vector<5x5xf32>
    %95 = arith.mulf %90, %94 : vector<5x5xf32>
    %cst_43 = arith.constant dense<0.000000e+00> : vector<5x8xf32>
    %96 = tpu.matmul %95, %84, %cst_43 {dimension_numbers = #tpu.dot_dimension_numbers<[1], [0], [0], [1], [0, 0, 1, 1], [], []>} : vector<5x5xf32>, vector<5x8xf32>, vector<5x8xf32> -> vector<5x8xf32>
    %c0_44 = arith.constant 0 : index
    %c8 = arith.constant 8 : index
    %97 = vector.load %arg22[%c0_44, %c8] : memref<10x32xf32, #tpu.memory_space<vmem>>, vector<5x8xf32>
    tpu.vector_store %arg22[%c0_44, %c8], %96 {strides = array<i32>} : memref<10x32xf32, #tpu.memory_space<vmem>>, vector<5x8xf32>,
    %98 = vector.extract_strided_slice %61 {offsets = [0, 16], sizes = [5, 8], strides = [1, 1]} : vector<10x96xf32> to vector<5x8xf32>
    %cst_45 = arith.constant 0.353553385 : f32
    %99 = vector.broadcast %cst_45 : f32 to vector<5x8xf32>
    %100 = arith.mulf %98, %99 : vector<5x8xf32>
    %101 = vector.extract_strided_slice %61 {offsets = [0, 48], sizes = [5, 8], strides = [1, 1]} : vector<10x96xf32> to vector<5x8xf32>
    %102 = vector.extract_strided_slice %61 {offsets = [0, 80], sizes = [5, 8], strides = [1, 1]} : vector<10x96xf32> to vector<5x8xf32>
    %cst_46 = arith.constant dense<0.000000e+00> : vector<5x5xf32>
    %103 = tpu.matmul %100, %101, %cst_46 {dimension_numbers = #tpu.dot_dimension_numbers<[1], [1], [0], [0], [0, 0, 1, 0], [], []>} : vector<5x8xf32>, vector<5x8xf32>, vector<5x5xf32> -> vector<5x5xf32>
    %cst_47 = arith.constant dense<0xFF800000> : vector<5xf32>
    %104 = vector.multi_reduction <maximumf>, %103, %cst_47 [1] : vector<5x5xf32> to vector<5xf32>
    %105 = vector.shape_cast %104 : vector<5xf32> to vector<5x1xf32>
    %106 = vector.broadcast %105 : vector<5x1xf32> to vector<5x5xf32>
    %107 = arith.subf %103, %106 : vector<5x5xf32>
    %108 = math.exp %107 : vector<5x5xf32>
    %cst_48 = arith.constant dense<0.000000e+00> : vector<5xf32>
    %109 = vector.multi_reduction <add>, %108, %cst_48 [1] : vector<5x5xf32> to vector<5xf32>
    %110 = vector.shape_cast %109 : vector<5xf32> to vector<5x1xf32>
    %111 = tpu.reciprocal %110 {approx = true} : vector<5x1xf32> -> vector<5x1xf32>
    %112 = vector.broadcast %111 : vector<5x1xf32> to vector<5x5xf32>
    %113 = arith.mulf %108, %112 : vector<5x5xf32>
    %cst_49 = arith.constant dense<0.000000e+00> : vector<5x8xf32>
    %114 = tpu.matmul %113, %102, %cst_49 {dimension_numbers = #tpu.dot_dimension_numbers<[1], [0], [0], [1], [0, 0, 1, 1], [], []>} : vector<5x5xf32>, vector<5x8xf32>, vector<5x8xf32> -> vector<5x8xf32>
    %c0_50 = arith.constant 0 : index
    %c16 = arith.constant 16 : index
    %115 = vector.load %arg22[%c0_50, %c16] : memref<10x32xf32, #tpu.memory_space<vmem>>, vector<5x8xf32>
    tpu.vector_store %arg22[%c0_50, %c16], %114 {strides = array<i32>} : memref<10x32xf32, #tpu.memory_space<vmem>>, vector<5x8xf32>,
    %116 = vector.extract_strided_slice %61 {offsets = [0, 24], sizes = [5, 8], strides = [1, 1]} : vector<10x96xf32> to vector<5x8xf32>
    %cst_51 = arith.constant 0.353553385 : f32
    %117 = vector.broadcast %cst_51 : f32 to vector<5x8xf32>
    %118 = arith.mulf %116, %117 : vector<5x8xf32>
    %119 = vector.extract_strided_slice %61 {offsets = [0, 56], sizes = [5, 8], strides = [1, 1]} : vector<10x96xf32> to vector<5x8xf32>
    %120 = vector.extract_strided_slice %61 {offsets = [0, 88], sizes = [5, 8], strides = [1, 1]} : vector<10x96xf32> to vector<5x8xf32>
    %cst_52 = arith.constant dense<0.000000e+00> : vector<5x5xf32>
    %121 = tpu.matmul %118, %119, %cst_52 {dimension_numbers = #tpu.dot_dimension_numbers<[1], [1], [0], [0], [0, 0, 1, 0], [], []>} : vector<5x8xf32>, vector<5x8xf32>, vector<5x5xf32> -> vector<5x5xf32>
    %cst_53 = arith.constant dense<0xFF800000> : vector<5xf32>
    %122 = vector.multi_reduction <maximumf>, %121, %cst_53 [1] : vector<5x5xf32> to vector<5xf32>
    %123 = vector.shape_cast %122 : vector<5xf32> to vector<5x1xf32>
    %124 = vector.broadcast %123 : vector<5x1xf32> to vector<5x5xf32>
    %125 = arith.subf %121, %124 : vector<5x5xf32>
    %126 = math.exp %125 : vector<5x5xf32>
    %cst_54 = arith.constant dense<0.000000e+00> : vector<5xf32>
    %127 = vector.multi_reduction <add>, %126, %cst_54 [1] : vector<5x5xf32> to vector<5xf32>
    %128 = vector.shape_cast %127 : vector<5xf32> to vector<5x1xf32>
    %129 = tpu.reciprocal %128 {approx = true} : vector<5x1xf32> -> vector<5x1xf32>
    %130 = vector.broadcast %129 : vector<5x1xf32> to vector<5x5xf32>
    %131 = arith.mulf %126, %130 : vector<5x5xf32>
    %cst_55 = arith.constant dense<0.000000e+00> : vector<5x8xf32>
    %132 = tpu.matmul %131, %120, %cst_55 {dimension_numbers = #tpu.dot_dimension_numbers<[1], [0], [0], [1], [0, 0, 1, 1], [], []>} : vector<5x5xf32>, vector<5x8xf32>, vector<5x8xf32> -> vector<5x8xf32>
    %c0_56 = arith.constant 0 : index
    %c24 = arith.constant 24 : index
    %133 = vector.load %arg22[%c0_56, %c24] : memref<10x32xf32, #tpu.memory_space<vmem>>, vector<5x8xf32>
    tpu.vector_store %arg22[%c0_56, %c24], %132 {strides = array<i32>} : memref<10x32xf32, #tpu.memory_space<vmem>>, vector<5x8xf32>,
    %134 = vector.extract_strided_slice %61 {offsets = [5, 0], sizes = [5, 8], strides = [1, 1]} : vector<10x96xf32> to vector<5x8xf32>
    %cst_57 = arith.constant 0.353553385 : f32
    %135 = vector.broadcast %cst_57 : f32 to vector<5x8xf32>
    %136 = arith.mulf %134, %135 : vector<5x8xf32>
    %137 = vector.extract_strided_slice %61 {offsets = [5, 32], sizes = [5, 8], strides = [1, 1]} : vector<10x96xf32> to vector<5x8xf32>
    %138 = vector.extract_strided_slice %61 {offsets = [5, 64], sizes = [5, 8], strides = [1, 1]} : vector<10x96xf32> to vector<5x8xf32>
    %cst_58 = arith.constant dense<0.000000e+00> : vector<5x5xf32>
    %139 = tpu.matmul %136, %137, %cst_58 {dimension_numbers = #tpu.dot_dimension_numbers<[1], [1], [0], [0], [0, 0, 1, 0], [], []>} : vector<5x8xf32>, vector<5x8xf32>, vector<5x5xf32> -> vector<5x5xf32>
    %cst_59 = arith.constant dense<0xFF800000> : vector<5xf32>
    %140 = vector.multi_reduction <maximumf>, %139, %cst_59 [1] : vector<5x5xf32> to vector<5xf32>
    %141 = vector.shape_cast %140 : vector<5xf32> to vector<5x1xf32>
    %142 = vector.broadcast %141 : vector<5x1xf32> to vector<5x5xf32>
    %143 = arith.subf %139, %142 : vector<5x5xf32>
    %144 = math.exp %143 : vector<5x5xf32>
    %cst_60 = arith.constant dense<0.000000e+00> : vector<5xf32>
    %145 = vector.multi_reduction <add>, %144, %cst_60 [1] : vector<5x5xf32> to vector<5xf32>
    %146 = vector.shape_cast %145 : vector<5xf32> to vector<5x1xf32>
    %147 = tpu.reciprocal %146 {approx = true} : vector<5x1xf32> -> vector<5x1xf32>
    %148 = vector.broadcast %147 : vector<5x1xf32> to vector<5x5xf32>
    %149 = arith.mulf %144, %148 : vector<5x5xf32>
    %cst_61 = arith.constant dense<0.000000e+00> : vector<5x8xf32>
    %150 = tpu.matmul %149, %138, %cst_61 {dimension_numbers = #tpu.dot_dimension_numbers<[1], [0], [0], [1], [0, 0, 1, 1], [], []>} : vector<5x5xf32>, vector<5x8xf32>, vector<5x8xf32> -> vector<5x8xf32>
    %c5 = arith.constant 5 : index
    %c0_62 = arith.constant 0 : index
    %151 = vector.load %arg22[%c5, %c0_62] : memref<10x32xf32, #tpu.memory_space<vmem>>, vector<5x8xf32>
    tpu.vector_store %arg22[%c5, %c0_62], %150 {strides = array<i32>} : memref<10x32xf32, #tpu.memory_space<vmem>>, vector<5x8xf32>,
    %152 = vector.extract_strided_slice %61 {offsets = [5, 8], sizes = [5, 8], strides = [1, 1]} : vector<10x96xf32> to vector<5x8xf32>
    %cst_63 = arith.constant 0.353553385 : f32
    %153 = vector.broadcast %cst_63 : f32 to vector<5x8xf32>
    %154 = arith.mulf %152, %153 : vector<5x8xf32>
    %155 = vector.extract_strided_slice %61 {offsets = [5, 40], sizes = [5, 8], strides = [1, 1]} : vector<10x96xf32> to vector<5x8xf32>
    %156 = vector.extract_strided_slice %61 {offsets = [5, 72], sizes = [5, 8], strides = [1, 1]} : vector<10x96xf32> to vector<5x8xf32>
    %cst_64 = arith.constant dense<0.000000e+00> : vector<5x5xf32>
    %157 = tpu.matmul %154, %155, %cst_64 {dimension_numbers = #tpu.dot_dimension_numbers<[1], [1], [0], [0], [0, 0, 1, 0], [], []>} : vector<5x8xf32>, vector<5x8xf32>, vector<5x5xf32> -> vector<5x5xf32>
    %cst_65 = arith.constant dense<0xFF800000> : vector<5xf32>
    %158 = vector.multi_reduction <maximumf>, %157, %cst_65 [1] : vector<5x5xf32> to vector<5xf32>
    %159 = vector.shape_cast %158 : vector<5xf32> to vector<5x1xf32>
    %160 = vector.broadcast %159 : vector<5x1xf32> to vector<5x5xf32>
    %161 = arith.subf %157, %160 : vector<5x5xf32>
    %162 = math.exp %161 : vector<5x5xf32>
    %cst_66 = arith.constant dense<0.000000e+00> : vector<5xf32>
    %163 = vector.multi_reduction <add>, %162, %cst_66 [1] : vector<5x5xf32> to vector<5xf32>
    %164 = vector.shape_cast %163 : vector<5xf32> to vector<5x1xf32>
    %165 = tpu.reciprocal %164 {approx = true} : vector<5x1xf32> -> vector<5x1xf32>
    %166 = vector.broadcast %165 : vector<5x1xf32> to vector<5x5xf32>
    %167 = arith.mulf %162, %166 : vector<5x5xf32>
    %cst_67 = arith.constant dense<0.000000e+00> : vector<5x8xf32>
    %168 = tpu.matmul %167, %156, %cst_67 {dimension_numbers = #tpu.dot_dimension_numbers<[1], [0], [0], [1], [0, 0, 1, 1], [], []>} : vector<5x5xf32>, vector<5x8xf32>, vector<5x8xf32> -> vector<5x8xf32>
    %c5_68 = arith.constant 5 : index
    %c8_69 = arith.constant 8 : index
    %169 = vector.load %arg22[%c5_68, %c8_69] : memref<10x32xf32, #tpu.memory_space<vmem>>, vector<5x8xf32>
    tpu.vector_store %arg22[%c5_68, %c8_69], %168 {strides = array<i32>} : memref<10x32xf32, #tpu.memory_space<vmem>>, vector<5x8xf32>,
    %170 = vector.extract_strided_slice %61 {offsets = [5, 16], sizes = [5, 8], strides = [1, 1]} : vector<10x96xf32> to vector<5x8xf32>
    %cst_70 = arith.constant 0.353553385 : f32
    %171 = vector.broadcast %cst_70 : f32 to vector<5x8xf32>
    %172 = arith.mulf %170, %171 : vector<5x8xf32>
    %173 = vector.extract_strided_slice %61 {offsets = [5, 48], sizes = [5, 8], strides = [1, 1]} : vector<10x96xf32> to vector<5x8xf32>
    %174 = vector.extract_strided_slice %61 {offsets = [5, 80], sizes = [5, 8], strides = [1, 1]} : vector<10x96xf32> to vector<5x8xf32>
    %cst_71 = arith.constant dense<0.000000e+00> : vector<5x5xf32>
    %175 = tpu.matmul %172, %173, %cst_71 {dimension_numbers = #tpu.dot_dimension_numbers<[1], [1], [0], [0], [0, 0, 1, 0], [], []>} : vector<5x8xf32>, vector<5x8xf32>, vector<5x5xf32> -> vector<5x5xf32>
    %cst_72 = arith.constant dense<0xFF800000> : vector<5xf32>
    %176 = vector.multi_reduction <maximumf>, %175, %cst_72 [1] : vector<5x5xf32> to vector<5xf32>
    %177 = vector.shape_cast %176 : vector<5xf32> to vector<5x1xf32>
    %178 = vector.broadcast %177 : vector<5x1xf32> to vector<5x5xf32>
    %179 = arith.subf %175, %178 : vector<5x5xf32>
    %180 = math.exp %179 : vector<5x5xf32>
    %cst_73 = arith.constant dense<0.000000e+00> : vector<5xf32>
    %181 = vector.multi_reduction <add>, %180, %cst_73 [1] : vector<5x5xf32> to vector<5xf32>
    %182 = vector.shape_cast %181 : vector<5xf32> to vector<5x1xf32>
    %183 = tpu.reciprocal %182 {approx = true} : vector<5x1xf32> -> vector<5x1xf32>
    %184 = vector.broadcast %183 : vector<5x1xf32> to vector<5x5xf32>
    %185 = arith.mulf %180, %184 : vector<5x5xf32>
    %cst_74 = arith.constant dense<0.000000e+00> : vector<5x8xf32>
    %186 = tpu.matmul %185, %174, %cst_74 {dimension_numbers = #tpu.dot_dimension_numbers<[1], [0], [0], [1], [0, 0, 1, 1], [], []>} : vector<5x5xf32>, vector<5x8xf32>, vector<5x8xf32> -> vector<5x8xf32>
    %c5_75 = arith.constant 5 : index
    %c16_76 = arith.constant 16 : index
    %187 = vector.load %arg22[%c5_75, %c16_76] : memref<10x32xf32, #tpu.memory_space<vmem>>, vector<5x8xf32>
    tpu.vector_store %arg22[%c5_75, %c16_76], %186 {strides = array<i32>} : memref<10x32xf32, #tpu.memory_space<vmem>>, vector<5x8xf32>,
    %188 = vector.extract_strided_slice %61 {offsets = [5, 24], sizes = [5, 8], strides = [1, 1]} : vector<10x96xf32> to vector<5x8xf32>
    %cst_77 = arith.constant 0.353553385 : f32
    %189 = vector.broadcast %cst_77 : f32 to vector<5x8xf32>
    %190 = arith.mulf %188, %189 : vector<5x8xf32>
    %191 = vector.extract_strided_slice %61 {offsets = [5, 56], sizes = [5, 8], strides = [1, 1]} : vector<10x96xf32> to vector<5x8xf32>
    %192 = vector.extract_strided_slice %61 {offsets = [5, 88], sizes = [5, 8], strides = [1, 1]} : vector<10x96xf32> to vector<5x8xf32>
    %cst_78 = arith.constant dense<0.000000e+00> : vector<5x5xf32>
    %193 = tpu.matmul %190, %191, %cst_78 {dimension_numbers = #tpu.dot_dimension_numbers<[1], [1], [0], [0], [0, 0, 1, 0], [], []>} : vector<5x8xf32>, vector<5x8xf32>, vector<5x5xf32> -> vector<5x5xf32>
    %cst_79 = arith.constant dense<0xFF800000> : vector<5xf32>
    %194 = vector.multi_reduction <maximumf>, %193, %cst_79 [1] : vector<5x5xf32> to vector<5xf32>
    %195 = vector.shape_cast %194 : vector<5xf32> to vector<5x1xf32>
    %196 = vector.broadcast %195 : vector<5x1xf32> to vector<5x5xf32>
    %197 = arith.subf %193, %196 : vector<5x5xf32>
    %198 = math.exp %197 : vector<5x5xf32>
    %cst_80 = arith.constant dense<0.000000e+00> : vector<5xf32>
    %199 = vector.multi_reduction <add>, %198, %cst_80 [1] : vector<5x5xf32> to vector<5xf32>
    %200 = vector.shape_cast %199 : vector<5xf32> to vector<5x1xf32>
    %201 = tpu.reciprocal %200 {approx = true} : vector<5x1xf32> -> vector<5x1xf32>
    %202 = vector.broadcast %201 : vector<5x1xf32> to vector<5x5xf32>
    %203 = arith.mulf %198, %202 : vector<5x5xf32>
    %cst_81 = arith.constant dense<0.000000e+00> : vector<5x8xf32>
    %204 = tpu.matmul %203, %192, %cst_81 {dimension_numbers = #tpu.dot_dimension_numbers<[1], [0], [0], [1], [0, 0, 1, 1], [], []>} : vector<5x5xf32>, vector<5x8xf32>, vector<5x8xf32> -> vector<5x8xf32>
    %c5_82 = arith.constant 5 : index
    %c24_83 = arith.constant 24 : index
    %205 = vector.load %arg22[%c5_82, %c24_83] : memref<10x32xf32, #tpu.memory_space<vmem>>, vector<5x8xf32>
    tpu.vector_store %arg22[%c5_82, %c24_83], %204 {strides = array<i32>} : memref<10x32xf32, #tpu.memory_space<vmem>>, vector<5x8xf32>,
    %c0_84 = arith.constant 0 : index
    %c0_85 = arith.constant 0 : index
    %206 = vector.load %arg22[%c0_84, %c0_85] : memref<10x32xf32, #tpu.memory_space<vmem>>, vector<10x32xf32>
    %c0_86 = arith.constant 0 : index
    %c0_87 = arith.constant 0 : index
    %c0_88 = arith.constant 0 : index
    %207 = vector.load %arg10[%c0_86, %c0_87, %c0_88] : memref<2x32x32xf32, #tpu.memory_space<vmem>>, vector<1x32x32xf32>
    %208 = vector.shape_cast %207 : vector<1x32x32xf32> to vector<32x32xf32>
    %cst_89 = arith.constant dense<0.000000e+00> : vector<10x32xf32>
    %209 = tpu.matmul %206, %208, %cst_89 {dimension_numbers = #tpu.dot_dimension_numbers<[1], [0], [0], [1], [0, 0, 1, 1], [], []>} : vector<10x32xf32>, vector<32x32xf32>, vector<10x32xf32> -> vector<10x32xf32>
    %c0_90 = arith.constant 0 : index
    %c0_91 = arith.constant 0 : index
    %c0_92 = arith.constant 0 : index
    %210 = vector.load %arg11[%c0_90, %c0_91, %c0_92] : memref<2x1x32xf32, #tpu.memory_space<vmem>>, vector<1x1x32xf32>
    %211 = vector.shape_cast %210 : vector<1x1x32xf32> to vector<1x32xf32>
    %212 = vector.broadcast %211 : vector<1x32xf32> to vector<10x32xf32>
    %213 = arith.addf %209, %212 : vector<10x32xf32>
    %214 = arith.addf %213, %28 : vector<10x32xf32>
    %c0_93 = arith.constant 0 : index
    %c0_94 = arith.constant 0 : index
    %c0_95 = arith.constant 0 : index
    %215 = vector.load %arg12[%c0_93, %c0_94, %c0_95] : memref<2x1x32xf32, #tpu.memory_space<vmem>>, vector<1x1x32xf32>
    %216 = vector.shape_cast %215 : vector<1x1x32xf32> to vector<1x32xf32>
    %c0_96 = arith.constant 0 : index
    %c0_97 = arith.constant 0 : index
    %c0_98 = arith.constant 0 : index
    %217 = vector.load %arg13[%c0_96, %c0_97, %c0_98] : memref<2x1x32xf32, #tpu.memory_space<vmem>>, vector<1x1x32xf32>
    %218 = vector.shape_cast %217 : vector<1x1x32xf32> to vector<1x32xf32>
    %cst_99 = arith.constant dense<0.000000e+00> : vector<10xf32>
    %219 = vector.multi_reduction <add>, %214, %cst_99 [1] : vector<10x32xf32> to vector<10xf32>
    %220 = vector.shape_cast %219 : vector<10xf32> to vector<10x1xf32>
    %cst_100 = arith.constant 3.200000e+01 : f32
    %221 = vector.broadcast %cst_100 : f32 to vector<10x1xf32>
    %222 = arith.divf %220, %221 : vector<10x1xf32>
    %223 = vector.broadcast %222 : vector<10x1xf32> to vector<10x32xf32>
    %224 = arith.subf %214, %223 : vector<10x32xf32>
    %225 = arith.mulf %224, %224 : vector<10x32xf32>
    %cst_101 = arith.constant dense<0.000000e+00> : vector<10xf32>
    %226 = vector.multi_reduction <add>, %225, %cst_101 [1] : vector<10x32xf32> to vector<10xf32>
    %227 = vector.shape_cast %226 : vector<10xf32> to vector<10x1xf32>
    %cst_102 = arith.constant 3.200000e+01 : f32
    %228 = vector.broadcast %cst_102 : f32 to vector<10x1xf32>
    %229 = arith.divf %227, %228 : vector<10x1xf32>
    %230 = vector.broadcast %222 : vector<10x1xf32> to vector<10x32xf32>
    %231 = arith.subf %214, %230 : vector<10x32xf32>
    %cst_103 = arith.constant 9.99999974E-6 : f32
    %232 = vector.broadcast %cst_103 : f32 to vector<10x1xf32>
    %233 = arith.addf %229, %232 : vector<10x1xf32>
    %234 = math.rsqrt %233 : vector<10x1xf32>
    %235 = vector.broadcast %234 : vector<10x1xf32> to vector<10x32xf32>
    %236 = arith.mulf %231, %235 : vector<10x32xf32>
    %237 = vector.broadcast %216 : vector<1x32xf32> to vector<10x32xf32>
    %238 = arith.mulf %236, %237 : vector<10x32xf32>
    %239 = vector.broadcast %218 : vector<1x32xf32> to vector<10x32xf32>
    %240 = arith.addf %238, %239 : vector<10x32xf32>
    %c0_104 = arith.constant 0 : index
    %c0_105 = arith.constant 0 : index
    %c0_106 = arith.constant 0 : index
    %241 = vector.load %arg14[%c0_104, %c0_105, %c0_106] : memref<2x32x64xf32, #tpu.memory_space<vmem>>, vector<1x32x64xf32>
    %242 = vector.shape_cast %241 : vector<1x32x64xf32> to vector<32x64xf32>
    %cst_107 = arith.constant dense<0.000000e+00> : vector<10x64xf32>
    %243 = tpu.matmul %240, %242, %cst_107 {dimension_numbers = #tpu.dot_dimension_numbers<[1], [0], [0], [1], [0, 0, 1, 1], [], []>} : vector<10x32xf32>, vector<32x64xf32>, vector<10x64xf32> -> vector<10x64xf32>
    %c0_108 = arith.constant 0 : index
    %c0_109 = arith.constant 0 : index
    %c0_110 = arith.constant 0 : index
    %244 = vector.load %arg15[%c0_108, %c0_109, %c0_110] : memref<2x1x64xf32, #tpu.memory_space<vmem>>, vector<1x1x64xf32>
    %245 = vector.shape_cast %244 : vector<1x1x64xf32> to vector<1x64xf32>
    %246 = vector.broadcast %245 : vector<1x64xf32> to vector<10x64xf32>
    %247 = arith.addf %243, %246 : vector<10x64xf32>
    %cst_111 = arith.constant 1.702000e+00 : f32
    %248 = vector.broadcast %cst_111 : f32 to vector<10x64xf32>
    %249 = arith.mulf %248, %247 : vector<10x64xf32>
    %250 = arith.negf %249 : vector<10x64xf32>
    %251 = math.exp %250 : vector<10x64xf32>
    %cst_112 = arith.constant 1.000000e+00 : f32
    %252 = vector.broadcast %cst_112 : f32 to vector<10x64xf32>
    %253 = arith.addf %252, %251 : vector<10x64xf32>
    %254 = arith.divf %252, %253 : vector<10x64xf32>
    %255 = arith.mulf %247, %254 : vector<10x64xf32>
    %c0_113 = arith.constant 0 : index
    %c0_114 = arith.constant 0 : index
    %c0_115 = arith.constant 0 : index
    %256 = vector.load %arg16[%c0_113, %c0_114, %c0_115] : memref<2x64x32xf32, #tpu.memory_space<vmem>>, vector<1x64x32xf32>
    %257 = vector.shape_cast %256 : vector<1x64x32xf32> to vector<64x32xf32>
    %cst_116 = arith.constant dense<0.000000e+00> : vector<10x32xf32>
    %258 = tpu.matmul %255, %257, %cst_116 {dimension_numbers = #tpu.dot_dimension_numbers<[1], [0], [0], [1], [0, 0, 1, 1], [], []>} : vector<10x64xf32>, vector<64x32xf32>, vector<10x32xf32> -> vector<10x32xf32>
    %c0_117 = arith.constant 0 : index
    %c0_118 = arith.constant 0 : index
    %c0_119 = arith.constant 0 : index
    %259 = vector.load %arg17[%c0_117, %c0_118, %c0_119] : memref<2x1x32xf32, #tpu.memory_space<vmem>>, vector<1x1x32xf32>
    %260 = vector.shape_cast %259 : vector<1x1x32xf32> to vector<1x32xf32>
    %261 = vector.broadcast %260 : vector<1x32xf32> to vector<10x32xf32>
    %262 = arith.addf %258, %261 : vector<10x32xf32>
    %263 = arith.addf %262, %214 : vector<10x32xf32>
    %c1 = arith.constant 1 : index
    %c0_120 = arith.constant 0 : index
    %c0_121 = arith.constant 0 : index
    %264 = vector.load %arg6[%c1, %c0_120, %c0_121] : memref<2x1x32xf32, #tpu.memory_space<vmem>>, vector<1x1x32xf32>
    %265 = vector.shape_cast %264 : vector<1x1x32xf32> to vector<1x32xf32>
    %c1_122 = arith.constant 1 : index
    %c0_123 = arith.constant 0 : index
    %c0_124 = arith.constant 0 : index
    %266 = vector.load %arg7[%c1_122, %c0_123, %c0_124] : memref<2x1x32xf32, #tpu.memory_space<vmem>>, vector<1x1x32xf32>
    %267 = vector.shape_cast %266 : vector<1x1x32xf32> to vector<1x32xf32>
    %cst_125 = arith.constant dense<0.000000e+00> : vector<10xf32>
    %268 = vector.multi_reduction <add>, %263, %cst_125 [1] : vector<10x32xf32> to vector<10xf32>
    %269 = vector.shape_cast %268 : vector<10xf32> to vector<10x1xf32>
    %cst_126 = arith.constant 3.200000e+01 : f32
    %270 = vector.broadcast %cst_126 : f32 to vector<10x1xf32>
    %271 = arith.divf %269, %270 : vector<10x1xf32>
    %272 = vector.broadcast %271 : vector<10x1xf32> to vector<10x32xf32>
    %273 = arith.subf %263, %272 : vector<10x32xf32>
    %274 = arith.mulf %273, %273 : vector<10x32xf32>
    %cst_127 = arith.constant dense<0.000000e+00> : vector<10xf32>
    %275 = vector.multi_reduction <add>, %274, %cst_127 [1] : vector<10x32xf32> to vector<10xf32>
    %276 = vector.shape_cast %275 : vector<10xf32> to vector<10x1xf32>
    %cst_128 = arith.constant 3.200000e+01 : f32
    %277 = vector.broadcast %cst_128 : f32 to vector<10x1xf32>
    %278 = arith.divf %276, %277 : vector<10x1xf32>
    %279 = vector.broadcast %271 : vector<10x1xf32> to vector<10x32xf32>
    %280 = arith.subf %263, %279 : vector<10x32xf32>
    %cst_129 = arith.constant 9.99999974E-6 : f32
    %281 = vector.broadcast %cst_129 : f32 to vector<10x1xf32>
    %282 = arith.addf %278, %281 : vector<10x1xf32>
    %283 = math.rsqrt %282 : vector<10x1xf32>
    %284 = vector.broadcast %283 : vector<10x1xf32> to vector<10x32xf32>
    %285 = arith.mulf %280, %284 : vector<10x32xf32>
    %286 = vector.broadcast %265 : vector<1x32xf32> to vector<10x32xf32>
    %287 = arith.mulf %285, %286 : vector<10x32xf32>
    %288 = vector.broadcast %267 : vector<1x32xf32> to vector<10x32xf32>
    %289 = arith.addf %287, %288 : vector<10x32xf32>
    %c1_130 = arith.constant 1 : index
    %c0_131 = arith.constant 0 : index
    %c0_132 = arith.constant 0 : index
    %290 = vector.load %arg8[%c1_130, %c0_131, %c0_132] : memref<2x32x96xf32, #tpu.memory_space<vmem>>, vector<1x32x96xf32>
    %291 = vector.shape_cast %290 : vector<1x32x96xf32> to vector<32x96xf32>
    %cst_133 = arith.constant dense<0.000000e+00> : vector<10x96xf32>
    %292 = tpu.matmul %289, %291, %cst_133 {dimension_numbers = #tpu.dot_dimension_numbers<[1], [0], [0], [1], [0, 0, 1, 1], [], []>} : vector<10x32xf32>, vector<32x96xf32>, vector<10x96xf32> -> vector<10x96xf32>
    %c1_134 = arith.constant 1 : index
    %c0_135 = arith.constant 0 : index
    %c0_136 = arith.constant 0 : index
    %293 = vector.load %arg9[%c1_134, %c0_135, %c0_136] : memref<2x1x96xf32, #tpu.memory_space<vmem>>, vector<1x1x96xf32>
    %294 = vector.shape_cast %293 : vector<1x1x96xf32> to vector<1x96xf32>
    %295 = vector.broadcast %294 : vector<1x96xf32> to vector<10x96xf32>
    %296 = arith.addf %292, %295 : vector<10x96xf32>
    %297 = vector.extract_strided_slice %296 {offsets = [0, 0], sizes = [5, 8], strides = [1, 1]} : vector<10x96xf32> to vector<5x8xf32>
    %cst_137 = arith.constant 0.353553385 : f32
    %298 = vector.broadcast %cst_137 : f32 to vector<5x8xf32>
    %299 = arith.mulf %297, %298 : vector<5x8xf32>
    %300 = vector.extract_strided_slice %296 {offsets = [0, 32], sizes = [5, 8], strides = [1, 1]} : vector<10x96xf32> to vector<5x8xf32>
    %301 = vector.extract_strided_slice %296 {offsets = [0, 64], sizes = [5, 8], strides = [1, 1]} : vector<10x96xf32> to vector<5x8xf32>
    %cst_138 = arith.constant dense<0.000000e+00> : vector<5x5xf32>
    %302 = tpu.matmul %299, %300, %cst_138 {dimension_numbers = #tpu.dot_dimension_numbers<[1], [1], [0], [0], [0, 0, 1, 0], [], []>} : vector<5x8xf32>, vector<5x8xf32>, vector<5x5xf32> -> vector<5x5xf32>
    %cst_139 = arith.constant dense<0xFF800000> : vector<5xf32>
    %303 = vector.multi_reduction <maximumf>, %302, %cst_139 [1] : vector<5x5xf32> to vector<5xf32>
    %304 = vector.shape_cast %303 : vector<5xf32> to vector<5x1xf32>
    %305 = vector.broadcast %304 : vector<5x1xf32> to vector<5x5xf32>
    %306 = arith.subf %302, %305 : vector<5x5xf32>
    %307 = math.exp %306 : vector<5x5xf32>
    %cst_140 = arith.constant dense<0.000000e+00> : vector<5xf32>
    %308 = vector.multi_reduction <add>, %307, %cst_140 [1] : vector<5x5xf32> to vector<5xf32>
    %309 = vector.shape_cast %308 : vector<5xf32> to vector<5x1xf32>
    %310 = tpu.reciprocal %309 {approx = true} : vector<5x1xf32> -> vector<5x1xf32>
    %311 = vector.broadcast %310 : vector<5x1xf32> to vector<5x5xf32>
    %312 = arith.mulf %307, %311 : vector<5x5xf32>
    %cst_141 = arith.constant dense<0.000000e+00> : vector<5x8xf32>
    %313 = tpu.matmul %312, %301, %cst_141 {dimension_numbers = #tpu.dot_dimension_numbers<[1], [0], [0], [1], [0, 0, 1, 1], [], []>} : vector<5x5xf32>, vector<5x8xf32>, vector<5x8xf32> -> vector<5x8xf32>
    %c0_142 = arith.constant 0 : index
    %c0_143 = arith.constant 0 : index
    %314 = vector.load %arg22[%c0_142, %c0_143] : memref<10x32xf32, #tpu.memory_space<vmem>>, vector<5x8xf32>
    tpu.vector_store %arg22[%c0_142, %c0_143], %313 {strides = array<i32>} : memref<10x32xf32, #tpu.memory_space<vmem>>, vector<5x8xf32>,
    %315 = vector.extract_strided_slice %296 {offsets = [0, 8], sizes = [5, 8], strides = [1, 1]} : vector<10x96xf32> to vector<5x8xf32>
    %cst_144 = arith.constant 0.353553385 : f32
    %316 = vector.broadcast %cst_144 : f32 to vector<5x8xf32>
    %317 = arith.mulf %315, %316 : vector<5x8xf32>
    %318 = vector.extract_strided_slice %296 {offsets = [0, 40], sizes = [5, 8], strides = [1, 1]} : vector<10x96xf32> to vector<5x8xf32>
    %319 = vector.extract_strided_slice %296 {offsets = [0, 72], sizes = [5, 8], strides = [1, 1]} : vector<10x96xf32> to vector<5x8xf32>
    %cst_145 = arith.constant dense<0.000000e+00> : vector<5x5xf32>
    %320 = tpu.matmul %317, %318, %cst_145 {dimension_numbers = #tpu.dot_dimension_numbers<[1], [1], [0], [0], [0, 0, 1, 0], [], []>} : vector<5x8xf32>, vector<5x8xf32>, vector<5x5xf32> -> vector<5x5xf32>
    %cst_146 = arith.constant dense<0xFF800000> : vector<5xf32>
    %321 = vector.multi_reduction <maximumf>, %320, %cst_146 [1] : vector<5x5xf32> to vector<5xf32>
    %322 = vector.shape_cast %321 : vector<5xf32> to vector<5x1xf32>
    %323 = vector.broadcast %322 : vector<5x1xf32> to vector<5x5xf32>
    %324 = arith.subf %320, %323 : vector<5x5xf32>
    %325 = math.exp %324 : vector<5x5xf32>
    %cst_147 = arith.constant dense<0.000000e+00> : vector<5xf32>
    %326 = vector.multi_reduction <add>, %325, %cst_147 [1] : vector<5x5xf32> to vector<5xf32>
    %327 = vector.shape_cast %326 : vector<5xf32> to vector<5x1xf32>
    %328 = tpu.reciprocal %327 {approx = true} : vector<5x1xf32> -> vector<5x1xf32>
    %329 = vector.broadcast %328 : vector<5x1xf32> to vector<5x5xf32>
    %330 = arith.mulf %325, %329 : vector<5x5xf32>
    %cst_148 = arith.constant dense<0.000000e+00> : vector<5x8xf32>
    %331 = tpu.matmul %330, %319, %cst_148 {dimension_numbers = #tpu.dot_dimension_numbers<[1], [0], [0], [1], [0, 0, 1, 1], [], []>} : vector<5x5xf32>, vector<5x8xf32>, vector<5x8xf32> -> vector<5x8xf32>
    %c0_149 = arith.constant 0 : index
    %c8_150 = arith.constant 8 : index
    %332 = vector.load %arg22[%c0_149, %c8_150] : memref<10x32xf32, #tpu.memory_space<vmem>>, vector<5x8xf32>
    tpu.vector_store %arg22[%c0_149, %c8_150], %331 {strides = array<i32>} : memref<10x32xf32, #tpu.memory_space<vmem>>, vector<5x8xf32>,
    %333 = vector.extract_strided_slice %296 {offsets = [0, 16], sizes = [5, 8], strides = [1, 1]} : vector<10x96xf32> to vector<5x8xf32>
    %cst_151 = arith.constant 0.353553385 : f32
    %334 = vector.broadcast %cst_151 : f32 to vector<5x8xf32>
    %335 = arith.mulf %333, %334 : vector<5x8xf32>
    %336 = vector.extract_strided_slice %296 {offsets = [0, 48], sizes = [5, 8], strides = [1, 1]} : vector<10x96xf32> to vector<5x8xf32>
    %337 = vector.extract_strided_slice %296 {offsets = [0, 80], sizes = [5, 8], strides = [1, 1]} : vector<10x96xf32> to vector<5x8xf32>
    %cst_152 = arith.constant dense<0.000000e+00> : vector<5x5xf32>
    %338 = tpu.matmul %335, %336, %cst_152 {dimension_numbers = #tpu.dot_dimension_numbers<[1], [1], [0], [0], [0, 0, 1, 0], [], []>} : vector<5x8xf32>, vector<5x8xf32>, vector<5x5xf32> -> vector<5x5xf32>
    %cst_153 = arith.constant dense<0xFF800000> : vector<5xf32>
    %339 = vector.multi_reduction <maximumf>, %338, %cst_153 [1] : vector<5x5xf32> to vector<5xf32>
    %340 = vector.shape_cast %339 : vector<5xf32> to vector<5x1xf32>
    %341 = vector.broadcast %340 : vector<5x1xf32> to vector<5x5xf32>
    %342 = arith.subf %338, %341 : vector<5x5xf32>
    %343 = math.exp %342 : vector<5x5xf32>
    %cst_154 = arith.constant dense<0.000000e+00> : vector<5xf32>
    %344 = vector.multi_reduction <add>, %343, %cst_154 [1] : vector<5x5xf32> to vector<5xf32>
    %345 = vector.shape_cast %344 : vector<5xf32> to vector<5x1xf32>
    %346 = tpu.reciprocal %345 {approx = true} : vector<5x1xf32> -> vector<5x1xf32>
    %347 = vector.broadcast %346 : vector<5x1xf32> to vector<5x5xf32>
    %348 = arith.mulf %343, %347 : vector<5x5xf32>
    %cst_155 = arith.constant dense<0.000000e+00> : vector<5x8xf32>
    %349 = tpu.matmul %348, %337, %cst_155 {dimension_numbers = #tpu.dot_dimension_numbers<[1], [0], [0], [1], [0, 0, 1, 1], [], []>} : vector<5x5xf32>, vector<5x8xf32>, vector<5x8xf32> -> vector<5x8xf32>
    %c0_156 = arith.constant 0 : index
    %c16_157 = arith.constant 16 : index
    %350 = vector.load %arg22[%c0_156, %c16_157] : memref<10x32xf32, #tpu.memory_space<vmem>>, vector<5x8xf32>
    tpu.vector_store %arg22[%c0_156, %c16_157], %349 {strides = array<i32>} : memref<10x32xf32, #tpu.memory_space<vmem>>, vector<5x8xf32>,
    %351 = vector.extract_strided_slice %296 {offsets = [0, 24], sizes = [5, 8], strides = [1, 1]} : vector<10x96xf32> to vector<5x8xf32>
    %cst_158 = arith.constant 0.353553385 : f32
    %352 = vector.broadcast %cst_158 : f32 to vector<5x8xf32>
    %353 = arith.mulf %351, %352 : vector<5x8xf32>
    %354 = vector.extract_strided_slice %296 {offsets = [0, 56], sizes = [5, 8], strides = [1, 1]} : vector<10x96xf32> to vector<5x8xf32>
    %355 = vector.extract_strided_slice %296 {offsets = [0, 88], sizes = [5, 8], strides = [1, 1]} : vector<10x96xf32> to vector<5x8xf32>
    %cst_159 = arith.constant dense<0.000000e+00> : vector<5x5xf32>
    %356 = tpu.matmul %353, %354, %cst_159 {dimension_numbers = #tpu.dot_dimension_numbers<[1], [1], [0], [0], [0, 0, 1, 0], [], []>} : vector<5x8xf32>, vector<5x8xf32>, vector<5x5xf32> -> vector<5x5xf32>
    %cst_160 = arith.constant dense<0xFF800000> : vector<5xf32>
    %357 = vector.multi_reduction <maximumf>, %356, %cst_160 [1] : vector<5x5xf32> to vector<5xf32>
    %358 = vector.shape_cast %357 : vector<5xf32> to vector<5x1xf32>
    %359 = vector.broadcast %358 : vector<5x1xf32> to vector<5x5xf32>
    %360 = arith.subf %356, %359 : vector<5x5xf32>
    %361 = math.exp %360 : vector<5x5xf32>
    %cst_161 = arith.constant dense<0.000000e+00> : vector<5xf32>
    %362 = vector.multi_reduction <add>, %361, %cst_161 [1] : vector<5x5xf32> to vector<5xf32>
    %363 = vector.shape_cast %362 : vector<5xf32> to vector<5x1xf32>
    %364 = tpu.reciprocal %363 {approx = true} : vector<5x1xf32> -> vector<5x1xf32>
    %365 = vector.broadcast %364 : vector<5x1xf32> to vector<5x5xf32>
    %366 = arith.mulf %361, %365 : vector<5x5xf32>
    %cst_162 = arith.constant dense<0.000000e+00> : vector<5x8xf32>
    %367 = tpu.matmul %366, %355, %cst_162 {dimension_numbers = #tpu.dot_dimension_numbers<[1], [0], [0], [1], [0, 0, 1, 1], [], []>} : vector<5x5xf32>, vector<5x8xf32>, vector<5x8xf32> -> vector<5x8xf32>
    %c0_163 = arith.constant 0 : index
    %c24_164 = arith.constant 24 : index
    %368 = vector.load %arg22[%c0_163, %c24_164] : memref<10x32xf32, #tpu.memory_space<vmem>>, vector<5x8xf32>
    tpu.vector_store %arg22[%c0_163, %c24_164], %367 {strides = array<i32>} : memref<10x32xf32, #tpu.memory_space<vmem>>, vector<5x8xf32>,
    %369 = vector.extract_strided_slice %296 {offsets = [5, 0], sizes = [5, 8], strides = [1, 1]} : vector<10x96xf32> to vector<5x8xf32>
    %cst_165 = arith.constant 0.353553385 : f32
    %370 = vector.broadcast %cst_165 : f32 to vector<5x8xf32>
    %371 = arith.mulf %369, %370 : vector<5x8xf32>
    %372 = vector.extract_strided_slice %296 {offsets = [5, 32], sizes = [5, 8], strides = [1, 1]} : vector<10x96xf32> to vector<5x8xf32>
    %373 = vector.extract_strided_slice %296 {offsets = [5, 64], sizes = [5, 8], strides = [1, 1]} : vector<10x96xf32> to vector<5x8xf32>
    %cst_166 = arith.constant dense<0.000000e+00> : vector<5x5xf32>
    %374 = tpu.matmul %371, %372, %cst_166 {dimension_numbers = #tpu.dot_dimension_numbers<[1], [1], [0], [0], [0, 0, 1, 0], [], []>} : vector<5x8xf32>, vector<5x8xf32>, vector<5x5xf32> -> vector<5x5xf32>
    %cst_167 = arith.constant dense<0xFF800000> : vector<5xf32>
    %375 = vector.multi_reduction <maximumf>, %374, %cst_167 [1] : vector<5x5xf32> to vector<5xf32>
    %376 = vector.shape_cast %375 : vector<5xf32> to vector<5x1xf32>
    %377 = vector.broadcast %376 : vector<5x1xf32> to vector<5x5xf32>
    %378 = arith.subf %374, %377 : vector<5x5xf32>
    %379 = math.exp %378 : vector<5x5xf32>
    %cst_168 = arith.constant dense<0.000000e+00> : vector<5xf32>
    %380 = vector.multi_reduction <add>, %379, %cst_168 [1] : vector<5x5xf32> to vector<5xf32>
    %381 = vector.shape_cast %380 : vector<5xf32> to vector<5x1xf32>
    %382 = tpu.reciprocal %381 {approx = true} : vector<5x1xf32> -> vector<5x1xf32>
    %383 = vector.broadcast %382 : vector<5x1xf32> to vector<5x5xf32>
    %384 = arith.mulf %379, %383 : vector<5x5xf32>
    %cst_169 = arith.constant dense<0.000000e+00> : vector<5x8xf32>
    %385 = tpu.matmul %384, %373, %cst_169 {dimension_numbers = #tpu.dot_dimension_numbers<[1], [0], [0], [1], [0, 0, 1, 1], [], []>} : vector<5x5xf32>, vector<5x8xf32>, vector<5x8xf32> -> vector<5x8xf32>
    %c5_170 = arith.constant 5 : index
    %c0_171 = arith.constant 0 : index
    %386 = vector.load %arg22[%c5_170, %c0_171] : memref<10x32xf32, #tpu.memory_space<vmem>>, vector<5x8xf32>
    tpu.vector_store %arg22[%c5_170, %c0_171], %385 {strides = array<i32>} : memref<10x32xf32, #tpu.memory_space<vmem>>, vector<5x8xf32>,
    %387 = vector.extract_strided_slice %296 {offsets = [5, 8], sizes = [5, 8], strides = [1, 1]} : vector<10x96xf32> to vector<5x8xf32>
    %cst_172 = arith.constant 0.353553385 : f32
    %388 = vector.broadcast %cst_172 : f32 to vector<5x8xf32>
    %389 = arith.mulf %387, %388 : vector<5x8xf32>
    %390 = vector.extract_strided_slice %296 {offsets = [5, 40], sizes = [5, 8], strides = [1, 1]} : vector<10x96xf32> to vector<5x8xf32>
    %391 = vector.extract_strided_slice %296 {offsets = [5, 72], sizes = [5, 8], strides = [1, 1]} : vector<10x96xf32> to vector<5x8xf32>
    %cst_173 = arith.constant dense<0.000000e+00> : vector<5x5xf32>
    %392 = tpu.matmul %389, %390, %cst_173 {dimension_numbers = #tpu.dot_dimension_numbers<[1], [1], [0], [0], [0, 0, 1, 0], [], []>} : vector<5x8xf32>, vector<5x8xf32>, vector<5x5xf32> -> vector<5x5xf32>
    %cst_174 = arith.constant dense<0xFF800000> : vector<5xf32>
    %393 = vector.multi_reduction <maximumf>, %392, %cst_174 [1] : vector<5x5xf32> to vector<5xf32>
    %394 = vector.shape_cast %393 : vector<5xf32> to vector<5x1xf32>
    %395 = vector.broadcast %394 : vector<5x1xf32> to vector<5x5xf32>
    %396 = arith.subf %392, %395 : vector<5x5xf32>
    %397 = math.exp %396 : vector<5x5xf32>
    %cst_175 = arith.constant dense<0.000000e+00> : vector<5xf32>
    %398 = vector.multi_reduction <add>, %397, %cst_175 [1] : vector<5x5xf32> to vector<5xf32>
    %399 = vector.shape_cast %398 : vector<5xf32> to vector<5x1xf32>
    %400 = tpu.reciprocal %399 {approx = true} : vector<5x1xf32> -> vector<5x1xf32>
    %401 = vector.broadcast %400 : vector<5x1xf32> to vector<5x5xf32>
    %402 = arith.mulf %397, %401 : vector<5x5xf32>
    %cst_176 = arith.constant dense<0.000000e+00> : vector<5x8xf32>
    %403 = tpu.matmul %402, %391, %cst_176 {dimension_numbers = #tpu.dot_dimension_numbers<[1], [0], [0], [1], [0, 0, 1, 1], [], []>} : vector<5x5xf32>, vector<5x8xf32>, vector<5x8xf32> -> vector<5x8xf32>
    %c5_177 = arith.constant 5 : index
    %c8_178 = arith.constant 8 : index
    %404 = vector.load %arg22[%c5_177, %c8_178] : memref<10x32xf32, #tpu.memory_space<vmem>>, vector<5x8xf32>
    tpu.vector_store %arg22[%c5_177, %c8_178], %403 {strides = array<i32>} : memref<10x32xf32, #tpu.memory_space<vmem>>, vector<5x8xf32>,
    %405 = vector.extract_strided_slice %296 {offsets = [5, 16], sizes = [5, 8], strides = [1, 1]} : vector<10x96xf32> to vector<5x8xf32>
    %cst_179 = arith.constant 0.353553385 : f32
    %406 = vector.broadcast %cst_179 : f32 to vector<5x8xf32>
    %407 = arith.mulf %405, %406 : vector<5x8xf32>
    %408 = vector.extract_strided_slice %296 {offsets = [5, 48], sizes = [5, 8], strides = [1, 1]} : vector<10x96xf32> to vector<5x8xf32>
    %409 = vector.extract_strided_slice %296 {offsets = [5, 80], sizes = [5, 8], strides = [1, 1]} : vector<10x96xf32> to vector<5x8xf32>
    %cst_180 = arith.constant dense<0.000000e+00> : vector<5x5xf32>
    %410 = tpu.matmul %407, %408, %cst_180 {dimension_numbers = #tpu.dot_dimension_numbers<[1], [1], [0], [0], [0, 0, 1, 0], [], []>} : vector<5x8xf32>, vector<5x8xf32>, vector<5x5xf32> -> vector<5x5xf32>
    %cst_181 = arith.constant dense<0xFF800000> : vector<5xf32>
    %411 = vector.multi_reduction <maximumf>, %410, %cst_181 [1] : vector<5x5xf32> to vector<5xf32>
    %412 = vector.shape_cast %411 : vector<5xf32> to vector<5x1xf32>
    %413 = vector.broadcast %412 : vector<5x1xf32> to vector<5x5xf32>
    %414 = arith.subf %410, %413 : vector<5x5xf32>
    %415 = math.exp %414 : vector<5x5xf32>
    %cst_182 = arith.constant dense<0.000000e+00> : vector<5xf32>
    %416 = vector.multi_reduction <add>, %415, %cst_182 [1] : vector<5x5xf32> to vector<5xf32>
    %417 = vector.shape_cast %416 : vector<5xf32> to vector<5x1xf32>
    %418 = tpu.reciprocal %417 {approx = true} : vector<5x1xf32> -> vector<5x1xf32>
    %419 = vector.broadcast %418 : vector<5x1xf32> to vector<5x5xf32>
    %420 = arith.mulf %415, %419 : vector<5x5xf32>
    %cst_183 = arith.constant dense<0.000000e+00> : vector<5x8xf32>
    %421 = tpu.matmul %420, %409, %cst_183 {dimension_numbers = #tpu.dot_dimension_numbers<[1], [0], [0], [1], [0, 0, 1, 1], [], []>} : vector<5x5xf32>, vector<5x8xf32>, vector<5x8xf32> -> vector<5x8xf32>
    %c5_184 = arith.constant 5 : index
    %c16_185 = arith.constant 16 : index
    %422 = vector.load %arg22[%c5_184, %c16_185] : memref<10x32xf32, #tpu.memory_space<vmem>>, vector<5x8xf32>
    tpu.vector_store %arg22[%c5_184, %c16_185], %421 {strides = array<i32>} : memref<10x32xf32, #tpu.memory_space<vmem>>, vector<5x8xf32>,
    %423 = vector.extract_strided_slice %296 {offsets = [5, 24], sizes = [5, 8], strides = [1, 1]} : vector<10x96xf32> to vector<5x8xf32>
    %cst_186 = arith.constant 0.353553385 : f32
    %424 = vector.broadcast %cst_186 : f32 to vector<5x8xf32>
    %425 = arith.mulf %423, %424 : vector<5x8xf32>
    %426 = vector.extract_strided_slice %296 {offsets = [5, 56], sizes = [5, 8], strides = [1, 1]} : vector<10x96xf32> to vector<5x8xf32>
    %427 = vector.extract_strided_slice %296 {offsets = [5, 88], sizes = [5, 8], strides = [1, 1]} : vector<10x96xf32> to vector<5x8xf32>
    %cst_187 = arith.constant dense<0.000000e+00> : vector<5x5xf32>
    %428 = tpu.matmul %425, %426, %cst_187 {dimension_numbers = #tpu.dot_dimension_numbers<[1], [1], [0], [0], [0, 0, 1, 0], [], []>} : vector<5x8xf32>, vector<5x8xf32>, vector<5x5xf32> -> vector<5x5xf32>
    %cst_188 = arith.constant dense<0xFF800000> : vector<5xf32>
    %429 = vector.multi_reduction <maximumf>, %428, %cst_188 [1] : vector<5x5xf32> to vector<5xf32>
    %430 = vector.shape_cast %429 : vector<5xf32> to vector<5x1xf32>
    %431 = vector.broadcast %430 : vector<5x1xf32> to vector<5x5xf32>
    %432 = arith.subf %428, %431 : vector<5x5xf32>
    %433 = math.exp %432 : vector<5x5xf32>
    %cst_189 = arith.constant dense<0.000000e+00> : vector<5xf32>
    %434 = vector.multi_reduction <add>, %433, %cst_189 [1] : vector<5x5xf32> to vector<5xf32>
    %435 = vector.shape_cast %434 : vector<5xf32> to vector<5x1xf32>
    %436 = tpu.reciprocal %435 {approx = true} : vector<5x1xf32> -> vector<5x1xf32>
    %437 = vector.broadcast %436 : vector<5x1xf32> to vector<5x5xf32>
    %438 = arith.mulf %433, %437 : vector<5x5xf32>
    %cst_190 = arith.constant dense<0.000000e+00> : vector<5x8xf32>
    %439 = tpu.matmul %438, %427, %cst_190 {dimension_numbers = #tpu.dot_dimension_numbers<[1], [0], [0], [1], [0, 0, 1, 1], [], []>} : vector<5x5xf32>, vector<5x8xf32>, vector<5x8xf32> -> vector<5x8xf32>
    %c5_191 = arith.constant 5 : index
    %c24_192 = arith.constant 24 : index
    %440 = vector.load %arg22[%c5_191, %c24_192] : memref<10x32xf32, #tpu.memory_space<vmem>>, vector<5x8xf32>
    tpu.vector_store %arg22[%c5_191, %c24_192], %439 {strides = array<i32>} : memref<10x32xf32, #tpu.memory_space<vmem>>, vector<5x8xf32>,
    %c0_193 = arith.constant 0 : index
    %c0_194 = arith.constant 0 : index
    %441 = vector.load %arg22[%c0_193, %c0_194] : memref<10x32xf32, #tpu.memory_space<vmem>>, vector<10x32xf32>
    %c1_195 = arith.constant 1 : index
    %c0_196 = arith.constant 0 : index
    %c0_197 = arith.constant 0 : index
    %442 = vector.load %arg10[%c1_195, %c0_196, %c0_197] : memref<2x32x32xf32, #tpu.memory_space<vmem>>, vector<1x32x32xf32>
    %443 = vector.shape_cast %442 : vector<1x32x32xf32> to vector<32x32xf32>
    %cst_198 = arith.constant dense<0.000000e+00> : vector<10x32xf32>
    %444 = tpu.matmul %441, %443, %cst_198 {dimension_numbers = #tpu.dot_dimension_numbers<[1], [0], [0], [1], [0, 0, 1, 1], [], []>} : vector<10x32xf32>, vector<32x32xf32>, vector<10x32xf32> -> vector<10x32xf32>
    %c1_199 = arith.constant 1 : index
    %c0_200 = arith.constant 0 : index
    %c0_201 = arith.constant 0 : index
    %445 = vector.load %arg11[%c1_199, %c0_200, %c0_201] : memref<2x1x32xf32, #tpu.memory_space<vmem>>, vector<1x1x32xf32>
    %446 = vector.shape_cast %445 : vector<1x1x32xf32> to vector<1x32xf32>
    %447 = vector.broadcast %446 : vector<1x32xf32> to vector<10x32xf32>
    %448 = arith.addf %444, %447 : vector<10x32xf32>
    %449 = arith.addf %448, %263 : vector<10x32xf32>
    %c1_202 = arith.constant 1 : index
    %c0_203 = arith.constant 0 : index
    %c0_204 = arith.constant 0 : index
    %450 = vector.load %arg12[%c1_202, %c0_203, %c0_204] : memref<2x1x32xf32, #tpu.memory_space<vmem>>, vector<1x1x32xf32>
    %451 = vector.shape_cast %450 : vector<1x1x32xf32> to vector<1x32xf32>
    %c1_205 = arith.constant 1 : index
    %c0_206 = arith.constant 0 : index
    %c0_207 = arith.constant 0 : index
    %452 = vector.load %arg13[%c1_205, %c0_206, %c0_207] : memref<2x1x32xf32, #tpu.memory_space<vmem>>, vector<1x1x32xf32>
    %453 = vector.shape_cast %452 : vector<1x1x32xf32> to vector<1x32xf32>
    %cst_208 = arith.constant dense<0.000000e+00> : vector<10xf32>
    %454 = vector.multi_reduction <add>, %449, %cst_208 [1] : vector<10x32xf32> to vector<10xf32>
    %455 = vector.shape_cast %454 : vector<10xf32> to vector<10x1xf32>
    %cst_209 = arith.constant 3.200000e+01 : f32
    %456 = vector.broadcast %cst_209 : f32 to vector<10x1xf32>
    %457 = arith.divf %455, %456 : vector<10x1xf32>
    %458 = vector.broadcast %457 : vector<10x1xf32> to vector<10x32xf32>
    %459 = arith.subf %449, %458 : vector<10x32xf32>
    %460 = arith.mulf %459, %459 : vector<10x32xf32>
    %cst_210 = arith.constant dense<0.000000e+00> : vector<10xf32>
    %461 = vector.multi_reduction <add>, %460, %cst_210 [1] : vector<10x32xf32> to vector<10xf32>
    %462 = vector.shape_cast %461 : vector<10xf32> to vector<10x1xf32>
    %cst_211 = arith.constant 3.200000e+01 : f32
    %463 = vector.broadcast %cst_211 : f32 to vector<10x1xf32>
    %464 = arith.divf %462, %463 : vector<10x1xf32>
    %465 = vector.broadcast %457 : vector<10x1xf32> to vector<10x32xf32>
    %466 = arith.subf %449, %465 : vector<10x32xf32>
    %cst_212 = arith.constant 9.99999974E-6 : f32
    %467 = vector.broadcast %cst_212 : f32 to vector<10x1xf32>
    %468 = arith.addf %464, %467 : vector<10x1xf32>
    %469 = math.rsqrt %468 : vector<10x1xf32>
    %470 = vector.broadcast %469 : vector<10x1xf32> to vector<10x32xf32>
    %471 = arith.mulf %466, %470 : vector<10x32xf32>
    %472 = vector.broadcast %451 : vector<1x32xf32> to vector<10x32xf32>
    %473 = arith.mulf %471, %472 : vector<10x32xf32>
    %474 = vector.broadcast %453 : vector<1x32xf32> to vector<10x32xf32>
    %475 = arith.addf %473, %474 : vector<10x32xf32>
    %c1_213 = arith.constant 1 : index
    %c0_214 = arith.constant 0 : index
    %c0_215 = arith.constant 0 : index
    %476 = vector.load %arg14[%c1_213, %c0_214, %c0_215] : memref<2x32x64xf32, #tpu.memory_space<vmem>>, vector<1x32x64xf32>
    %477 = vector.shape_cast %476 : vector<1x32x64xf32> to vector<32x64xf32>
    %cst_216 = arith.constant dense<0.000000e+00> : vector<10x64xf32>
    %478 = tpu.matmul %475, %477, %cst_216 {dimension_numbers = #tpu.dot_dimension_numbers<[1], [0], [0], [1], [0, 0, 1, 1], [], []>} : vector<10x32xf32>, vector<32x64xf32>, vector<10x64xf32> -> vector<10x64xf32>
    %c1_217 = arith.constant 1 : index
    %c0_218 = arith.constant 0 : index
    %c0_219 = arith.constant 0 : index
    %479 = vector.load %arg15[%c1_217, %c0_218, %c0_219] : memref<2x1x64xf32, #tpu.memory_space<vmem>>, vector<1x1x64xf32>
    %480 = vector.shape_cast %479 : vector<1x1x64xf32> to vector<1x64xf32>
    %481 = vector.broadcast %480 : vector<1x64xf32> to vector<10x64xf32>
    %482 = arith.addf %478, %481 : vector<10x64xf32>
    %cst_220 = arith.constant 1.702000e+00 : f32
    %483 = vector.broadcast %cst_220 : f32 to vector<10x64xf32>
    %484 = arith.mulf %483, %482 : vector<10x64xf32>
    %485 = arith.negf %484 : vector<10x64xf32>
    %486 = math.exp %485 : vector<10x64xf32>
    %cst_221 = arith.constant 1.000000e+00 : f32
    %487 = vector.broadcast %cst_221 : f32 to vector<10x64xf32>
    %488 = arith.addf %487, %486 : vector<10x64xf32>
    %489 = arith.divf %487, %488 : vector<10x64xf32>
    %490 = arith.mulf %482, %489 : vector<10x64xf32>
    %c1_222 = arith.constant 1 : index
    %c0_223 = arith.constant 0 : index
    %c0_224 = arith.constant 0 : index
    %491 = vector.load %arg16[%c1_222, %c0_223, %c0_224] : memref<2x64x32xf32, #tpu.memory_space<vmem>>, vector<1x64x32xf32>
    %492 = vector.shape_cast %491 : vector<1x64x32xf32> to vector<64x32xf32>
    %cst_225 = arith.constant dense<0.000000e+00> : vector<10x32xf32>
    %493 = tpu.matmul %490, %492, %cst_225 {dimension_numbers = #tpu.dot_dimension_numbers<[1], [0], [0], [1], [0, 0, 1, 1], [], []>} : vector<10x64xf32>, vector<64x32xf32>, vector<10x32xf32> -> vector<10x32xf32>
    %c1_226 = arith.constant 1 : index
    %c0_227 = arith.constant 0 : index
    %c0_228 = arith.constant 0 : index
    %494 = vector.load %arg17[%c1_226, %c0_227, %c0_228] : memref<2x1x32xf32, #tpu.memory_space<vmem>>, vector<1x1x32xf32>
    %495 = vector.shape_cast %494 : vector<1x1x32xf32> to vector<1x32xf32>
    %496 = vector.broadcast %495 : vector<1x32xf32> to vector<10x32xf32>
    %497 = arith.addf %493, %496 : vector<10x32xf32>
    %498 = arith.addf %497, %449 : vector<10x32xf32>
    %499 = vector.extract_strided_slice %498 {offsets = [0, 0], sizes = [1, 32], strides = [1, 1]} : vector<10x32xf32> to vector<1x32xf32>
    %c0_229 = arith.constant 0 : index
    %c0_230 = arith.constant 0 : index
    %500 = vector.load %arg23[%c0_229, %c0_230] : memref<2x32xf32, #tpu.memory_space<vmem>>, vector<1x32xf32>
    tpu.vector_store %arg23[%c0_229, %c0_230], %499 {strides = array<i32>} : memref<2x32xf32, #tpu.memory_space<vmem>>, vector<1x32xf32>,
    %501 = vector.extract_strided_slice %498 {offsets = [5, 0], sizes = [1, 32], strides = [1, 1]} : vector<10x32xf32> to vector<1x32xf32>
    %c1_231 = arith.constant 1 : index
    %c0_232 = arith.constant 0 : index
    %502 = vector.load %arg23[%c1_231, %c0_232] : memref<2x32xf32, #tpu.memory_space<vmem>>, vector<1x32xf32>
    tpu.vector_store %arg23[%c1_231, %c0_232], %501 {strides = array<i32>} : memref<2x32xf32, #tpu.memory_space<vmem>>, vector<1x32xf32>,
    %c0_233 = arith.constant 0 : index
    %c0_234 = arith.constant 0 : index
    %503 = vector.load %arg23[%c0_233, %c0_234] : memref<2x32xf32, #tpu.memory_space<vmem>>, vector<2x32xf32>
    %c0_235 = arith.constant 0 : index
    %c0_236 = arith.constant 0 : index
    %504 = vector.load %arg18[%c0_235, %c0_236] : memref<1x32xf32, #tpu.memory_space<vmem>>, vector<1x32xf32>
    %c0_237 = arith.constant 0 : index
    %c0_238 = arith.constant 0 : index
    %505 = vector.load %arg19[%c0_237, %c0_238] : memref<1x32xf32, #tpu.memory_space<vmem>>, vector<1x32xf32>
    %cst_239 = arith.constant dense<0.000000e+00> : vector<2xf32>
    %506 = vector.multi_reduction <add>, %503, %cst_239 [1] : vector<2x32xf32> to vector<2xf32>
    %507 = vector.shape_cast %506 : vector<2xf32> to vector<2x1xf32>
    %cst_240 = arith.constant 3.200000e+01 : f32
    %508 = vector.broadcast %cst_240 : f32 to vector<2x1xf32>
    %509 = arith.divf %507, %508 : vector<2x1xf32>
    %510 = vector.broadcast %509 : vector<2x1xf32> to vector<2x32xf32>
    %511 = arith.subf %503, %510 : vector<2x32xf32>
    %512 = arith.mulf %511, %511 : vector<2x32xf32>
    %cst_241 = arith.constant dense<0.000000e+00> : vector<2xf32>
    %513 = vector.multi_reduction <add>, %512, %cst_241 [1] : vector<2x32xf32> to vector<2xf32>
    %514 = vector.shape_cast %513 : vector<2xf32> to vector<2x1xf32>
    %cst_242 = arith.constant 3.200000e+01 : f32
    %515 = vector.broadcast %cst_242 : f32 to vector<2x1xf32>
    %516 = arith.divf %514, %515 : vector<2x1xf32>
    %517 = vector.broadcast %509 : vector<2x1xf32> to vector<2x32xf32>
    %518 = arith.subf %503, %517 : vector<2x32xf32>
    %cst_243 = arith.constant 9.99999974E-6 : f32
    %519 = vector.broadcast %cst_243 : f32 to vector<2x1xf32>
    %520 = arith.addf %516, %519 : vector<2x1xf32>
    %521 = math.rsqrt %520 : vector<2x1xf32>
    %522 = vector.broadcast %521 : vector<2x1xf32> to vector<2x32xf32>
    %523 = arith.mulf %518, %522 : vector<2x32xf32>
    %524 = vector.broadcast %504 : vector<1x32xf32> to vector<2x32xf32>
    %525 = arith.mulf %523, %524 : vector<2x32xf32>
    %526 = vector.broadcast %505 : vector<1x32xf32> to vector<2x32xf32>
    %527 = arith.addf %525, %526 : vector<2x32xf32>
    %c0_244 = arith.constant 0 : index
    %c0_245 = arith.constant 0 : index
    %528 = vector.load %arg20[%c0_244, %c0_245] : memref<32x16xf32, #tpu.memory_space<vmem>>, vector<32x16xf32>
    %cst_246 = arith.constant dense<0.000000e+00> : vector<2x16xf32>
    %529 = tpu.matmul %527, %528, %cst_246 {dimension_numbers = #tpu.dot_dimension_numbers<[1], [0], [0], [1], [0, 0, 1, 1], [], []>} : vector<2x32xf32>, vector<32x16xf32>, vector<2x16xf32> -> vector<2x16xf32>
    %c0_247 = arith.constant 0 : index
    %c0_248 = arith.constant 0 : index
    %530 = vector.load %arg21[%c0_247, %c0_248] : memref<2x16xf32, #tpu.memory_space<vmem>>, vector<2x16xf32>
    tpu.vector_store %arg21[%c0_247, %c0_248], %529 {strides = array<i32>} : memref<2x16xf32, #tpu.memory_space<vmem>>, vector<2x16xf32>,
    return
  }
  func.func @transform_0(%arg0: i32) -> (i32, i32) {
    %c0_i32 = arith.constant 0 : i32
    %c0_i32_0 = arith.constant 0 : i32
    %c0_i32_1 = arith.constant 0 : i32
    return %c0_i32, %c0_i32_0 : i32, i32
  }
  func.func @transform_1(%arg0: i32) -> (i32, i32) {
    %c0_i32 = arith.constant 0 : i32
    %c0_i32_0 = arith.constant 0 : i32
    %c0_i32_1 = arith.constant 0 : i32
    return %c0_i32, %c0_i32_0 : i32, i32
  }
  func.func @transform_2(%arg0: i32) -> (i32, i32) {
    %c0_i32 = arith.constant 0 : i32
    %c0_i32_0 = arith.constant 0 : i32
    %c0_i32_1 = arith.constant 0 : i32
    return %c0_i32, %c0_i32_0 : i32, i32
  }
  func.func @transform_3(%arg0: i32) -> (i32, i32) {
    %c0_i32 = arith.constant 0 : i32
    %c0_i32_0 = arith.constant 0 : i32
    %c0_i32_1 = arith.constant 0 : i32
    return %c0_i32, %c0_i32_0 : i32, i32
  }
  func.func @transform_4(%arg0: i32) -> (i32, i32) {
    %c0_i32 = arith.constant 0 : i32
    %c0_i32_0 = arith.constant 0 : i32
    %c0_i32_1 = arith.constant 0 : i32
    return %c0_i32, %c0_i32_0 : i32, i32
  }
  func.func @transform_5(%arg0: i32) -> (i32, i32, i32) {
    %c0_i32 = arith.constant 0 : i32
    %c0_i32_0 = arith.constant 0 : i32
    %c0_i32_1 = arith.constant 0 : i32
    %c0_i32_2 = arith.constant 0 : i32
    return %c0_i32, %c0_i32_0, %c0_i32_1 : i32, i32, i32
  }
  func.func @transform_6(%arg0: i32) -> (i32, i32, i32) {
    %c0_i32 = arith.constant 0 : i32
    %c0_i32_0 = arith.constant 0 : i32
    %c0_i32_1 = arith.constant 0 : i32
    %c0_i32_2 = arith.constant 0 : i32
    return %c0_i32, %c0_i32_0, %c0_i32_1 : i32, i32, i32
  }
  func.func @transform_7(%arg0: i32) -> (i32, i32, i32) {
    %c0_i32 = arith.constant 0 : i32
    %c0_i32_0 = arith.constant 0 : i32
    %c0_i32_1 = arith.constant 0 : i32
    %c0_i32_2 = arith.constant 0 : i32
    return %c0_i32, %c0_i32_0, %c0_i32_1 : i32, i32, i32
  }
  func.func @transform_8(%arg0: i32) -> (i32, i32, i32) {
    %c0_i32 = arith.constant 0 : i32
    %c0_i32_0 = arith.constant 0 : i32
    %c0_i32_1 = arith.constant 0 : i32
    %c0_i32_2 = arith.constant 0 : i32
    return %c0_i32, %c0_i32_0, %c0_i32_1 : i32, i32, i32
  }
  func.func @transform_9(%arg0: i32) -> (i32, i32, i32) {
    %c0_i32 = arith.constant 0 : i32
    %c0_i32_0 = arith.constant 0 : i32
    %c0_i32_1 = arith.constant 0 : i32
    %c0_i32_2 = arith.constant 0 : i32
    return %c0_i32, %c0_i32_0, %c0_i32_1 : i32, i32, i32
  }
  func.func @transform_10(%arg0: i32) -> (i32, i32, i32) {
    %c0_i32 = arith.constant 0 : i32
    %c0_i32_0 = arith.constant 0 : i32
    %c0_i32_1 = arith.constant 0 : i32
    %c0_i32_2 = arith.constant 0 : i32
    return %c0_i32, %c0_i32_0, %c0_i32_1 : i32, i32, i32
  }
  func.func @transform_11(%arg0: i32) -> (i32, i32, i32) {
    %c0_i32 = arith.constant 0 : i32
    %c0_i32_0 = arith.constant 0 : i32
    %c0_i32_1 = arith.constant 0 : i32
    %c0_i32_2 = arith.constant 0 : i32
    return %c0_i32, %c0_i32_0, %c0_i32_1 : i32, i32, i32
  }
  func.func @transform_12(%arg0: i32) -> (i32, i32, i32) {
    %c0_i32 = arith.constant 0 : i32
    %c0_i32_0 = arith.constant 0 : i32
    %c0_i32_1 = arith.constant 0 : i32
    %c0_i32_2 = arith.constant 0 : i32
    return %c0_i32, %c0_i32_0, %c0_i32_1 : i32, i32, i32
  }
  func.func @transform_13(%arg0: i32) -> (i32, i32, i32) {
    %c0_i32 = arith.constant 0 : i32
    %c0_i32_0 = arith.constant 0 : i32
    %c0_i32_1 = arith.constant 0 : i32
    %c0_i32_2 = arith.constant 0 : i32
    return %c0_i32, %c0_i32_0, %c0_i32_1 : i32, i32, i32
  }
  func.func @transform_14(%arg0: i32) -> (i32, i32, i32) {
    %c0_i32 = arith.constant 0 : i32
    %c0_i32_0 = arith.constant 0 : i32
    %c0_i32_1 = arith.constant 0 : i32
    %c0_i32_2 = arith.constant 0 : i32
    return %c0_i32, %c0_i32_0, %c0_i32_1 : i32, i32, i32
  }
  func.func @transform_15(%arg0: i32) -> (i32, i32, i32) {
    %c0_i32 = arith.constant 0 : i32
    %c0_i32_0 = arith.constant 0 : i32
    %c0_i32_1 = arith.constant 0 : i32
    %c0_i32_2 = arith.constant 0 : i32
    return %c0_i32, %c0_i32_0, %c0_i32_1 : i32, i32, i32
  }
  func.func @transform_16(%arg0: i32) -> (i32, i32, i32) {
    %c0_i32 = arith.constant 0 : i32
    %c0_i32_0 = arith.constant 0 : i32
    %c0_i32_1 = arith.constant 0 : i32
    %c0_i32_2 = arith.constant 0 : i32
    return %c0_i32, %c0_i32_0, %c0_i32_1 : i32, i32, i32
  }
  func.func @transform_17(%arg0: i32) -> (i32, i32) {
    %c0_i32 = arith.constant 0 : i32
    %c0_i32_0 = arith.constant 0 : i32
    %c0_i32_1 = arith.constant 0 : i32
    return %c0_i32, %c0_i32_0 : i32, i32
  }
  func.func @transform_18(%arg0: i32) -> (i32, i32) {
    %c0_i32 = arith.constant 0 : i32
    %c0_i32_0 = arith.constant 0 : i32
    %c0_i32_1 = arith.constant 0 : i32
    return %c0_i32, %c0_i32_0 : i32, i32
  }
  func.func @transform_19(%arg0: i32) -> (i32, i32) {
    %c0_i32 = arith.constant 0 : i32
    %c0_i32_0 = arith.constant 0 : i32
    %c0_i32_1 = arith.constant 0 : i32
    return %c0_i32, %c0_i32_0 : i32, i32
  }
  func.func @transform_20(%arg0: i32) -> (i32, i32) {
    %c0_i32 = arith.constant 0 : i32
    %c0_i32_0 = arith.constant 0 : i32
    %c0_i32_1 = arith.constant 0 : i32
    return %c0_i32, %c0_i32_0 : i32, i32
  }
}

</mosaic_0001>

<bundles_post_ra>
// kernel: tile.9
= control target key start
LH: loop header
LB: loop body
LE: loop exit
PB: predicated region body
PF: predicated region fallthrough
CT: control target
= control target key end

     0   :  { %vm3_vm0 = vcmask 261120   ;;  %s34_s0 = inlined_call_operand.vmem [shape: f32[2,5,32], index: 0, kind: input, shape index: {}]   ;;  %s35_s1 = inlined_call_operand.vmem [shape: f32[10,32], index: 1, kind: output, shape index: {}]  }
   0x1   :  { %v2_v0 = vld [vmem:[%s34_s0] sm:$0x1f]   ;;  %v10_v1 = vld [vmem:[%s34_s0 + $0x8] sm:$0x1f]  }
   0x2   :  { %4 = vst.msk [vmem:[%s35_s1] sm:$0x1f] %vm3_vm0, %v2_v0  }
   0x3   :  { %11 = vst.msk [vmem:[%s35_s1 + $0x5] sm:$0x1f] %vm3_vm0, %v10_v1  }

// kernel: sketch_model_forward.1
= control target key start
LH: loop header
LB: loop body
LE: loop exit
PB: predicated region body
PF: predicated region fallthrough
CT: control target
= control target key end

     0   :  { %s3125_s0 = inlined_call_operand.vmem [shape: f32[10,192], index: 0, kind: input, shape index: {}]   ;;  %s3126_s1 = inlined_call_operand.vmem [shape: f32[192,32], index: 1, kind: input, shape index: {}]   ;;  %s3127_s2 = inlined_call_operand.vmem [shape: f32[10,32], index: 2, kind: input, shape index: {}]   ;;  %s3128_s3 = inlined_call_operand.vmem [shape: f32[1,32], index: 3, kind: input, shape index: {}]   ;;  %s3129_s4 = inlined_call_operand.vmem [shape: f32[1,32], index: 4, kind: input, shape index: {}]   ;;  %s3130_s5 = inlined_call_operand.vmem [shape: f32[2,1,32], index: 5, kind: input, shape index: {}]   ;;  %s3131_s6 = inlined_call_operand.vmem [shape: f32[2,1,32], index: 6, kind: input, shape index: {}]   ;;  %s3132_s7 = inlined_call_operand.vmem [shape: f32[2,32,96], index: 7, kind: input, shape index: {}]   ;;  %s3133_s8 = inlined_call_operand.vmem [shape: f32[2,1,96], index: 8, kind: input, shape index: {}]   ;;  %s3134_s9 = inlined_call_operand.vmem [shape: f32[2,32,32], index: 9, kind: input, shape index: {}]   ;;  %s3135_s10 = inlined_call_operand.vmem [shape: f32[2,1,32], index: 10, kind: input, shape index: {}]   ;;  %s3136_s11 = inlined_call_operand.vmem [shape: f32[2,1,32], index: 11, kind: input, shape index: {}]   ;;  %s3137_s12 = inlined_call_operand.vmem [shape: f32[2,1,32], index: 12, kind: input, shape index: {}]   ;;  %s3138_s13 = inlined_call_operand.vmem [shape: f32[2,32,64], index: 13, kind: input, shape index: {}]   ;;  %s3139_s14 = inlined_call_operand.vmem [shape: f32[2,1,64], index: 14, kind: input, shape index: {}]   ;;  %s3140_s15 = inlined_call_operand.vmem [shape: f32[2,64,32], index: 15, kind: input, shape index: {}]   ;;  %s3141_s16 = inlined_call_operand.vmem [shape: f32[2,1,32], index: 16, kind: input, shape index: {}]   ;;  %s3142_s17 = inlined_call_operand.vmem [shape: f32[1,32], index: 17, kind: input, shape index: {}]   ;;  %s3143_s18 = inlined_call_operand.vmem [shape: f32[1,32], index: 18, kind: input, shape index: {}]   ;;  %s3144_s19 = inlined_call_operand.vmem [shape: f32[32,16], index: 19, kind: input, shape index: {}]   ;;  %s3145_s20 = inlined_call_operand.hbm [shape: f32[2,16], index: 20, kind: output, shape index: {}]  }
   0x1   :  { %3171 = sst [smem:[#allocation7_spill]] %s3125_s0 }
   0x2   :  { %3172 = sst [smem:[#allocation8_spill]] %s3126_s1 }
   0x3   :  { %3173 = sst [smem:[#allocation9_spill]] %s3127_s2 }
   0x4   :  { %3174 = sst [smem:[#allocation10_spill]] %s3128_s3 }
   0x5   :  { %3175 = sst [smem:[#allocation11_spill]] %s3129_s4 }
   0x6   :  { %s3176_s23 = sld [smem:[#allocation8_spill]] }
   0xc   :  { %v85_v0 = vld [vmem:[%s3176_s23 + $0x78] sm:$0xff]  ;;  %v84_v1 = vld [vmem:[%s3176_s23 + $0x70] sm:$0xff]  ;;  %v83_v2 = vld [vmem:[%s3176_s23 + $0x68] sm:$0xff] }
   0xd   :  { %103 = vmatpush.msra.mxu0 %v85_v0  ;;  %v93_v3 = vld [vmem:[%s3176_s23 + $0xb8] sm:$0xff]  ;;  %v82_v4 = vld [vmem:[%s3176_s23 + $0x60] sm:$0xff]  ;;  %v92_v5 = vld [vmem:[%s3176_s23 + $0xb0] sm:$0xff] }
   0xe   :  { %134 = vmatpush.msra.mxu1 %v93_v3  ;;  %v91_v6 = vld [vmem:[%s3176_s23 + $0xa8] sm:$0xff]  ;;  %v81_v7 = vld [vmem:[%s3176_s23 + $0x58] sm:$0xff]  ;;  %v90_v8 = vld [vmem:[%s3176_s23 + $0xa0] sm:$0xff] }
   0xf   :  { %104 = vmatpush.msra.mxu0 %v84_v1  ;;  %v80_v9 = vld [vmem:[%s3176_s23 + $0x50] sm:$0xff]  ;;  %v79_v10 = vld [vmem:[%s3176_s23 + $0x48] sm:$0xff]  ;;  %v89_v11 = vld [vmem:[%s3176_s23 + $0x98] sm:$0xff] }
  0x10   :  { %135 = vmatpush.msra.mxu1 %v92_v5  ;;  %v88_v12 = vld [vmem:[%s3176_s23 + $0x90] sm:$0xff]  ;;  %v78_v13 = vld [vmem:[%s3176_s23 + $0x40] sm:$0xff]  ;;  %v87_v14 = vld [vmem:[%s3176_s23 + $0x88] sm:$0xff] }
  0x11   :  { %105 = vmatpush.msra.mxu0 %v83_v2  ;;  %v77_v15 = vld [vmem:[%s3176_s23 + $0x38] sm:$0xff]  ;;  %v86_v16 = vld [vmem:[%s3176_s23 + $0x80] sm:$0xff] }
  0x12   :  { %136 = vmatpush.msra.mxu1 %v91_v6 }
  0x13   :  { %106 = vmatpush.msra.mxu0 %v82_v4 }
  0x14   :  { %137 = vmatpush.msra.mxu1 %v90_v8 }
  0x15   :  { %107 = vmatpush.msra.mxu0 %v81_v7 }
  0x16   :  { %138 = vmatpush.msra.mxu1 %v89_v11 }
  0x17   :  { %108 = vmatpush.msra.mxu0 %v80_v9 }
  0x18   :  { %139 = vmatpush.msra.mxu1 %v88_v12 }
  0x19   :  { %109 = vmatpush.msra.mxu0 %v79_v10 }
  0x1b   :  { %110 = vmatpush.msra.mxu0 %v78_v13 }
  0x1c   :  { %25 = vsyncpa [#allocation5], 0  ;;  %v76_v17 = vld [vmem:[%s3176_s23 + $0x30] sm:$0xff]  ;;  %140 = vmatpush.msra.mxu1 %v87_v14  ;;  %s3177_s29 = sld [smem:[#allocation7_spill]]  ;;  %vm96_vm0 = vcmask 523264   ;;  %v75_v19 = vld [vmem:[%s3176_s23 + $0x28] sm:$0xff] }
  0x1d   :  { %111 = vmatpush.msra.mxu0 %v77_v15  ;;  %v74_v20 = vld [vmem:[%s3176_s23 + $0x20] sm:$0xff]  ;;  %v73_v21 = vld [vmem:[%s3176_s23 + $0x18] sm:$0xff]  ;;  %v72_v22 = vld [vmem:[%s3176_s23 + $0x10] sm:$0xff]  ;;  %s3178_s1 = sld [smem:[#allocation9_spill]]  ;;  %vm151_vm1 = vcmask 261120   ;;  %v2356_v32 = vmov 32.0  }
  0x1e   :  { %141 = vmatpush.msra.mxu1 %v86_v16  ;;  %v71_v23 = vld [vmem:[%s3176_s23 + $0x8] sm:$0xff]  ;;  %v70_v24 = vld [vmem:[%s3176_s23] sm:$0xff]  ;;  %2226 = vrcp.f32 %v2356_v32  ;;  %s3179_s24 = sld [smem:[#allocation10_spill]]  ;;  %v273_v1 = vld [vmem:[%s3132_s7 + $0x18] sm:$0xff]  ;;  %s3161_s27 = smov 64   ;;  %vm311_vm9 = vcmask 64512  }
  0x1f   :  { %112 = vmatpush.msra.mxu0 %v76_v17  ;;  %s3180_s3 = sld [smem:[#allocation11_spill]]  ;;  %296 = vmatpush.msra.mxu2 %v273_v1  ;;  %v272_v2 = vld [vmem:[%s3132_s7 + $0x10] sm:$0xff]  ;;  %v271_v3 = vld [vmem:[%s3132_s7 + $0x8] sm:$0xff]  ;;  %v270_v4 = vld [vmem:[%s3132_s7] sm:$0xff]  ;;  %s2358_s28 = smov 96   ;;  %vm355_vm10 = vcmask 1044480  }
  0x20   :  { %v2600_v14 = vld [vmem:[%s3130_s5] ss:$0 sm:$0xff]  ;;  %s2359_s4 = smov 120   ;;  %vm337_vm11 = vcmask 36864   ;;  %s2360_s22 = smov 88   ;;  %vm155_vm12 = vcmask 254976  }
  0x21   :  { %113 = vmatpush.msra.mxu0 %v75_v19  ;;  %297 = vmatpush.msra.mxu2 %v272_v2  ;;  %v2605_v17 = vld [vmem:[%s3131_s6] ss:$0 sm:$0xff]  ;;  %s3167_s2 = smov 72   ;;  %s2362_s25 = smov 80   ;;  %vm351_vm13 = vcmask 39936   ;;  %vm3170_vm14 = vcmask 61440  }
  0x22   :  { %v67_v18 = vld [vmem:[%s3177_s29 + $0x8] sm:$0xff]  ;;  %v66_v25 = vld [vmem:[%s3177_s29] sm:$0xff]  ;;  %s3151_s26 = smov 40   ;;  %s3155_s30 = smov 56  }
  0x23   :  { %2075 = vmatmul.msk.f32.vlgmr.msra.gmra.mxu1 %vm96_vm0, %v67_v18  ;;  %114 = vmatpush.msra.mxu0 %v74_v20  ;;  %v94_v26 = vld [vmem:[%s3178_s1] sm:$0xff]  ;;  %s3153_s0 = smov 48   ;;  %s3149_s21 = smov 8  }
  0x24   :  { %v2227_v33 = vpop.eup %2226  ;;  %v2568_v53 = vld [vmem:[%s3179_s24] ss:$0 sm:$0xff]  ;;  %298 = vmatpush.msra.mxu2 %v271_v3  ;;  %s3159_s23 = smov 16  }
  0x25   :  { %115 = vmatpush.msra.mxu0 %v73_v21  ;;  %v160_v34 = vmul.f32 32.0, %v2227_v33  ;;  %vm164_vm2 = vweird.f32 %v2227_v33  ;;  %v2573_v56 = vld [vmem:[%s3180_s3] ss:$0 sm:$0xff]  ;;  %s2364_s3 = smov 112  }
  0x26   :  { %299 = vmatpush.msra.mxu2 %v270_v4  ;;  %v2613_v20 = vld [vmem:[%s3133_s8] ss:$0 sm:$0xff] }
  0x27   :  { %116 = vmatpush.msra.mxu0 %v72_v22  ;;  %v161_v35 = vsub.f32 1.0, %v160_v34 }
  0x29   :  { %117 = vmatpush.msra.mxu0 %v71_v23  ;;  %v162_v36 = vmul.f32 %v2227_v33, %v161_v35  ;;  %v95_v35 = vld [vmem:[%s3178_s1 + $0x8] sm:$0x3]  ;;  %s3157_s1 = smov 104  }
  0x2b   :  { %118 = vmatpush.msra.mxu0 %v70_v24  ;;  %v163_v37 = vadd.f32 %v2227_v33, %v162_v36 }
  0x2c   :  { %119 = vmatmul.f32.vlgmr.msra.gmra.mxu0 %v66_v25 }
  0x2d   :  { %v2560_v38 = vsel %vm164_vm2, %v2227_v33, %v163_v37 }
  0xa0   :  { %v143_v28 = vpop.f32.mrf.mxu1 }
  0xa9   :  { %v120_v27 = vpop.f32.mrf.mxu0 }
  0xaa   :  { %v121_v29 = vadd.f32 %v120_v27, %v94_v26  ;;  %v68_v26 = vld [vmem:[%s3177_s29 + $0x10] sm:$0x3]  ;;  %v69_v27 = vld [vmem:[%s3177_s29 + $0x18] sm:$0x3]  ;;  %s3165_s29 = smov 24  }
  0xab   :  { %122 = vmatmul.f32.gmra.mxu0 %v68_v26  ;;  %2076 = vmatmul.msk.f32.gmra.mxu1 %vm96_vm0, %v69_v27 }
  0xac   :  { %v144_v30 = vadd.f32 %v143_v28, %v121_v29 }
  0xae   :  { %v152_v31 = vsel %vm151_vm1, %v144_v30, 0.0 }
  0xaf   :  { %153 = vadd.xlane.f32.xlu0 %v152_v31 }
 0x122   :  { %v154_v39 = vpop.xlane.xlu0 %153 }
 0x123   :  { %v166_v40 = vmul.f32 %v2560_v38, %v154_v39 }
 0x125   :  { %v168_v41 = vsub.f32 %v144_v30, %v166_v40 }
 0x127   :  { %v170_v42 = vmul.f32 %v168_v41, %v168_v41 }
 0x128   :  { %v123_v36 = vpop.f32.mrf.mxu0  ;;  %v146_v39 = vpop.f32.mrf.mxu1 }
 0x129   :  { %v172_v43 = vsel %vm151_vm1, %v170_v42, 0.0  ;;  %v124_v37 = vadd.f32 %v123_v36, %v95_v35 }
 0x12a   :  { %173 = vadd.xlane.f32.xlu0 %v172_v43 }
 0x12b   :  { %v147_v40 = vadd.f32 %v146_v39, %v124_v37 }
 0x19d   :  { %v174_v44 = vpop.xlane.xlu0 %173 }
 0x19e   :  { %v178_v45 = vmul.f32 %v174_v44, %v2560_v38 }
 0x1a0   :  { %v180_v46 = vadd.f32 1e-05, %v178_v45 }
 0x1a2   :  { %2228 = vrsqrt.f32 %v180_v46  ;;  %vm188_vm4 = vweird.f32 %v180_v46 }
 0x1a8   :  { %v2229_v47 = vpop.eup %2228 }
 0x1a9   :  { %v183_v48 = vmul.f32 %v2229_v47, %v180_v46  ;;  %vm189_vm3 = vweird.f32 %v2229_v47 }
 0x1aa   :  { %vm190_vm5 = vmor %vm188_vm4, %vm189_vm3 }
 0x1ab   :  { %v184_v49 = vmul.f32 %v2229_v47, %v183_v48 }
 0x1ad   :  { %v185_v50 = vmul.f32 0.5, %v184_v49 }
 0x1af   :  { %v186_v51 = vsub.f32 1.5, %v185_v50 }
 0x1b1   :  { %v187_v52 = vmul.f32 %v2229_v47, %v186_v51 }
 0x1b3   :  { %v191_v54 = vsel %vm190_vm5, %v2229_v47, %v187_v52 }
 0x1b4   :  { %v202_v55 = vmul.f32 %v191_v54, %v168_v41  ;;  %v156_v41 = vsel %vm155_vm12, %v147_v40, 0.0 }
 0x1b6   :  { %v207_v57 = vmul.f32 %v2568_v53, %v202_v55 }
 0x1b8   :  { %v2577_v58 = vadd.f32 %v2573_v56, %v207_v57 }
 0x1ba   :  { %v216_v59 = vsel %vm151_vm1, %v2577_v58, 0.0 }
 0x1bb   :  { %217 = vadd.xlane.f32.xlu1 %v216_v59 }
 0x22e   :  { %v218_v60 = vpop.xlane.xlu1 %217 }
 0x22f   :  { %v222_v61 = vmul.f32 %v218_v60, %v2560_v38 }
 0x231   :  { %v224_v62 = vsub.f32 %v2577_v58, %v222_v61 }
 0x233   :  { %v226_v63 = vmul.f32 %v224_v62, %v224_v62 }
 0x235   :  { %v228_v0 = vsel %vm151_vm1, %v226_v63, 0.0 }
 0x236   :  { %229 = vadd.xlane.f32.xlu1 %v228_v0 }
 0x2a9   :  { %v230_v5 = vpop.xlane.xlu1 %229 }
 0x2aa   :  { %v234_v6 = vmul.f32 %v230_v5, %v2560_v38 }
 0x2ac   :  { %v236_v7 = vadd.f32 1e-05, %v234_v6 }
 0x2ae   :  { %2230 = vrsqrt.f32 %v236_v7  ;;  %vm244_vm7 = vweird.f32 %v236_v7 }
 0x2b4   :  { %v2231_v8 = vpop.eup %2230 }
 0x2b5   :  { %v239_v9 = vmul.f32 %v2231_v8, %v236_v7  ;;  %vm245_vm6 = vweird.f32 %v2231_v8 }
 0x2b6   :  { %vm246_vm8 = vmor %vm244_vm7, %vm245_vm6  ;;  %vm598_vm7 = vcmask 1042432  }
 0x2b7   :  { %v240_v10 = vmul.f32 %v2231_v8, %v239_v9 }
 0x2b9   :  { %v241_v11 = vmul.f32 0.5, %v240_v10 }
 0x2bb   :  { %v242_v12 = vsub.f32 1.5, %v241_v11 }
 0x2bd   :  { %v243_v13 = vmul.f32 %v2231_v8, %v242_v12 }
 0x2bf   :  { %v247_v15 = vsel %vm246_vm8, %v2231_v8, %v243_v13  ;;  %vm3169_vm8 = vcmask 127040  }
 0x2c0   :  { %v258_v16 = vmul.f32 %v247_v15, %v224_v62 }
 0x2c2   :  { %v263_v18 = vmul.f32 %v2600_v14, %v258_v16 }
 0x2c4   :  { %v268_v19 = vadd.f32 %v2605_v17, %v263_v18 }
 0x2c6   :  { %2077 = vmatmul.msk.f32.vlgmr.msra.gmra.mxu2 %vm151_vm1, %v268_v19 }
 0x349   :  { %v301_v21 = vpop.f32.mrf.mxu2 }
 0x34a   :  { %v2616_v22 = vadd.f32 %v2613_v20, %v301_v21 }
 0x34c   :  { %349 = vrot.lane.b32.xlu1 %v2616_v22, %s3161_s27  ;;  %309 = vrot.lane.b32.xlu2 %v2616_v22, %s2358_s28  ;;  %v2623_v23 = vmul.f32 0.35355338, %v2616_v22 }
 0x354   :  { %380 = vrot.lane.b32.xlu1 %v2623_v23, %s2359_s4 }
 0x3a6   :  { %v310_v24 = vpop.permute.xlu2 %309 }
 0x3a7   :  { %2079 = vmatpush.xpose.msk.msra.mxu3 %vm311_vm9, %v310_v24 }
 0x3aa   :  { %2080 = vmatmul.msk.f32.vlgmr.msra.gmra.mxu3 %vm311_vm9, %v2623_v23 }
 0x3be   :  { %v350_v25 = vpop.permute.xlu1 %349 }
 0x3bf   :  { %2081 = vmatpush.msk.msrb.mxu3 %vm355_vm10, %v350_v25 }
 0x3c6   :  { %v381_v46 = vpop.permute.xlu1 %380 }
 0x42d   :  { %v334_v28 = vpop.f32.mrf.mxu3 }
 0x42e   :  { %v338_v29 = vsel %vm337_vm11, %v334_v28, -inf }
 0x42f   :  { %339 = vmax.xlane.f32.xlu2 %v338_v29 }
 0x4a2   :  { %v340_v30 = vpop.xlane.xlu2 %339 }
 0x4a3   :  { %v341_v31 = vsub.f32 %v334_v28, %v340_v30 }
 0x4a5   :  { %v342_v32 = vmul.f32 1.442695, %v341_v31 }
 0x4a7   :  { %2232 = vpow2.f32 %v342_v32 }
 0x4ad   :  { %v2233_v33 = vpop.eup %2232 }
 0x4ae   :  { %v344_v34 = vsel %vm337_vm11, %v2233_v33, 0.0 }
 0x4af   :  { %345 = vadd.xlane.f32.xlu0 %v344_v34 }
 0x4c3   :  { %382 = vrot.lane.b32.xlu0 %v2616_v22, %s2360_s22 }
 0x4ed   :  { %157 = vadd.xlane.f32.xlu0 %v156_v41 }
 0x501   :  { %526 = vrot.lane.b32.xlu0 %v2616_v22, %s3167_s2 }
 0x509   :  { %454 = vrot.lane.b32.xlu0 %v2616_v22, %s2362_s25 }
 0x522   :  { %v346_v42 = vpop.xlane.xlu0 %345 }
 0x523   :  { %2234 = vrcp.f32 %v346_v42 }
 0x529   :  { %v2235_v43 = vpop.eup %2234 }
 0x52a   :  { %v348_v44 = vmul.f32 %v2235_v43, %v2233_v33 }
 0x52c   :  { %2082 = vmatmul.msk.f32.vlgmr.msrb.gmra.mxu3 %vm351_vm13, %v348_v44 }
 0x535   :  { %v383_v45 = vpop.permute.xlu0 %382 }
 0x536   :  { %2083 = vmatpush.xpose.msk.msra.mxu3 %vm311_vm9, %v383_v45 }
 0x539   :  { %2084 = vmatmul.msk.f32.vlgmr.msra.gmra.mxu3 %vm311_vm9, %v381_v46  ;;  %v603_v46 = vrot.slane %v2616_v22, 5 }
 0x560   :  { %v158_v47 = vpop.xlane.xlu0 %157 }
 0x561   :  { %v167_v48 = vmul.f32 %v2560_v38, %v158_v47 }
 0x563   :  { %v169_v49 = vsub.f32 %v147_v40, %v167_v48 }
 0x565   :  { %v171_v50 = vmul.f32 %v169_v49, %v169_v49 }
 0x567   :  { %v175_v51 = vsel %vm155_vm12, %v171_v50, 0.0  ;;  %v599_v50 = vrot.slane %v2623_v23, 5 }
 0x568   :  { %176 = vadd.xlane.f32.xlu1 %v175_v51 }
 0x573   :  { %v2655_v52 = vpop.permute.xlu0 %526 }
 0x57b   :  { %v455_v54 = vpop.permute.xlu0 %454 }
 0x57c   :  { %2087 = vmatpush.xpose.msk.msrb.mxu3 %vm311_vm9, %v455_v54 }
 0x581   :  { %524 = vrot.lane.b32.xlu1 %v2623_v23, %s3157_s1 }
 0x589   :  { %452 = vrot.lane.b32.xlu1 %v2623_v23, %s2364_s3 }
 0x591   :  { %563 = vrot.lane.b32.xlu1 %v2616_v22, %s3151_s26 }
 0x5af   :  { %v375_v55 = vpop.f32.mrf.mxu3 }
 0x5b0   :  { %379 = vst.msk [vmem:[#allocation2] sm:$0x1f] %vm3170_vm14, %v375_v55 }
 0x5bc   :  { %v405_v10 = vpop.f32.mrf.mxu3 }
 0x5bd   :  { %v408_v11 = vsel %vm337_vm11, %v405_v10, -inf }
 0x5db   :  { %v177_v57 = vpop.xlane.xlu1 %176 }
 0x5dc   :  { %v179_v59 = vmul.f32 %v177_v57, %v2560_v38 }
 0x5de   :  { %v181_v60 = vadd.f32 1e-05, %v179_v59 }
 0x5e0   :  { %2236 = vrsqrt.f32 %v181_v60  ;;  %vm198_vm2 = vweird.f32 %v181_v60 }
 0x5e6   :  { %v2237_v61 = vpop.eup %2236 }
 0x5e7   :  { %v193_v62 = vmul.f32 %v2237_v61, %v181_v60  ;;  %vm199_vm15 = vweird.f32 %v2237_v61 }
 0x5e8   :  { %vm200_vm3 = vmor %vm198_vm2, %vm199_vm15  ;;  %vm3164_vm15 = vcmask 192640   ;;  %vm3163_vm2 = vcmask 258240  }
 0x5e9   :  { %v194_v63 = vmul.f32 %v2237_v61, %v193_v62 }
 0x5eb   :  { %v195_v0 = vmul.f32 0.5, %v194_v63 }
 0x5ed   :  { %v196_v1 = vsub.f32 1.5, %v195_v0 }
 0x5ef   :  { %v197_v2 = vmul.f32 %v2237_v61, %v196_v1 }
 0x5f1   :  { %v201_v3 = vsel %vm200_vm3, %v2237_v61, %v197_v2 }
 0x5f2   :  { %v203_v4 = vmul.f32 %v201_v3, %v169_v49 }
 0x5f3   :  { %v525_v5 = vpop.permute.xlu1 %524 }
 0x5f4   :  { %v208_v6 = vmul.f32 %v2568_v53, %v203_v4 }
 0x5f6   :  { %v2668_v7 = vadd.f32 %v2573_v56, %v208_v6 }
 0x5f8   :  { %v219_v8 = vsel %vm155_vm12, %v2668_v7, 0.0 }
 0x5f9   :  { %220 = vadd.xlane.f32.xlu2 %v219_v8 }
 0x5fb   :  { %v453_v9 = vpop.permute.xlu1 %452 }
 0x5fc   :  { %2088 = vmatmul.msk.f32.vlgmr.msrb.gmra.mxu3 %vm311_vm9, %v453_v9 }
 0x601   :  { %409 = vmax.xlane.f32.xlu2 %v408_v11 }
 0x603   :  { %v564_v12 = vpop.permute.xlu1 %563 }
 0x604   :  { %2093 = vmatpush.msk.msra.mxu3 %vm355_vm10, %v564_v12 }
 0x66c   :  { %v221_v13 = vpop.xlane.xlu2 %220 }
 0x66d   :  { %v223_v53 = vmul.f32 %v221_v13, %v2560_v38 }
 0x66f   :  { %v225_v56 = vsub.f32 %v2668_v7, %v223_v53 }
 0x671   :  { %v227_v15 = vmul.f32 %v225_v56, %v225_v56 }
 0x673   :  { %v231_v16 = vsel %vm155_vm12, %v227_v15, 0.0 }
 0x674   :  { %232 = vadd.xlane.f32.xlu2 %v231_v16  ;;  %v410_v18 = vpop.xlane.xlu2 %409 }
 0x675   :  { %v411_v19 = vsub.f32 %v405_v10, %v410_v18 }
 0x677   :  { %v412_v21 = vmul.f32 1.442695, %v411_v19 }
 0x679   :  { %2238 = vpow2.f32 %v412_v21 }
 0x67f   :  { %v2239_v24 = vpop.eup %2238  ;;  %v477_v54 = vpop.f32.mrf.mxu3 }
 0x680   :  { %v414_v25 = vsel %vm337_vm11, %v2239_v24, 0.0  ;;  %v480_v55 = vsel %vm337_vm11, %v477_v54, -inf }
 0x681   :  { %415 = vadd.xlane.f32.xlu2 %v414_v25 }
 0x699   :  { %419 = vrot.lane.b32.xlu2 %v2616_v22, %s3155_s30 }
 0x6e7   :  { %v233_v26 = vpop.xlane.xlu2 %232 }
 0x6e8   :  { %v235_v27 = vmul.f32 %v233_v26, %v2560_v38 }
 0x6ea   :  { %v237_v28 = vadd.f32 1e-05, %v235_v27 }
 0x6ec   :  { %2240 = vrsqrt.f32 %v237_v28  ;;  %vm254_vm5 = vweird.f32 %v237_v28 }
 0x6f2   :  { %v2241_v29 = vpop.eup %2240 }
 0x6f3   :  { %v249_v30 = vmul.f32 %v2241_v29, %v237_v28  ;;  %vm255_vm4 = vweird.f32 %v2241_v29 }
 0x6f4   :  { %v416_v31 = vpop.xlane.xlu2 %415  ;;  %vm256_vm6 = vmor %vm254_vm5, %vm255_vm4 }
 0x6f5   :  { %v250_v32 = vmul.f32 %v2241_v29, %v249_v30  ;;  %2242 = vrcp.f32 %v416_v31 }
 0x6f7   :  { %v251_v33 = vmul.f32 0.5, %v250_v32 }
 0x6f9   :  { %v252_v34 = vsub.f32 1.5, %v251_v33 }
 0x6fb   :  { %v253_v35 = vmul.f32 %v2241_v29, %v252_v34  ;;  %v2243_v42 = vpop.eup %2242 }
 0x6fc   :  { %v420_v36 = vpop.permute.xlu2 %419  ;;  %v418_v43 = vmul.f32 %v2243_v42, %v2239_v24 }
 0x6fd   :  { %v257_v37 = vsel %vm256_vm6, %v2241_v29, %v253_v35  ;;  %2085 = vmatpush.msk.msrb.mxu2 %vm355_vm10, %v420_v36 }
 0x6fe   :  { %v259_v39 = vmul.f32 %v257_v37, %v225_v56 }
 0x6ff   :  { %2091 = vmatpush.xpose.msk.msra.mxu2 %vm311_vm9, %v2655_v52 }
 0x700   :  { %v264_v40 = vmul.f32 %v2600_v14, %v259_v39 }
 0x702   :  { %v269_v41 = vadd.f32 %v2605_v17, %v264_v40 }
 0x704   :  { %2078 = vmatmul.msk.f32.gmra.mxu2 %vm151_vm1, %v269_v41 }
 0x70c   :  { %2086 = vmatmul.msk.f32.vlgmr.msrb.gmra.mxu2 %vm351_vm13, %v418_v43 }
 0x714   :  { %2092 = vmatmul.msk.f32.vlgmr.msra.gmra.mxu2 %vm311_vm9, %v525_v5 }
 0x787   :  { %v304_v44 = vpop.f32.mrf.mxu2 }
 0x788   :  { %v305_v45 = vadd.f32 %v2613_v20, %v304_v44 }
 0x78a   :  { %v604_v47 = vrot.slane %v305_v45, 5  ;;  %v596_v48 = vmul.f32 0.35355338, %v305_v45 }
 0x78c   :  { %v2693_v14 = vsel %vm598_vm7, %v603_v46, %v604_v47  ;;  %v600_v49 = vrot.slane %v596_v48, 5 }
 0x78d   :  { %673 = vrot.lane.b32.xlu1 %v2693_v14, %s2360_s22 }
 0x78e   :  { %v601_v51 = vsel %vm598_vm7, %v599_v50, %v600_v49 }
 0x78f   :  { %v2697_v17 = vpop.f32.mrf.mxu2 }
 0x795   :  { %671 = vrot.lane.b32.xlu1 %v601_v51, %s2359_s4 }
 0x797   :  { %v549_v20 = vpop.f32.mrf.mxu2 }
 0x798   :  { %v552_v52 = vsel %vm337_vm11, %v549_v20, -inf }
 0x799   :  { %553 = vmax.xlane.f32.xlu2 %v552_v52 }
 0x7a1   :  { %481 = vmax.xlane.f32.xlu2 %v480_v55 }
 0x7ff   :  { %v674_v57 = vpop.permute.xlu1 %673 }
 0x800   :  { %2099 = vmatpush.xpose.msk.msrb.mxu3 %vm311_vm9, %v674_v57 }
 0x807   :  { %v672_v10 = vpop.permute.xlu1 %671 }
 0x80c   :  { %v554_v59 = vpop.xlane.xlu2 %553 }
 0x80d   :  { %v555_v60 = vsub.f32 %v549_v20, %v554_v59 }
 0x80f   :  { %v556_v61 = vmul.f32 1.442695, %v555_v60 }
 0x811   :  { %2244 = vpow2.f32 %v556_v61 }
 0x814   :  { %v482_v23 = vpop.xlane.xlu2 %481 }
 0x815   :  { %v483_v62 = vsub.f32 %v477_v54, %v482_v23 }
 0x817   :  { %v2245_v63 = vpop.eup %2244  ;;  %v484_v0 = vmul.f32 1.442695, %v483_v62 }
 0x818   :  { %v558_v1 = vsel %vm337_vm11, %v2245_v63, 0.0 }
 0x819   :  { %2246 = vpow2.f32 %v484_v0  ;;  %559 = vadd.xlane.f32.xlu0 %v558_v1 }
 0x81f   :  { %v2247_v2 = vpop.eup %2246 }
 0x820   :  { %v486_v3 = vsel %vm337_vm11, %v2247_v2, 0.0 }
 0x821   :  { %487 = vadd.xlane.f32.xlu2 %v486_v3 }
 0x82d   :  { %491 = vrot.lane.b32.xlu0 %v2616_v22, %s3153_s0 }
 0x839   :  { %606 = vrot.lane.b32.xlu2 %v2693_v14, %s2358_s28 }
 0x841   :  { %710 = vrot.lane.b32.xlu2 %v2693_v14, %s3155_s30 }
 0x849   :  { %815 = vrot.lane.b32.xlu2 %v2693_v14, %s3167_s2 }
 0x851   :  { %742 = vrot.lane.b32.xlu2 %v601_v51, %s2364_s3 }
 0x859   :  { %813 = vrot.lane.b32.xlu2 %v601_v51, %s3157_s1  ;;  %s3189_s1 = smov 24  }
 0x88c   :  { %v560_v4 = vpop.xlane.xlu0 %559 }
 0x88d   :  { %2248 = vrcp.f32 %v560_v4 }
 0x893   :  { %v2249_v5 = vpop.eup %2248 }
 0x894   :  { %v562_v6 = vmul.f32 %v2249_v5, %v2245_v63  ;;  %v488_v8 = vpop.xlane.xlu2 %487 }
 0x895   :  { %2250 = vrcp.f32 %v488_v8 }
 0x896   :  { %2094 = vmatmul.msk.f32.vlgmr.msra.gmra.mxu3 %vm351_vm13, %v562_v6 }
 0x89b   :  { %v2251_v22 = vpop.eup %2250 }
 0x89c   :  { %v607_v9 = vpop.permute.xlu2 %606  ;;  %v490_v12 = vmul.f32 %v2251_v22, %v2247_v2 }
 0x89e   :  { %2100 = vmatmul.msk.f32.vlgmr.msrb.gmra.mxu3 %vm311_vm9, %v672_v10  ;;  %v889_v10 = vld [vmem:[%s3134_s9 + $0x18] sm:$0xff] }
 0x89f   :  { %v492_v11 = vpop.permute.xlu0 %491 }
 0x8a0   :  { %2089 = vmatpush.msk.msrb.mxu1 %vm355_vm10, %v492_v11  ;;  %v888_v11 = vld [vmem:[%s3134_s9 + $0x10] sm:$0xff] }
 0x8a1   :  { %2090 = vmatmul.msk.f32.vlgmr.msrb.gmra.mxu1 %vm351_vm13, %v490_v12 }
 0x8a2   :  { %2095 = vmatpush.xpose.msk.msra.mxu1 %vm311_vm9, %v607_v9 }
 0x8a4   :  { %v711_v13 = vpop.permute.xlu2 %710 }
 0x8a6   :  { %2101 = vmatpush.msk.msrb.mxu1 %vm355_vm10, %v711_v13  ;;  %v887_v13 = vld [vmem:[%s3134_s9 + $0x8] sm:$0xff] }
 0x8a9   :  { %2096 = vmatmul.msk.f32.vlgmr.msra.gmra.mxu1 %vm311_vm9, %v601_v51 }
 0x8ac   :  { %v816_v53 = vpop.permute.xlu2 %815 }
 0x8ad   :  { %2107 = vmatpush.xpose.msk.msra.mxu3 %vm311_vm9, %v816_v53  ;;  %v886_v53 = vld [vmem:[%s3134_s9] sm:$0xff] }
 0x8b4   :  { %v743_v56 = vpop.permute.xlu2 %742 }
 0x8bc   :  { %v814_v15 = vpop.permute.xlu2 %813 }
 0x8bd   :  { %2108 = vmatmul.msk.f32.vlgmr.msra.gmra.mxu3 %vm311_vm9, %v814_v15 }
 0x919   :  { %v2726_v16 = vpop.f32.mrf.mxu3 }
 0x91e   :  { %v2732_v25 = vpop.f32.mrf.mxu1 }
 0x921   :  { %v696_v18 = vpop.f32.mrf.mxu3 }
 0x922   :  { %v699_v19 = vsel %vm337_vm11, %v696_v18, -inf }
 0x923   :  { %700 = vmax.xlane.f32.xlu1 %v699_v19 }
 0x926   :  { %v629_v26 = vpop.f32.mrf.mxu1 }
 0x927   :  { %v632_v27 = vsel %vm337_vm11, %v629_v26, -inf }
 0x93c   :  { %744 = vrot.lane.b32.xlu1 %v2693_v14, %s2362_s25 }
 0x940   :  { %v838_v21 = vpop.f32.mrf.mxu3 }
 0x941   :  { %v841_v24 = vsel %vm337_vm11, %v838_v21, -inf }
 0x942   :  { %842 = vmax.xlane.f32.xlu2 %v841_v24 }
 0x95a   :  { %781 = vrot.lane.b32.xlu2 %v2693_v14, %s3153_s0  ;;  %s2371_s0 = smov [#allocation4]  }
 0x95b   :  { %s2064_s2 = sshll.u32 %s2371_s0, 4  ;;  %s2065_s2 = int_to_ptr.vmem [resolvable:$true] %s2064_s2 }
 0x966   :  { %633 = vmax.xlane.f32.xlu1 %v632_v27 }
 0x996   :  { %v701_v28 = vpop.xlane.xlu1 %700 }
 0x997   :  { %v702_v29 = vsub.f32 %v696_v18, %v701_v28  ;;  %v2211_v18 = vld [vmem:[%s3135_s10] ss:$0 sm:$0xff] }
 0x999   :  { %v703_v30 = vmul.f32 1.442695, %v702_v29 }
 0x99b   :  { %2252 = vpow2.f32 %v703_v30 }
 0x9a1   :  { %v2253_v31 = vpop.eup %2252 }
 0x9a2   :  { %v705_v32 = vsel %vm337_vm11, %v2253_v31, 0.0 }
 0x9a3   :  { %706 = vadd.xlane.f32.xlu0 %v705_v32 }
 0x9ae   :  { %v745_v33 = vpop.permute.xlu1 %744 }
 0x9af   :  { %2103 = vmatpush.xpose.msk.msra.mxu1 %vm311_vm9, %v745_v33 }
 0x9b5   :  { %v843_v34 = vpop.xlane.xlu2 %842 }
 0x9b6   :  { %v844_v35 = vsub.f32 %v838_v21, %v843_v34 }
 0x9b8   :  { %v845_v36 = vmul.f32 1.442695, %v844_v35 }
 0x9ba   :  { %2254 = vpow2.f32 %v845_v36 }
 0x9bd   :  { %v782_v62 = vpop.permute.xlu2 %781 }
 0x9c0   :  { %v2255_v37 = vpop.eup %2254 }
 0x9c1   :  { %v847_v39 = vsel %vm337_vm11, %v2255_v37, 0.0 }
 0x9c2   :  { %848 = vadd.xlane.f32.xlu1 %v847_v39  ;;  %v984_v39 = vld [vmem:[%s3138_s13 + $0x18] sm:$0xff] }
 0x9d9   :  { %v634_v40 = vpop.xlane.xlu1 %633 }
 0x9da   :  { %v635_v41 = vsub.f32 %v629_v26, %v634_v40  ;;  %v983_v40 = vld [vmem:[%s3138_s13 + $0x10] sm:$0xff] }
 0x9db   :  { %447 = vrot.lane.b32.xlu1 %v2697_v17, %s3149_s21 }
 0x9dc   :  { %v636_v42 = vmul.f32 1.442695, %v635_v41  ;;  %v982_v41 = vld [vmem:[%s3138_s13 + $0x8] sm:$0xff] }
 0x9de   :  { %2256 = vpow2.f32 %v636_v42  ;;  %v981_v42 = vld [vmem:[%s3138_s13] sm:$0xff] }
 0x9e4   :  { %v2257_v43 = vpop.eup %2256 }
 0x9e5   :  { %v638_v44 = vsel %vm337_vm11, %v2257_v43, 0.0 }
 0x9e6   :  { %639 = vadd.xlane.f32.xlu0 %v638_v44 }
 0xa16   :  { %v707_v45 = vpop.xlane.xlu0 %706 }
 0xa17   :  { %2258 = vrcp.f32 %v707_v45 }
 0xa1d   :  { %v2259_v46 = vpop.eup %2258 }
 0xa1e   :  { %v709_v47 = vmul.f32 %v2259_v46, %v2253_v31 }
 0xa20   :  { %2102 = vmatmul.msk.f32.vlgmr.msrb.gmra.mxu1 %vm351_vm13, %v709_v47 }
 0xa21   :  { %912 = vmatpush.msrb.mxu1 %v889_v10  ;;  %v1063_v10 = vld [vmem:[%s3140_s15 + $0x18] sm:$0xff] }
 0xa23   :  { %913 = vmatpush.msrb.mxu1 %v888_v11  ;;  %v2214_v11 = vld [vmem:[%s3139_s14] ss:$0 sm:$0xff] }
 0xa25   :  { %914 = vmatpush.msrb.mxu1 %v887_v13 }
 0xa27   :  { %915 = vmatpush.msrb.mxu1 %v886_v53  ;;  %v1061_v53 = vld [vmem:[%s3140_s15 + $0x8] sm:$0xff] }
 0xa28   :  { %2104 = vmatmul.msk.f32.vlgmr.msra.gmra.mxu1 %vm311_vm9, %v743_v56 }
 0xa35   :  { %v849_v48 = vpop.xlane.xlu1 %848 }
 0xa4d   :  { %v448_v49 = vpop.permute.xlu1 %447 }
 0xa4e   :  { %451 = vst.msk [vmem:[#allocation2] sm:$0x1f] %vm3169_vm8, %v448_v49 }
 0xa59   :  { %v640_v20 = vpop.xlane.xlu0 %639 }
 0xa9d   :  { %v734_v17 = vpop.f32.mrf.mxu1 }
 0xaa5   :  { %v767_v50 = vpop.f32.mrf.mxu1 }
 0xaa6   :  { %v770_v51 = vsel %vm337_vm11, %v767_v50, -inf }
 0xaa7   :  { %771 = vmax.xlane.f32.xlu0 %v770_v51 }
 0xabb   :  { %643 = vrot.lane.b32.xlu0 %v2693_v14, %s3161_s27 }
 0xb1a   :  { %v772_v52 = vpop.xlane.xlu0 %771 }
 0xb1b   :  { %v773_v54 = vsub.f32 %v767_v50, %v772_v52 }
 0xb1d   :  { %v774_v55 = vmul.f32 1.442695, %v773_v54 }
 0xb1f   :  { %2260 = vpow2.f32 %v774_v55 }
 0xb20   :  { %2262 = vrcp.f32 %v640_v20 }
 0xb25   :  { %v2261_v57 = vpop.eup %2260 }
 0xb26   :  { %v776_v59 = vsel %vm337_vm11, %v2261_v57, 0.0  ;;  %v2263_v60 = vpop.eup %2262 }
 0xb27   :  { %777 = vadd.xlane.f32.xlu0 %v776_v59  ;;  %v642_v61 = vmul.f32 %v2263_v60, %v2257_v43 }
 0xb2d   :  { %v644_v23 = vpop.permute.xlu0 %643 }
 0xb2e   :  { %2097 = vmatpush.msk.msrb.mxu2 %vm355_vm10, %v644_v23  ;;  %v2213_v23 = vld [vmem:[%s3137_s12] ss:$0 sm:$0xff] }
 0xb2f   :  { %2098 = vmatmul.msk.f32.vlgmr.msrb.gmra.mxu2 %vm351_vm13, %v642_v61 }
 0xb30   :  { %2105 = vmatpush.msk.msra.mxu2 %vm355_vm10, %v782_v62 }
 0xb32   :  { %1007 = vmatpush.msrb.mxu2 %v984_v39 }
 0xb34   :  { %1008 = vmatpush.msrb.mxu2 %v983_v40 }
 0xb36   :  { %1009 = vmatpush.msrb.mxu2 %v982_v41 }
 0xb38   :  { %1010 = vmatpush.msrb.mxu2 %v981_v42 }
 0xb3b   :  { %852 = vrot.lane.b32.xlu0 %v2693_v14, %s3151_s26  ;;  %s3191_s26 = smov 16  }
 0xb43   :  { %738 = vrot.lane.b32.xlu0 %v734_v17, %s3149_s21  ;;  %s2066_s21 = sshll.u32 %s3145_s20, 4  ;;  %s2067_s21 = int_to_ptr.hbm [resolvable:$true] %s2066_s21 }
 0xb4b   :  { %519 = vrot.lane.b32.xlu0 %v2732_v25, %s3159_s23 }
 0xb53   :  { %591 = vrot.lane.b32.xlu0 %v2726_v16, %s3165_s29 }
 0xb9a   :  { %v778_v63 = vpop.xlane.xlu0 %777 }
 0xb9b   :  { %2264 = vrcp.f32 %v778_v63 }
 0xb9c   :  { %2266 = vrcp.f32 %v849_v48 }
 0xba1   :  { %v2265_v0 = vpop.eup %2264 }
 0xba2   :  { %v780_v1 = vmul.f32 %v2265_v0, %v2261_v57  ;;  %v2267_v2 = vpop.eup %2266  ;;  %v2212_v57 = vld [vmem:[%s3136_s11] ss:$0 sm:$0xff] }
 0xba3   :  { %v851_v14 = vmul.f32 %v2267_v2, %v2255_v37 }
 0xba4   :  { %2106 = vmatmul.msk.f32.vlgmr.msra.gmra.mxu2 %vm351_vm13, %v780_v1 }
 0xbad   :  { %v853_v3 = vpop.permute.xlu0 %852 }
 0xbae   :  { %2109 = vmatpush.msk.msrb.mxu0 %vm355_vm10, %v853_v3 }
 0xbaf   :  { %2110 = vmatmul.msk.f32.vlgmr.msrb.gmra.mxu0 %vm351_vm13, %v851_v14 }
 0xbb2   :  { %v667_v4 = vpop.f32.mrf.mxu2 }
 0xbb3   :  { %670 = vst.msk [vmem:[#allocation2 + $0x5] sm:$0x1f] %vm3170_vm14, %v667_v4 }
 0xbb5   :  { %v739_v5 = vpop.permute.xlu0 %738 }
 0xbb6   :  { %741 = vst.msk [vmem:[#allocation2 + $0x5] sm:$0x1f] %vm3169_vm8, %v739_v5 }
 0xbbd   :  { %v520_v6 = vpop.permute.xlu0 %519 }
 0xbbe   :  { %523 = vst.msk [vmem:[#allocation2] sm:$0x1f] %vm3164_vm15, %v520_v6  ;;  %v1067_v6 = vld [vmem:[%s3140_s15 + $0x38] sm:$0xff] }
 0xbbf   :  { %1086 = vmatpush.msrb.mxu3 %v1067_v6  ;;  %v2123_v6 = vld [vmem:[%s3132_s7 + $0x30] sm:$0xff] }
 0xbc5   :  { %v592_v8 = vpop.permute.xlu0 %591 }
 0xbc6   :  { %595 = vst.msk [vmem:[#allocation2] sm:$0x1f] %vm3163_vm2, %v592_v8  ;;  %v1066_v8 = vld [vmem:[%s3140_s15 + $0x30] sm:$0xff] }
 0xbc7   :  { %1087 = vmatpush.msrb.mxu3 %v1066_v8  ;;  %v2122_v8 = vld [vmem:[%s3132_s7 + $0x28] sm:$0xff] }
 0xc27   :  { %v805_v22 = vpop.f32.mrf.mxu2 }
 0xc28   :  { %809 = vrot.lane.b32.xlu2 %v805_v22, %s3159_s23  ;;  %v1065_v22 = vld [vmem:[%s3140_s15 + $0x28] sm:$0xff] }
 0xc29   :  { %1088 = vmatpush.msrb.mxu3 %v1065_v22  ;;  %v2121_v22 = vld [vmem:[%s3132_s7 + $0x20] sm:$0xff] }
 0xc2c   :  { %v876_v9 = vpop.f32.mrf.mxu0 }
 0xc2d   :  { %880 = vrot.lane.b32.xlu1 %v876_v9, %s3165_s29  ;;  %v1064_v9 = vld [vmem:[%s3140_s15 + $0x20] sm:$0xff] }
 0xc2e   :  { %1089 = vmatpush.msrb.mxu3 %v1064_v9 }
 0xc30   :  { %1090 = vmatpush.msrb.mxu3 %v1063_v10 }
 0xc82   :  { %v810_v12 = vpop.permute.xlu2 %809 }
 0xc83   :  { %812 = vst.msk [vmem:[#allocation2 + $0x5] sm:$0x1f] %vm3164_vm15, %v810_v12  ;;  %v1062_v12 = vld [vmem:[%s3140_s15 + $0x10] sm:$0xff] }
 0xc84   :  { %1091 = vmatpush.msrb.mxu3 %v1062_v12 }
 0xc86   :  { %1092 = vmatpush.msrb.mxu3 %v1061_v53 }
 0xc9f   :  { %v881_v56 = vpop.permute.xlu1 %880 }
 0xca0   :  { %883 = vst.msk [vmem:[#allocation2 + $0x5] sm:$0x1f] %vm3163_vm2, %v881_v56 }
 0xca7   :  { %v884_v15 = vld [vmem:[#allocation2] sm:$0xff]  ;;  %v885_v16 = vld [vmem:[#allocation2 + $0x8] sm:$0x3] }
 0xca8   :  { %2111 = vmatmul.msk.f32.vlgmr.msrb.gmra.mxu1 %vm151_vm1, %v884_v15  ;;  %v1060_v15 = vld [vmem:[%s3140_s15] sm:$0xff] }
 0xca9   :  { %1093 = vmatpush.msrb.mxu3 %v1060_v15 }
 0xcb0   :  { %2112 = vmatmul.msk.f32.gmra.mxu1 %vm151_vm1, %v885_v16 }
 0xd25   :  { %v917_v19 = vpop.f32.mrf.mxu1 }
 0xd26   :  { %v918_v21 = vadd.f32 %v2211_v18, %v917_v19 }
 0xd28   :  { %v2789_v24 = vadd.f32 %v918_v21, %v2577_v58 }
 0xd2a   :  { %v927_v25 = vsel %vm151_vm1, %v2789_v24, 0.0 }
 0xd2b   :  { %928 = vadd.xlane.f32.xlu2 %v927_v25 }
 0xd2d   :  { %v920_v26 = vpop.f32.mrf.mxu1 }
 0xd2e   :  { %v921_v27 = vadd.f32 %v2211_v18, %v920_v26 }
 0xd30   :  { %v2794_v28 = vadd.f32 %v921_v27, %v2668_v7 }
 0xd32   :  { %v930_v29 = vsel %vm155_vm12, %v2794_v28, 0.0 }
 0xd33   :  { %931 = vadd.xlane.f32.xlu1 %v930_v29 }
 0xd9e   :  { %v929_v30 = vpop.xlane.xlu2 %928 }
 0xd9f   :  { %v933_v31 = vmul.f32 %v929_v30, %v2560_v38 }
 0xda1   :  { %v935_v32 = vsub.f32 %v2789_v24, %v933_v31 }
 0xda3   :  { %v937_v58 = vmul.f32 %v935_v32, %v935_v32 }
 0xda5   :  { %v939_v33 = vsel %vm151_vm1, %v937_v58, 0.0 }
 0xda6   :  { %v932_v34 = vpop.xlane.xlu1 %931  ;;  %940 = vadd.xlane.f32.xlu0 %v939_v33 }
 0xda7   :  { %v934_v35 = vmul.f32 %v932_v34, %v2560_v38 }
 0xda9   :  { %v936_v36 = vsub.f32 %v2794_v28, %v934_v35 }
 0xdab   :  { %v938_v7 = vmul.f32 %v936_v36, %v936_v36 }
 0xdad   :  { %v942_v37 = vsel %vm155_vm12, %v938_v7, 0.0 }
 0xdae   :  { %943 = vadd.xlane.f32.xlu2 %v942_v37 }
 0xe19   :  { %v941_v43 = vpop.xlane.xlu0 %940 }
 0xe1a   :  { %v945_v44 = vmul.f32 %v941_v43, %v2560_v38 }
 0xe1c   :  { %v947_v45 = vadd.f32 1e-05, %v945_v44 }
 0xe1e   :  { %2268 = vrsqrt.f32 %v947_v45  ;;  %vm955_vm4 = vweird.f32 %v947_v45 }
 0xe21   :  { %v944_v46 = vpop.xlane.xlu2 %943 }
 0xe22   :  { %v946_v47 = vmul.f32 %v944_v46, %v2560_v38 }
 0xe24   :  { %v2269_v48 = vpop.eup %2268  ;;  %v948_v49 = vadd.f32 1e-05, %v946_v47 }
 0xe25   :  { %v950_v17 = vmul.f32 %v2269_v48, %v947_v45  ;;  %vm956_vm3 = vweird.f32 %v2269_v48 }
 0xe26   :  { %2270 = vrsqrt.f32 %v948_v49  ;;  %vm957_vm5 = vmor %vm955_vm4, %vm956_vm3  ;;  %vm965_vm2 = vweird.f32 %v948_v49 }
 0xe27   :  { %v951_v50 = vmul.f32 %v2269_v48, %v950_v17 }
 0xe29   :  { %v952_v51 = vmul.f32 0.5, %v951_v50 }
 0xe2b   :  { %v953_v20 = vsub.f32 1.5, %v952_v51 }
 0xe2c   :  { %v2271_v52 = vpop.eup %2270 }
 0xe2d   :  { %v954_v54 = vmul.f32 %v2269_v48, %v953_v20  ;;  %v960_v55 = vmul.f32 %v2271_v52, %v948_v49  ;;  %vm966_vm6 = vweird.f32 %v2271_v52  ;;  %v2215_v20 = vld [vmem:[%s3141_s16] ss:$0 sm:$0xff] }
 0xe2e   :  { %vm967_vm15 = vmor %vm965_vm2, %vm966_vm6 }
 0xe2f   :  { %v958_v59 = vsel %vm957_vm5, %v2269_v48, %v954_v54  ;;  %v961_v60 = vmul.f32 %v2271_v52, %v960_v55 }
 0xe30   :  { %v969_v61 = vmul.f32 %v958_v59, %v935_v32 }
 0xe31   :  { %v962_v62 = vmul.f32 0.5, %v961_v60 }
 0xe32   :  { %v974_v63 = vmul.f32 %v2212_v57, %v969_v61 }
 0xe33   :  { %v963_v0 = vsub.f32 1.5, %v962_v62 }
 0xe34   :  { %v979_v1 = vadd.f32 %v2213_v23, %v974_v63 }
 0xe35   :  { %v964_v2 = vmul.f32 %v2271_v52, %v963_v0 }
 0xe36   :  { %2113 = vmatmul.msk.f32.vlgmr.msrb.gmra.mxu2 %vm151_vm1, %v979_v1 }
 0xe37   :  { %v968_v3 = vsel %vm967_vm15, %v2271_v52, %v964_v2 }
 0xe38   :  { %v970_v14 = vmul.f32 %v968_v3, %v936_v36 }
 0xe3a   :  { %v975_v4 = vmul.f32 %v2212_v57, %v970_v14 }
 0xe3c   :  { %v980_v5 = vadd.f32 %v2213_v23, %v975_v4 }
 0xe3e   :  { %2114 = vmatmul.msk.f32.gmra.mxu2 %vm151_vm1, %v980_v5  ;;  %v2124_v5 = vld [vmem:[%s3132_s7 + $0x38] sm:$0xff] }
 0xe3f   :  { %1189 = vmatpush.msra.mxu0 %v2124_v5 }
 0xe41   :  { %1190 = vmatpush.msra.mxu0 %v2123_v6 }
 0xe43   :  { %1191 = vmatpush.msra.mxu0 %v2122_v8 }
 0xe45   :  { %1192 = vmatpush.msra.mxu0 %v2121_v22 }
 0xeb9   :  { %v1012_v13 = vpop.f32.mrf.mxu2 }
 0xeba   :  { %v1013_v56 = vadd.f32 %v2214_v11, %v1012_v13 }
 0xebc   :  { %v2115_v16 = vmul.f32 -1.702, %v1013_v56 }
 0xebe   :  { %v1022_v18 = vmul.f32 1.442695, %v2115_v16 }
 0xec0   :  { %2272 = vpow2.f32 %v1022_v18 }
 0xec1   :  { %v1015_v19 = vpop.f32.mrf.mxu2 }
 0xec2   :  { %v1016_v21 = vadd.f32 %v2214_v11, %v1015_v19 }
 0xec4   :  { %v2116_v25 = vmul.f32 -1.702, %v1016_v21 }
 0xec6   :  { %v2273_v26 = vpop.eup %2272  ;;  %v1024_v27 = vmul.f32 1.442695, %v2116_v25 }
 0xec7   :  { %v1026_v29 = vadd.f32 1.0, %v2273_v26 }
 0xec8   :  { %2274 = vpow2.f32 %v1024_v27  ;;  %v2216_v27 = vld [vmem:[%s3130_s5 + $0x1] ss:$0 sm:$0xff] }
 0xec9   :  { %2276 = vrcp.f32 %v1026_v29  ;;  %v1039_v34 = vand.u32 2147483648, %v1026_v29  ;;  %v1037_v36 = vand.u32 2147483647, %v1026_v29  ;;  %vm1033_vm2 = vweird.f32 %v1026_v29 }
 0xecb   :  { %v1040_v39 = vor.u32 1.1754944e-38, %v1039_v34  ;;  %vm1038_vm4 = vcmp.eq.f32.partialorder %v1037_v36, 8.507059e+37 }
 0xece   :  { %v2275_v30 = vpop.eup %2274 }
 0xecf   :  { %v2277_v31 = vpop.eup %2276  ;;  %v1027_v32 = vadd.f32 1.0, %v2275_v30 }
 0xed0   :  { %v1029_v58 = vmul.f32 %v2277_v31, %v1026_v29  ;;  %vm1034_vm15 = vweird.f32 %v2277_v31 }
 0xed1   :  { %2278 = vrcp.f32 %v1027_v32  ;;  %vm1035_vm3 = vmor %vm1033_vm2, %vm1034_vm15  ;;  %v1054_v45 = vand.u32 2147483648, %v1027_v32  ;;  %v1052_v47 = vand.u32 2147483647, %v1027_v32  ;;  %vm1048_vm6 = vweird.f32 %v1027_v32 }
 0xed2   :  { %v1030_v33 = vsub.f32 1.0, %v1029_v58 }
 0xed3   :  { %v1055_v49 = vor.u32 1.1754944e-38, %v1054_v45  ;;  %vm1053_vm14 = vcmp.eq.f32.partialorder %v1052_v47, 8.507059e+37 }
 0xed4   :  { %v1031_v35 = vmul.f32 %v2277_v31, %v1030_v33 }
 0xed6   :  { %v1032_v7 = vadd.f32 %v2277_v31, %v1031_v35 }
 0xed7   :  { %v2279_v37 = vpop.eup %2278 }
 0xed8   :  { %v1036_v40 = vsel %vm1035_vm3, %v2277_v31, %v1032_v7  ;;  %v1044_v41 = vmul.f32 %v2279_v37, %v1027_v32  ;;  %vm1049_vm5 = vweird.f32 %v2279_v37  ;;  %v2217_v32 = vld [vmem:[%s3131_s6 + $0x1] ss:$0 sm:$0xff]  ;;  %s3181_s6 = smov 72  }
 0xed9   :  { %v1041_v42 = vsel %vm1038_vm4, %v1040_v39, %v1036_v40  ;;  %vm1050_vm8 = vmor %vm1048_vm6, %vm1049_vm5  ;;  %vm3195_vm5 = vcmask 258240  }
 0xeda   :  { %v1058_v43 = vmul.f32 %v1041_v42, %v1013_v56  ;;  %v1045_v44 = vsub.f32 1.0, %v1044_v41  ;;  %v2218_v41 = vld [vmem:[%s3133_s8 + $0x1] ss:$0 sm:$0xff]  ;;  %s3182_s8 = smov 64  }
 0xedc   :  { %v1046_v46 = vmul.f32 %v2279_v37, %v1045_v44  ;;  %2117 = vmatmul.msk.f32.vlgmr.msrb.gmra.mxu3 %vm96_vm0, %v1058_v43 }
 0xede   :  { %v1047_v48 = vadd.f32 %v2279_v37, %v1046_v46 }
 0xee0   :  { %v1051_v17 = vsel %vm1050_vm8, %v2279_v37, %v1047_v48 }
 0xee1   :  { %v1056_v50 = vsel %vm1053_vm14, %v1055_v49, %v1051_v17 }
 0xee2   :  { %v1059_v51 = vmul.f32 %v1056_v50, %v1016_v21 }
 0xee4   :  { %2118 = vmatmul.msk.f32.gmra.mxu3 %vm96_vm0, %v1059_v51 }
 0xf5f   :  { %v1095_v52 = vpop.f32.mrf.mxu3 }
 0xf60   :  { %v1096_v54 = vadd.f32 %v2215_v20, %v1095_v52 }
 0xf62   :  { %v2859_v55 = vadd.f32 %v1096_v54, %v2789_v24 }
 0xf64   :  { %v1107_v57 = vsel %vm151_vm1, %v2859_v55, 0.0 }
 0xf65   :  { %1108 = vadd.xlane.f32.xlu0 %v1107_v57 }
 0xf67   :  { %v1098_v59 = vpop.f32.mrf.mxu3 }
 0xf68   :  { %v1099_v60 = vadd.f32 %v2215_v20, %v1098_v59 }
 0xf6a   :  { %v2864_v61 = vadd.f32 %v1099_v60, %v2794_v28 }
 0xf6c   :  { %v1110_v23 = vsel %vm155_vm12, %v2864_v61, 0.0 }
 0xf6d   :  { %1111 = vadd.xlane.f32.xlu2 %v1110_v23 }
 0xfd8   :  { %v1109_v62 = vpop.xlane.xlu0 %1108 }
 0xfd9   :  { %v1113_v63 = vmul.f32 %v1109_v62, %v2560_v38 }
 0xfdb   :  { %v1115_v0 = vsub.f32 %v2859_v55, %v1113_v63 }
 0xfdd   :  { %v1117_v24 = vmul.f32 %v1115_v0, %v1115_v0 }
 0xfdf   :  { %v1119_v1 = vsel %vm151_vm1, %v1117_v24, 0.0 }
 0xfe0   :  { %1120 = vadd.xlane.f32.xlu1 %v1119_v1  ;;  %v1112_v2 = vpop.xlane.xlu2 %1111 }
 0xfe1   :  { %v1114_v3 = vmul.f32 %v1112_v2, %v2560_v38 }
 0xfe3   :  { %v1116_v14 = vsub.f32 %v2864_v61, %v1114_v3 }
 0xfe5   :  { %v1118_v28 = vmul.f32 %v1116_v14, %v1116_v14 }
 0xfe7   :  { %v1122_v4 = vsel %vm155_vm12, %v1118_v28, 0.0 }
 0xfe8   :  { %1123 = vadd.xlane.f32.xlu1 %v1122_v4 }
0x1053   :  { %v1121_v9 = vpop.xlane.xlu1 %1120 }
0x1054   :  { %v1125_v10 = vmul.f32 %v1121_v9, %v2560_v38 }
0x1056   :  { %v1127_v11 = vadd.f32 1e-05, %v1125_v10 }
0x1058   :  { %2280 = vrsqrt.f32 %v1127_v11  ;;  %vm1135_vm8 = vweird.f32 %v1127_v11 }
0x105b   :  { %v1124_v12 = vpop.xlane.xlu1 %1123 }
0x105c   :  { %v1126_v13 = vmul.f32 %v1124_v12, %v2560_v38 }
0x105e   :  { %v2281_v53 = vpop.eup %2280  ;;  %v1128_v56 = vadd.f32 1e-05, %v1126_v13 }
0x105f   :  { %v1130_v15 = vmul.f32 %v2281_v53, %v1127_v11  ;;  %vm1136_vm14 = vweird.f32 %v2281_v53 }
0x1060   :  { %2282 = vrsqrt.f32 %v1128_v56  ;;  %vm1137_vm15 = vmor %vm1135_vm8, %vm1136_vm14  ;;  %vm1145_vm3 = vweird.f32 %v1128_v56 }
0x1061   :  { %v1131_v16 = vmul.f32 %v2281_v53, %v1130_v15  ;;  %vm3197_vm14 = vmmov %vm3195_vm5 }
0x1063   :  { %v1132_v18 = vmul.f32 0.5, %v1131_v16 }
0x1065   :  { %v1133_v19 = vsub.f32 1.5, %v1132_v18 }
0x1066   :  { %v2283_v21 = vpop.eup %2282 }
0x1067   :  { %v1134_v25 = vmul.f32 %v2281_v53, %v1133_v19  ;;  %v1140_v26 = vmul.f32 %v2283_v21, %v1128_v56  ;;  %vm1146_vm2 = vweird.f32 %v2283_v21 }
0x1068   :  { %vm1147_vm4 = vmor %vm1145_vm3, %vm1146_vm2 }
0x1069   :  { %v1138_v29 = vsel %vm1137_vm15, %v2281_v53, %v1134_v25  ;;  %v1141_v30 = vmul.f32 %v2283_v21, %v1140_v26 }
0x106a   :  { %v1149_v31 = vmul.f32 %v1138_v29, %v1115_v0 }
0x106b   :  { %v1142_v58 = vmul.f32 0.5, %v1141_v30 }
0x106c   :  { %v1154_v33 = vmul.f32 %v2216_v27, %v1149_v31 }
0x106d   :  { %v1143_v34 = vsub.f32 1.5, %v1142_v58 }
0x106e   :  { %v1159_v35 = vadd.f32 %v2217_v32, %v1154_v33 }
0x106f   :  { %v1144_v36 = vmul.f32 %v2283_v21, %v1143_v34 }
0x1070   :  { %2126 = vmatmul.msk.f32.vlgmr.msra.gmra.mxu0 %vm151_vm1, %v1159_v35 }
0x1071   :  { %v1148_v7 = vsel %vm1147_vm4, %v2283_v21, %v1144_v36 }
0x1072   :  { %v1150_v37 = vmul.f32 %v1148_v7, %v1116_v14 }
0x1074   :  { %v1155_v39 = vmul.f32 %v2216_v27, %v1150_v37 }
0x1076   :  { %v1160_v40 = vadd.f32 %v2217_v32, %v1155_v39 }
0x1078   :  { %2127 = vmatmul.msk.f32.gmra.mxu0 %vm151_vm1, %v1160_v40 }
0x10ed   :  { %v1194_v42 = vpop.f32.mrf.mxu0 }
0x10ee   :  { %v2899_v43 = vadd.f32 %v2218_v41, %v1194_v42 }
0x10f0   :  { %1202 = vrot.lane.b32.xlu0 %v2899_v43, %s2358_s28  ;;  %v1200_v44 = vmul.f32 0.35355338, %v2899_v43  ;;  %v1487_v47 = vrot.slane %v2899_v43, 5 }
0x10f2   :  { %1339 = vrot.lane.b32.xlu1 %v1200_v44, %s2364_s3  ;;  %v1483_v51 = vrot.slane %v1200_v44, 5 }
0x10f5   :  { %v1197_v45 = vpop.f32.mrf.mxu0 }
0x10f6   :  { %v1198_v46 = vadd.f32 %v2218_v41, %v1197_v45 }
0x10f8   :  { %v1488_v48 = vrot.slane %v1198_v46, 5  ;;  %1341 = vrot.lane.b32.xlu0 %v2899_v43, %s2362_s25  ;;  %v1481_v17 = vmul.f32 0.35355338, %v1198_v46 }
0x10fa   :  { %v2909_v49 = vsel %vm598_vm7, %v1487_v47, %v1488_v48  ;;  %v1484_v50 = vrot.slane %v1481_v17, 5 }
0x10fb   :  { %1628 = vrot.lane.b32.xlu1 %v2909_v49, %s2362_s25  ;;  %s3183_s25 = smov 104  }
0x10fc   :  { %v1485_v20 = vsel %vm598_vm7, %v1483_v51, %v1484_v50  ;;  %vm3184_vm7 = vcmask 61440  }
0x1100   :  { %1270 = vrot.lane.b32.xlu0 %v2899_v43, %s2360_s22 }
0x1108   :  { %1268 = vrot.lane.b32.xlu0 %v1200_v44, %s2359_s4 }
0x1110   :  { %1412 = vrot.lane.b32.xlu0 %v2899_v43, %s3181_s6 }
0x1118   :  { %1626 = vrot.lane.b32.xlu0 %v1485_v20, %s2364_s3  ;;  %s3188_s3 = smov 8  }
0x1120   :  { %1699 = vrot.lane.b32.xlu0 %v2909_v49, %s3181_s6 }
0x1162   :  { %v1203_v52 = vpop.permute.xlu0 %1202 }
0x1163   :  { %2128 = vmatpush.xpose.msk.msra.mxu1 %vm311_vm9, %v1203_v52 }
0x1164   :  { %v1340_v9 = vpop.permute.xlu1 %1339 }
0x1166   :  { %2129 = vmatmul.msk.f32.vlgmr.msra.gmra.mxu1 %vm311_vm9, %v1200_v44 }
0x116a   :  { %v1342_v54 = vpop.permute.xlu0 %1341 }
0x116d   :  { %v1629_v10 = vpop.permute.xlu1 %1628 }
0x1172   :  { %v1271_v57 = vpop.permute.xlu0 %1270 }
0x1173   :  { %2132 = vmatpush.xpose.msk.msrb.mxu0 %vm311_vm9, %v1271_v57 }
0x117a   :  { %v1269_v59 = vpop.permute.xlu0 %1268 }
0x117b   :  { %2133 = vmatmul.msk.f32.vlgmr.msrb.gmra.mxu0 %vm311_vm9, %v1269_v59 }
0x1182   :  { %v1413_v60 = vpop.permute.xlu0 %1412 }
0x1183   :  { %2140 = vmatpush.xpose.msk.msra.mxu0 %vm311_vm9, %v1413_v60 }
0x118a   :  { %v1627_v28 = vpop.permute.xlu0 %1626 }
0x1192   :  { %v1700_v6 = vpop.permute.xlu0 %1699 }
0x11e3   :  { %v1226_v23 = vpop.f32.mrf.mxu1 }
0x11e4   :  { %v1229_v62 = vsel %vm337_vm11, %v1226_v23, -inf }
0x11e5   :  { %1230 = vmax.xlane.f32.xlu2 %v1229_v62 }
0x11f8   :  { %v1293_v8 = vpop.f32.mrf.mxu0 }
0x11f9   :  { %v1296_v22 = vsel %vm337_vm11, %v1293_v8, -inf }
0x11fd   :  { %1240 = vrot.lane.b32.xlu2 %v2899_v43, %s3182_s8 }
0x1205   :  { %1490 = vrot.lane.b32.xlu2 %v2909_v49, %s2358_s28  ;;  %s3185_s28 = smov 56  }
0x120d   :  { %1410 = vrot.lane.b32.xlu2 %v1200_v44, %s3183_s25 }
0x1215   :  { %1557 = vrot.lane.b32.xlu2 %v2909_v49, %s2360_s22  ;;  %s3187_s22 = smov 40  }
0x121d   :  { %1697 = vrot.lane.b32.xlu2 %v1485_v20, %s3183_s25 }
0x1258   :  { %v1231_v63 = vpop.xlane.xlu2 %1230 }
0x1259   :  { %v1232_v0 = vsub.f32 %v1226_v23, %v1231_v63 }
0x125b   :  { %v1233_v24 = vmul.f32 1.442695, %v1232_v0 }
0x125d   :  { %2284 = vpow2.f32 %v1233_v24 }
0x1260   :  { %v1241_v1 = vpop.permute.xlu2 %1240 }
0x1261   :  { %2130 = vmatpush.msk.msra.mxu2 %vm355_vm10, %v1241_v1 }
0x1263   :  { %2136 = vmatpush.xpose.msk.msrb.mxu2 %vm311_vm9, %v1342_v54  ;;  %v2285_v2 = vpop.eup %2284 }
0x1264   :  { %v1235_v3 = vsel %vm337_vm11, %v2285_v2, 0.0 }
0x1265   :  { %1236 = vadd.xlane.f32.xlu1 %v1235_v3 }
0x1268   :  { %v1491_v14 = vpop.permute.xlu2 %1490 }
0x1270   :  { %v1411_v4 = vpop.permute.xlu2 %1410 }
0x1271   :  { %2141 = vmatmul.msk.f32.vlgmr.msra.gmra.mxu0 %vm311_vm9, %v1411_v4 }
0x1278   :  { %v1558_v5 = vpop.permute.xlu2 %1557 }
0x1279   :  { %2148 = vmatpush.xpose.msk.msrb.mxu0 %vm311_vm9, %v1558_v5 }
0x127d   :  { %2156 = vmatpush.xpose.msk.msra.mxu0 %vm311_vm9, %v1700_v6 }
0x127e   :  { %1555 = vrot.lane.b32.xlu1 %v1485_v20, %s2359_s4  ;;  %s3186_s4 = smov 48  }
0x1280   :  { %v1698_v16 = vpop.permute.xlu2 %1697 }
0x12a8   :  { %1297 = vmax.xlane.f32.xlu1 %v1296_v22 }
0x12d8   :  { %v1237_v11 = vpop.xlane.xlu1 %1236 }
0x12d9   :  { %2286 = vrcp.f32 %v1237_v11 }
0x12df   :  { %v2287_v12 = vpop.eup %2286 }
0x12e0   :  { %v1239_v13 = vmul.f32 %v2287_v12, %v2285_v2 }
0x12e2   :  { %2131 = vmatmul.msk.f32.vlgmr.msra.gmra.mxu2 %vm351_vm13, %v1239_v13 }
0x12e3   :  { %2144 = vmatpush.xpose.msk.msra.mxu2 %vm311_vm9, %v1491_v14 }
0x12ea   :  { %2137 = vmatmul.msk.f32.vlgmr.msrb.gmra.mxu2 %vm311_vm9, %v1340_v9 }
0x12eb   :  { %2152 = vmatpush.xpose.msk.msrb.mxu2 %vm311_vm9, %v1629_v10 }
0x12ee   :  { %v1435_v53 = vpop.f32.mrf.mxu0 }
0x12ef   :  { %v1438_v56 = vsel %vm337_vm11, %v1435_v53, -inf }
0x12f0   :  { %v1556_v15 = vpop.permute.xlu1 %1555  ;;  %1439 = vmax.xlane.f32.xlu2 %v1438_v56 }
0x12f1   :  { %2149 = vmatmul.msk.f32.vlgmr.msrb.gmra.mxu0 %vm311_vm9, %v1556_v15 }
0x12f2   :  { %2145 = vmatmul.msk.f32.vlgmr.msra.gmra.mxu2 %vm311_vm9, %v1485_v20 }
0x12f9   :  { %2157 = vmatmul.msk.f32.vlgmr.msra.gmra.mxu0 %vm311_vm9, %v1698_v16 }
0x12fa   :  { %2153 = vmatmul.msk.f32.vlgmr.msrb.gmra.mxu2 %vm311_vm9, %v1627_v28  ;;  %vm3190_vm9 = vcmask 127040  }
0x131b   :  { %v1298_v18 = vpop.xlane.xlu1 %1297 }
0x131c   :  { %v1299_v21 = vsub.f32 %v1293_v8, %v1298_v18 }
0x131e   :  { %v1300_v25 = vmul.f32 1.442695, %v1299_v21 }
0x1320   :  { %2288 = vpow2.f32 %v1300_v25 }
0x1326   :  { %v2289_v29 = vpop.eup %2288 }
0x1327   :  { %v1302_v31 = vsel %vm337_vm11, %v2289_v29, 0.0 }
0x1363   :  { %v1440_v58 = vpop.xlane.xlu2 %1439 }
0x1364   :  { %v1441_v33 = vsub.f32 %v1435_v53, %v1440_v58 }
0x1365   :  { %v1264_v19 = vpop.f32.mrf.mxu2 }
0x1366   :  { %1267 = vst.msk [vmem:[#allocation2] sm:$0x1f] %vm3184_vm7, %v1264_v19  ;;  %v1442_v34 = vmul.f32 1.442695, %v1441_v33 }
0x1368   :  { %2290 = vpow2.f32 %v1442_v34 }
0x136d   :  { %v1364_v35 = vpop.f32.mrf.mxu2 }
0x136e   :  { %v1580_v26 = vpop.f32.mrf.mxu0  ;;  %v2291_v36 = vpop.eup %2290  ;;  %v1367_v20 = vsel %vm337_vm11, %v1364_v35, -inf }
0x136f   :  { %v1583_v27 = vsel %vm337_vm11, %v1580_v26, -inf  ;;  %v1444_v7 = vsel %vm337_vm11, %v2291_v36, 0.0 }
0x1370   :  { %1584 = vmax.xlane.f32.xlu2 %v1583_v27 }
0x1375   :  { %v1513_v37 = vpop.f32.mrf.mxu2 }
0x1376   :  { %v1722_v30 = vpop.f32.mrf.mxu0  ;;  %v1516_v39 = vsel %vm337_vm11, %v1513_v37, -inf }
0x1377   :  { %v1725_v32 = vsel %vm337_vm11, %v1722_v30, -inf }
0x1378   :  { %1303 = vadd.xlane.f32.xlu2 %v1302_v31  ;;  %1726 = vmax.xlane.f32.xlu1 %v1725_v32 }
0x137d   :  { %v1651_v60 = vpop.f32.mrf.mxu2 }
0x137e   :  { %v1654_v23 = vsel %vm337_vm11, %v1651_v60, -inf }
0x1390   :  { %1307 = vrot.lane.b32.xlu2 %v2899_v43, %s3185_s28 }
0x1391   :  { %1378 = vrot.lane.b32.xlu1 %v2899_v43, %s3186_s4 }
0x13bb   :  { %1445 = vadd.xlane.f32.xlu1 %v1444_v7 }
0x13c3   :  { %1517 = vmax.xlane.f32.xlu1 %v1516_v39 }
0x13dc   :  { %1527 = vrot.lane.b32.xlu1 %v2909_v49, %s3182_s8 }
0x13e3   :  { %v1585_v40 = vpop.xlane.xlu2 %1584 }
0x13e4   :  { %v1586_v41 = vsub.f32 %v1580_v26, %v1585_v40 }
0x13e6   :  { %v1587_v42 = vmul.f32 1.442695, %v1586_v41 }
0x13e8   :  { %2292 = vpow2.f32 %v1587_v42 }
0x13eb   :  { %v1304_v44 = vpop.xlane.xlu2 %1303  ;;  %v1727_v47 = vpop.xlane.xlu1 %1726 }
0x13ec   :  { %2294 = vrcp.f32 %v1304_v44  ;;  %v1728_v51 = vsub.f32 %v1722_v30, %v1727_v47  ;;  %v2163_v47 = vld [vmem:[%s3134_s9 + $0x38] sm:$0xff] }
0x13ed   :  { %1798 = vmatpush.msra.mxu2 %v2163_v47  ;;  %v2181_v47 = vld [vmem:[%s3140_s15 + $0x58] sm:$0xff] }
0x13ee   :  { %v2965_v45 = vpop.eup %2292  ;;  %v1729_v52 = vmul.f32 1.442695, %v1728_v51 }
0x13ef   :  { %v1589_v46 = vsel %vm337_vm11, %v2965_v45, 0.0 }
0x13f0   :  { %1590 = vadd.xlane.f32.xlu0 %v1589_v46  ;;  %2296 = vpow2.f32 %v1729_v52 }
0x13f2   :  { %v2295_v48 = vpop.eup %2294 }
0x13f3   :  { %v1306_v17 = vmul.f32 %v2295_v48, %v2289_v29  ;;  %v1308_v50 = vpop.permute.xlu2 %1307  ;;  %v2162_v48 = vld [vmem:[%s3134_s9 + $0x30] sm:$0xff] }
0x13f4   :  { %2134 = vmatpush.msk.msrb.mxu1 %vm355_vm10, %v1308_v50  ;;  %1799 = vmatpush.msra.mxu2 %v2162_v48  ;;  %v2160_v50 = vld [vmem:[%s3134_s9 + $0x20] sm:$0xff] }
0x13f5   :  { %2135 = vmatmul.msk.f32.vlgmr.msrb.gmra.mxu1 %vm351_vm13, %v1306_v17  ;;  %v2161_v17 = vld [vmem:[%s3134_s9 + $0x28] sm:$0xff]  ;;  %v2222_v48 = vld [vmem:[%s3139_s14 + $0x1] ss:$0 sm:$0xff] }
0x13f6   :  { %v2972_v54 = vpop.eup %2296  ;;  %1800 = vmatpush.msra.mxu2 %v2161_v17  ;;  %v2180_v17 = vld [vmem:[%s3140_s15 + $0x50] sm:$0xff] }
0x13f7   :  { %v1731_v59 = vsel %vm337_vm11, %v2972_v54, 0.0 }
0x13f8   :  { %1368 = vmax.xlane.f32.xlu0 %v1367_v20  ;;  %1801 = vmatpush.msra.mxu2 %v2160_v50 }
0x1403   :  { %v1379_v57 = vpop.permute.xlu1 %1378 }
0x1404   :  { %2138 = vmatpush.msk.msra.mxu3 %vm355_vm10, %v1379_v57  ;;  %v2219_v57 = vld [vmem:[%s3135_s10 + $0x1] ss:$0 sm:$0xff] }
0x1406   :  { %1732 = vadd.xlane.f32.xlu1 %v1731_v59 }
0x140c   :  { %1449 = vrot.lane.b32.xlu0 %v2899_v43, %s3187_s22 }
0x142e   :  { %v1446_v62 = vpop.xlane.xlu1 %1445 }
0x1436   :  { %1655 = vmax.xlane.f32.xlu0 %v1654_v23  ;;  %v1518_v63 = vpop.xlane.xlu1 %1517 }
0x1437   :  { %v1519_v3 = vsub.f32 %v1513_v37, %v1518_v63 }
0x1439   :  { %v1520_v28 = vmul.f32 1.442695, %v1519_v3 }
0x144e   :  { %v1528_v0 = vpop.permute.xlu1 %1527 }
0x144f   :  { %2146 = vmatpush.msk.msrb.mxu3 %vm355_vm10, %v1528_v0 }
0x1463   :  { %v1591_v24 = vpop.xlane.xlu0 %1590 }
0x146b   :  { %v1369_v1 = vpop.xlane.xlu0 %1368 }
0x146c   :  { %v1370_v2 = vsub.f32 %v1364_v35, %v1369_v1 }
0x146e   :  { %v1371_v14 = vmul.f32 1.442695, %v1370_v2 }
0x1470   :  { %2298 = vpow2.f32 %v1371_v14 }
0x1471   :  { %2300 = vrcp.f32 %v1446_v62 }
0x1472   :  { %2302 = vpow2.f32 %v1520_v28  ;;  %v1331_v12 = vpop.f32.mrf.mxu1 }
0x1476   :  { %v2299_v4 = vpop.eup %2298 }
0x1477   :  { %v1373_v43 = vsel %vm337_vm11, %v2299_v4, 0.0  ;;  %v2301_v5 = vpop.eup %2300 }
0x1478   :  { %1374 = vadd.xlane.f32.xlu0 %v1373_v43  ;;  %v2303_v6 = vpop.eup %2302  ;;  %v1448_v8 = vmul.f32 %v2301_v5, %v2291_v36 }
0x1479   :  { %v1522_v9 = vsel %vm337_vm11, %v2303_v6, 0.0  ;;  %v1733_v30 = vpop.xlane.xlu1 %1732 }
0x147e   :  { %v1450_v22 = vpop.permute.xlu0 %1449 }
0x147f   :  { %2142 = vmatpush.msk.msra.mxu1 %vm355_vm10, %v1450_v22  ;;  %v2171_v22 = vld [vmem:[%s3138_s13 + $0x30] sm:$0xff] }
0x1480   :  { %1523 = vadd.xlane.f32.xlu0 %v1522_v9  ;;  %2143 = vmatmul.msk.f32.vlgmr.msra.gmra.mxu1 %vm351_vm13, %v1448_v8  ;;  %v2170_v9 = vld [vmem:[%s3138_s13 + $0x28] sm:$0xff] }
0x1494   :  { %1594 = vrot.lane.b32.xlu0 %v2909_v49, %s3185_s28 }
0x149c   :  { %1665 = vrot.lane.b32.xlu0 %v2909_v49, %s3186_s4 }
0x14a4   :  { %1736 = vrot.lane.b32.xlu0 %v2909_v49, %s3187_s22 }
0x14a9   :  { %v1656_v10 = vpop.xlane.xlu0 %1655 }
0x14aa   :  { %v1657_v11 = vsub.f32 %v1651_v60, %v1656_v10  ;;  %v2169_v10 = vld [vmem:[%s3138_s13 + $0x20] sm:$0xff] }
0x14ac   :  { %v1658_v13 = vmul.f32 1.442695, %v1657_v11  ;;  %1335 = vrot.lane.b32.xlu0 %v1331_v12, %s3188_s3 }
0x14ae   :  { %2304 = vpow2.f32 %v1658_v13 }
0x14b4   :  { %v2305_v53 = vpop.eup %2304 }
0x14b5   :  { %v1660_v56 = vsel %vm337_vm11, %v2305_v53, 0.0  ;;  %vm3192_vm11 = vmmov %vm3184_vm7 }
0x14b6   :  { %1661 = vadd.xlane.f32.xlu2 %v1660_v56 }
0x14eb   :  { %v1375_v15 = vpop.xlane.xlu0 %1374 }
0x14ec   :  { %2306 = vrcp.f32 %v1375_v15 }
0x14f2   :  { %v2307_v16 = vpop.eup %2306 }
0x14f3   :  { %v1377_v18 = vmul.f32 %v2307_v16, %v2299_v4  ;;  %v1524_v19 = vpop.xlane.xlu0 %1523 }
0x14f4   :  { %2308 = vrcp.f32 %v1524_v19 }
0x14f5   :  { %2139 = vmatmul.msk.f32.vlgmr.msra.gmra.mxu3 %vm351_vm13, %v1377_v18  ;;  %2310 = vrcp.f32 %v1591_v24 }
0x14f6   :  { %2312 = vrcp.f32 %v1733_v30 }
0x14fa   :  { %v2309_v49 = vpop.eup %2308 }
0x14fb   :  { %v1526_v21 = vmul.f32 %v2309_v49, %v2303_v6  ;;  %v2311_v26 = vpop.eup %2310 }
0x14fc   :  { %v1593_v27 = vmul.f32 %v2311_v26, %v2965_v45  ;;  %v2313_v32 = vpop.eup %2312 }
0x14fd   :  { %v1473_v25 = vpop.f32.mrf.mxu1  ;;  %2147 = vmatmul.msk.f32.vlgmr.msrb.gmra.mxu3 %vm351_vm13, %v1526_v21  ;;  %v1735_v58 = vmul.f32 %v2313_v32, %v2972_v54 }
0x14fe   :  { %1477 = vrot.lane.b32.xlu1 %v1473_v25, %s3189_s1 }
0x1506   :  { %v1595_v29 = vpop.permute.xlu0 %1594 }
0x1507   :  { %2150 = vmatpush.msk.msrb.mxu1 %vm355_vm10, %v1595_v29  ;;  %v2220_v29 = vld [vmem:[%s3136_s11 + $0x1] ss:$0 sm:$0xff] }
0x1508   :  { %2151 = vmatmul.msk.f32.vlgmr.msrb.gmra.mxu1 %vm351_vm13, %v1593_v27 }
0x150e   :  { %v1666_v31 = vpop.permute.xlu0 %1665 }
0x150f   :  { %2154 = vmatpush.msk.msra.mxu3 %vm355_vm10, %v1666_v31 }
0x1516   :  { %v1737_v33 = vpop.permute.xlu0 %1736 }
0x1517   :  { %2158 = vmatpush.msk.msra.mxu1 %vm355_vm10, %v1737_v33  ;;  %vm3193_vm10 = vmmov %vm3190_vm9 }
0x1518   :  { %2159 = vmatmul.msk.f32.vlgmr.msra.gmra.mxu1 %vm351_vm13, %v1735_v58  ;;  %v2221_v58 = vld [vmem:[%s3137_s12 + $0x1] ss:$0 sm:$0xff] }
0x151e   :  { %v1336_v34 = vpop.permute.xlu0 %1335 }
0x151f   :  { %1338 = vst.msk [vmem:[#allocation2] sm:$0x1f] %vm3190_vm9, %v1336_v34 }
0x1529   :  { %v1662_v35 = vpop.xlane.xlu2 %1661 }
0x152a   :  { %2314 = vrcp.f32 %v1662_v35 }
0x1530   :  { %v2315_v36 = vpop.eup %2314 }
0x1531   :  { %v1664_v7 = vmul.f32 %v2315_v36, %v2305_v53 }
0x1533   :  { %2155 = vmatmul.msk.f32.vlgmr.msra.gmra.mxu3 %vm351_vm13, %v1664_v7  ;;  %vm3194_vm13 = vcmask 192640  }
0x1534   :  { %vm3196_vm6 = vmmov %vm3194_vm13 }
0x1570   :  { %v1478_v46 = vpop.permute.xlu1 %1477 }
0x1578   :  { %v1402_v37 = vpop.f32.mrf.mxu3 }
0x1579   :  { %1406 = vrot.lane.b32.xlu0 %v1402_v37, %s3191_s26 }
0x1580   :  { %v1551_v39 = vpop.f32.mrf.mxu3 }
0x1581   :  { %1554 = vst.msk [vmem:[#allocation2 + $0x5] sm:$0x1f] %vm3192_vm11, %v1551_v39 }
0x1585   :  { %v1618_v40 = vpop.f32.mrf.mxu1 }
0x1586   :  { %1622 = vrot.lane.b32.xlu2 %v1618_v40, %s3188_s3 }
0x1595   :  { %v1760_v42 = vpop.f32.mrf.mxu1 }
0x15b6   :  { %v1689_v41 = vpop.f32.mrf.mxu3 }
0x15b7   :  { %1693 = vrot.lane.b32.xlu0 %v1689_v41, %s3191_s26 }
0x15bf   :  { %1764 = vrot.lane.b32.xlu0 %v1760_v42, %s3189_s1  ;;  %v2185_v42 = vld [vmem:[%s3140_s15 + $0x78] sm:$0xff] }
0x15c0   :  { %1978 = vmatpush.msrb.mxu0 %v2185_v42 }
0x15e0   :  { %v1623_v44 = vpop.permute.xlu2 %1622 }
0x15e1   :  { %1625 = vst.msk [vmem:[#allocation2 + $0x5] sm:$0x1f] %vm3193_vm10, %v1623_v44  ;;  %v2184_v44 = vld [vmem:[%s3140_s15 + $0x70] sm:$0xff] }
0x15e2   :  { %1979 = vmatpush.msrb.mxu0 %v2184_v44 }
0x15eb   :  { %v1407_v45 = vpop.permute.xlu0 %1406 }
0x15ec   :  { %1409 = vst.msk [vmem:[#allocation2] sm:$0x1f] %vm3194_vm13, %v1407_v45  ;;  %v2183_v45 = vld [vmem:[%s3140_s15 + $0x68] sm:$0xff] }
0x15ed   :  { %1480 = vst.msk [vmem:[#allocation2] sm:$0x1f] %vm3195_vm5, %v1478_v46  ;;  %1980 = vmatpush.msrb.mxu0 %v2183_v45  ;;  %v2182_v46 = vld [vmem:[%s3140_s15 + $0x60] sm:$0xff] }
0x15ef   :  { %1981 = vmatpush.msrb.mxu0 %v2182_v46 }
0x15f1   :  { %1982 = vmatpush.msrb.mxu0 %v2181_v47 }
0x15f3   :  { %1983 = vmatpush.msrb.mxu0 %v2180_v17 }
0x1629   :  { %v1694_v51 = vpop.permute.xlu0 %1693 }
0x162a   :  { %1696 = vst.msk [vmem:[#allocation2 + $0x5] sm:$0x1f] %vm3196_vm6, %v1694_v51  ;;  %v2179_v51 = vld [vmem:[%s3140_s15 + $0x48] sm:$0xff] }
0x162b   :  { %1984 = vmatpush.msrb.mxu0 %v2179_v51 }
0x1631   :  { %v1765_v20 = vpop.permute.xlu0 %1764 }
0x1632   :  { %1767 = vst.msk [vmem:[#allocation2 + $0x5] sm:$0x1f] %vm3197_vm14, %v1765_v20 }
0x1639   :  { %v1768_v52 = vld [vmem:[#allocation2] sm:$0xff]  ;;  %v1769_v54 = vld [vmem:[#allocation2 + $0x8] sm:$0x3] }
0x163a   :  { %2165 = vmatmul.msk.f32.vlgmr.msra.gmra.mxu2 %vm151_vm1, %v1768_v52  ;;  %v2178_v52 = vld [vmem:[%s3140_s15 + $0x40] sm:$0xff] }
0x163b   :  { %1985 = vmatpush.msrb.mxu0 %v2178_v52 }
0x1642   :  { %2166 = vmatmul.msk.f32.gmra.mxu2 %vm151_vm1, %v1769_v54 }
0x16bd   :  { %v1803_v59 = vpop.f32.mrf.mxu2 }
0x16be   :  { %v1804_v60 = vadd.f32 %v2219_v57, %v1803_v59 }
0x16c0   :  { %v3033_v23 = vadd.f32 %v1804_v60, %v2859_v55 }
0x16c2   :  { %v1815_v62 = vsel %vm151_vm1, %v3033_v23, 0.0 }
0x16c3   :  { %1816 = vadd.xlane.f32.xlu2 %v1815_v62 }
0x16c5   :  { %v1806_v63 = vpop.f32.mrf.mxu2 }
0x16c6   :  { %v1807_v0 = vadd.f32 %v2219_v57, %v1806_v63 }
0x16c8   :  { %v1810_v24 = vadd.f32 %v1807_v0, %v2864_v61  ;;  %v2172_v61 = vld [vmem:[%s3138_s13 + $0x38] sm:$0xff] }
0x16c9   :  { %1897 = vmatpush.msrb.mxu3 %v2172_v61 }
0x16ca   :  { %v1818_v1 = vsel %vm155_vm12, %v1810_v24, 0.0 }
0x16cb   :  { %1819 = vadd.xlane.f32.xlu1 %v1818_v1  ;;  %1898 = vmatpush.msrb.mxu3 %v2171_v22 }
0x16cd   :  { %1899 = vmatpush.msrb.mxu3 %v2170_v9 }
0x16cf   :  { %1900 = vmatpush.msrb.mxu3 %v2169_v10 }
0x1736   :  { %v1817_v2 = vpop.xlane.xlu2 %1816 }
0x1737   :  { %v1821_v3 = vmul.f32 %v1817_v2, %v2560_v38 }
0x1739   :  { %v1823_v14 = vsub.f32 %v3033_v23, %v1821_v3 }
0x173b   :  { %v1825_v28 = vmul.f32 %v1823_v14, %v1823_v14 }
0x173d   :  { %v1827_v55 = vsel %vm151_vm1, %v1825_v28, 0.0 }
0x173e   :  { %v1820_v4 = vpop.xlane.xlu1 %1819  ;;  %1828 = vadd.xlane.f32.xlu0 %v1827_v55 }
0x173f   :  { %v1822_v43 = vmul.f32 %v1820_v4, %v2560_v38 }
0x1741   :  { %v1824_v5 = vsub.f32 %v1810_v24, %v1822_v43 }
0x1743   :  { %v1826_v6 = vmul.f32 %v1824_v5, %v1824_v5 }
0x1745   :  { %v1830_v8 = vsel %vm155_vm12, %v1826_v6, 0.0 }
0x1746   :  { %1831 = vadd.xlane.f32.xlu2 %v1830_v8 }
0x17b1   :  { %v1829_v11 = vpop.xlane.xlu0 %1828 }
0x17b2   :  { %v1833_v12 = vmul.f32 %v1829_v11, %v2560_v38 }
0x17b4   :  { %v1835_v13 = vadd.f32 1e-05, %v1833_v12 }
0x17b6   :  { %2316 = vrsqrt.f32 %v1835_v13  ;;  %vm1843_vm15 = vweird.f32 %v1835_v13 }
0x17b9   :  { %v1832_v53 = vpop.xlane.xlu2 %1831 }
0x17ba   :  { %v1834_v56 = vmul.f32 %v1832_v53, %v2560_v38 }
0x17bc   :  { %v2317_v15 = vpop.eup %2316  ;;  %v1836_v16 = vadd.f32 1e-05, %v1834_v56 }
0x17bd   :  { %v1838_v18 = vmul.f32 %v2317_v15, %v1835_v13  ;;  %vm1844_vm8 = vweird.f32 %v2317_v15 }
0x17be   :  { %2318 = vrsqrt.f32 %v1836_v16  ;;  %vm1845_vm2 = vmor %vm1843_vm15, %vm1844_vm8  ;;  %vm1853_vm4 = vweird.f32 %v1836_v16  ;;  %vm1993_vm15 = vcmask 253952  }
0x17bf   :  { %v1839_v19 = vmul.f32 %v2317_v15, %v1838_v18 }
0x17c1   :  { %v1840_v49 = vmul.f32 0.5, %v1839_v19 }
0x17c3   :  { %v1841_v21 = vsub.f32 1.5, %v1840_v49  ;;  %v2223_v49 = vld [vmem:[%s3141_s16 + $0x1] ss:$0 sm:$0xff] }
0x17c4   :  { %v2319_v25 = vpop.eup %2318 }
0x17c5   :  { %v1842_v26 = vmul.f32 %v2317_v15, %v1841_v21  ;;  %v1848_v27 = vmul.f32 %v2319_v25, %v1836_v16  ;;  %vm1854_vm3 = vweird.f32 %v2319_v25 }
0x17c6   :  { %vm1855_vm7 = vmor %vm1853_vm4, %vm1854_vm3  ;;  %vm2057_vm4 = vcmask 123904  }
0x17c7   :  { %v1846_v30 = vsel %vm1845_vm2, %v2317_v15, %v1842_v26  ;;  %v1849_v31 = vmul.f32 %v2319_v25, %v1848_v27  ;;  %vm1995_vm2 = vcmask 259077  }
0x17c8   :  { %v1857_v32 = vmul.f32 %v1846_v30, %v1823_v14 }
0x17c9   :  { %v1850_v33 = vmul.f32 0.5, %v1849_v31 }
0x17ca   :  { %v1862_v34 = vmul.f32 %v2220_v29, %v1857_v32 }
0x17cb   :  { %v1851_v35 = vsub.f32 1.5, %v1850_v33 }
0x17cc   :  { %v1867_v36 = vadd.f32 %v2221_v58, %v1862_v34 }
0x17cd   :  { %v1852_v7 = vmul.f32 %v2319_v25, %v1851_v35  ;;  %v2032_v35 = vld [vmem:[%s3144_s19 + $0x10] sm:$0xff] }
0x17ce   :  { %2174 = vmatmul.msk.f32.vlgmr.msrb.gmra.mxu3 %vm151_vm1, %v1867_v36  ;;  %v2031_v36 = vld [vmem:[%s3144_s19 + $0x8] sm:$0xff] }
0x17cf   :  { %v1856_v37 = vsel %vm1855_vm7, %v2319_v25, %v1852_v7  ;;  %v2030_v7 = vld [vmem:[%s3144_s19] sm:$0xff] }
0x17d0   :  { %v1858_v39 = vmul.f32 %v1856_v37, %v1824_v5 }
0x17d2   :  { %v1863_v40 = vmul.f32 %v2220_v29, %v1858_v39 }
0x17d4   :  { %v1868_v41 = vadd.f32 %v2221_v58, %v1863_v40 }
0x17d6   :  { %2175 = vmatmul.msk.f32.gmra.mxu3 %vm151_vm1, %v1868_v41 }
0x1851   :  { %v1902_v50 = vpop.f32.mrf.mxu3 }
0x1852   :  { %v1903_v20 = vadd.f32 %v2222_v48, %v1902_v50 }
0x1854   :  { %v2176_v54 = vmul.f32 -1.702, %v1903_v20 }
0x1856   :  { %v1912_v57 = vmul.f32 1.442695, %v2176_v54 }
0x1858   :  { %2320 = vpow2.f32 %v1912_v57 }
0x1859   :  { %v1905_v59 = vpop.f32.mrf.mxu3 }
0x185a   :  { %v1906_v60 = vadd.f32 %v2222_v48, %v1905_v59  ;;  %v2224_v48 = vld [vmem:[%s3142_s17] ss:$0 sm:$0xff] }
0x185c   :  { %v2177_v62 = vmul.f32 -1.702, %v1906_v60 }
0x185e   :  { %v2321_v63 = vpop.eup %2320  ;;  %v1914_v0 = vmul.f32 1.442695, %v2177_v62 }
0x185f   :  { %v1916_v24 = vadd.f32 1.0, %v2321_v63 }
0x1860   :  { %2322 = vpow2.f32 %v1914_v0 }
0x1861   :  { %2324 = vrcp.f32 %v1916_v24  ;;  %v1929_v55 = vand.u32 2147483648, %v1916_v24  ;;  %v1927_v43 = vand.u32 2147483647, %v1916_v24  ;;  %vm1923_vm11 = vweird.f32 %v1916_v24 }
0x1863   :  { %v1930_v8 = vor.u32 1.1754944e-38, %v1929_v55  ;;  %vm1928_vm13 = vcmp.eq.f32.partialorder %v1927_v43, 8.507059e+37 }
0x1866   :  { %v2323_v1 = vpop.eup %2322 }
0x1867   :  { %v2325_v2 = vpop.eup %2324  ;;  %v1917_v3 = vadd.f32 1.0, %v2323_v1 }
0x1868   :  { %v1919_v14 = vmul.f32 %v2325_v2, %v1916_v24  ;;  %vm1924_vm9 = vweird.f32 %v2325_v2 }
0x1869   :  { %2326 = vrcp.f32 %v1917_v3  ;;  %vm1925_vm10 = vmor %vm1923_vm11, %vm1924_vm9  ;;  %v1944_v12 = vand.u32 2147483648, %v1917_v3  ;;  %v1942_v53 = vand.u32 2147483647, %v1917_v3  ;;  %vm1938_vm6 = vweird.f32 %v1917_v3 }
0x186a   :  { %v1920_v28 = vsub.f32 1.0, %v1919_v14 }
0x186b   :  { %v1945_v15 = vor.u32 1.1754944e-38, %v1944_v12  ;;  %vm1943_vm8 = vcmp.eq.f32.partialorder %v1942_v53, 8.507059e+37 }
0x186c   :  { %v1921_v4 = vmul.f32 %v2325_v2, %v1920_v28 }
0x186e   :  { %v1922_v5 = vadd.f32 %v2325_v2, %v1921_v4 }
0x186f   :  { %v2327_v6 = vpop.eup %2326 }
0x1870   :  { %v1926_v61 = vsel %vm1925_vm10, %v2325_v2, %v1922_v5  ;;  %v1934_v22 = vmul.f32 %v2327_v6, %v1917_v3  ;;  %vm1939_vm5 = vweird.f32 %v2327_v6 }
0x1871   :  { %v1931_v9 = vsel %vm1928_vm13, %v1930_v8, %v1926_v61  ;;  %vm1940_vm14 = vmor %vm1938_vm6, %vm1939_vm5 }
0x1872   :  { %v1948_v10 = vmul.f32 %v1931_v9, %v1903_v20  ;;  %v1935_v11 = vsub.f32 1.0, %v1934_v22 }
0x1874   :  { %v1936_v13 = vmul.f32 %v2327_v6, %v1935_v11  ;;  %2187 = vmatmul.msk.f32.vlgmr.msrb.gmra.mxu0 %vm96_vm0, %v1948_v10 }
0x1876   :  { %v1937_v56 = vadd.f32 %v2327_v6, %v1936_v13 }
0x1878   :  { %v1941_v16 = vsel %vm1940_vm14, %v2327_v6, %v1937_v56 }
0x1879   :  { %v1946_v18 = vsel %vm1943_vm8, %v1945_v15, %v1941_v16 }
0x187a   :  { %v1949_v19 = vmul.f32 %v1946_v18, %v1906_v60 }
0x187c   :  { %2188 = vmatmul.msk.f32.gmra.mxu0 %vm96_vm0, %v1949_v19 }
0x18f1   :  { %v1987_v21 = vpop.f32.mrf.mxu0 }
0x18f2   :  { %v1988_v25 = vadd.f32 %v2223_v49, %v1987_v21 }
0x18f4   :  { %v1992_v26 = vadd.f32 %v1988_v25, %v3033_v23  ;;  %v2033_v23 = vld [vmem:[%s3144_s19 + $0x18] sm:$0xff] }
0x18f5   :  { %2049 = vmatpush.msrb.mxu1 %v2033_v23 }
0x18f6   :  { %1994 = vst.msk [vmem:[#allocation3] sm:$0x1] %vm1993_vm15, %v1992_v26 }
0x18f7   :  { %1996 = vst.msk [vmem:[#allocation3 - $0x4] sm:$0x20] %vm1995_vm2, %v1992_v26  ;;  %2050 = vmatpush.msrb.mxu1 %v2032_v35 }
0x18f9   :  { %v1990_v27 = vpop.f32.mrf.mxu0  ;;  %2051 = vmatpush.msrb.mxu1 %v2031_v36 }
0x18fb   :  { %2052 = vmatpush.msrb.mxu1 %v2030_v7 }
0x18fe   :  { %v1997_v29 = vld [vmem:[#allocation3] sm:$0x3] }
0x18ff   :  { %v2000_v30 = vsel %vm155_vm12, %v1997_v29, 0.0 }
0x1900   :  { %2001 = vadd.xlane.f32.xlu0 %v2000_v30 }
0x1973   :  { %v2002_v31 = vpop.xlane.xlu0 %2001 }
0x1974   :  { %v2003_v32 = vmul.f32 %v2002_v31, %v2560_v38 }
0x1976   :  { %v2004_v58 = vsub.f32 %v1997_v29, %v2003_v32 }
0x1978   :  { %v2005_v33 = vmul.f32 %v2004_v58, %v2004_v58 }
0x197a   :  { %v2006_v34 = vsel %vm155_vm12, %v2005_v33, 0.0 }
0x197b   :  { %2007 = vadd.xlane.f32.xlu2 %v2006_v34 }
0x19ee   :  { %v2008_v37 = vpop.xlane.xlu2 %2007 }
0x19ef   :  { %v2009_v39 = vmul.f32 %v2008_v37, %v2560_v38  ;;  %v2225_v38 = vld [vmem:[%s3143_s18] ss:$0 sm:$0xff] }
0x19f1   :  { %v2010_v40 = vadd.f32 1e-05, %v2009_v39 }
0x19f3   :  { %2328 = vrsqrt.f32 %v2010_v40  ;;  %vm2017_vm12 = vweird.f32 %v2010_v40 }
0x19f9   :  { %v2329_v41 = vpop.eup %2328 }
0x19fa   :  { %v2012_v42 = vmul.f32 %v2329_v41, %v2010_v40  ;;  %vm2018_vm0 = vweird.f32 %v2329_v41 }
0x19fb   :  { %vm2019_vm3 = vmor %vm2017_vm12, %vm2018_vm0 }
0x19fc   :  { %v2013_v44 = vmul.f32 %v2329_v41, %v2012_v42 }
0x19fe   :  { %v2014_v45 = vmul.f32 0.5, %v2013_v44 }
0x1a00   :  { %v2015_v46 = vsub.f32 1.5, %v2014_v45 }
0x1a02   :  { %v2016_v47 = vmul.f32 %v2329_v41, %v2015_v46 }
0x1a04   :  { %v2020_v17 = vsel %vm2019_vm3, %v2329_v41, %v2016_v47 }
0x1a05   :  { %v2021_v50 = vmul.f32 %v2020_v17, %v2004_v58 }
0x1a07   :  { %v2025_v51 = vmul.f32 %v2224_v48, %v2021_v50 }
0x1a09   :  { %v2029_v20 = vadd.f32 %v2225_v38, %v2025_v51 }
0x1a0b   :  { %2189 = vmatmul.msk.f32.vlgmr.msrb.gmra.mxu1 %vm151_vm1, %v2029_v20 }
0x1a88   :  { %v2054_v52 = vpop.f32.mrf.mxu1 }
0x1a89   :  { %2058 = vst.msk [vmem:[#allocation4] sm:$0x3] %vm2057_vm4, %v2054_v52 }
0x1a8a   :  { %2069 = dma.vmem_to_hbm [thread:$0]  %s2065_s2, 32, %s2067_s21, [#allocation5]  }
0x1a8b   :  { %2354 = dma.done.wait [#allocation5], 32  }
0x1a8c   :  { %2355 = vsyncadd [#allocation5], 4294967264 }
0x1a8d   :  { %2074 = vsyncpa [#allocation5], 1 }

</bundles_post_ra>
